<compile_context>
chip_gen: v7x
topology: tpu7x:2x2x1
jax: 0.10.0
libtpu: 0.0.40
codegen_flags: <defaults>
</compile_context>

<pallas_src>
import functools
import math

import jax
import jax.numpy as jnp
from jax.experimental import pallas as pl
from jax.experimental.pallas import tpu as pltpu


# ----------------------------------------------------------------------------
# Pallas kernel: full SpatialTSFM stack (n_layers=1, half=False, projection)
# over all A*B rows in one shot.
# ----------------------------------------------------------------------------
def _spatial_tsfm_kernel(x_ref, w_ref, vec_ref, o_ref, *,
                         n_heads, dim_k, dim_v, d_model, d_in, dim_fc, batch):
    f32 = jnp.float32
    N = x_ref.shape[0]                      # A * B rows
    HK = n_heads * dim_k
    HV = n_heads * dim_v
    QKV = 2 * HK + HV

    # ---- unpack packed bias / LayerNorm vectors (one padded row each) ----
    vec = vec_ref[...]                      # (10, 128)
    be, bqkv, bo = vec[0:1, :d_model], vec[1:2, :QKV], vec[2:3, :d_model]
    g1, beta1 = vec[3:4, :d_model], vec[4:5, :d_model]
    b1, b2 = vec[5:6, :dim_fc], vec[6:7, :d_model]
    g2, beta2 = vec[7:8, :d_model], vec[8:9, :d_model]
    bp = vec[9:10, :d_in]

    # ---- unpack padded weight stack (static, aligned sub-block slices) ----
    we = w_ref[0, :d_in, :d_model]          # embed
    wqkv = w_ref[1, :d_model, :QKV]         # fused q/k/v
    wo = w_ref[2, :HV, :d_model]            # attention output projection
    w1 = w_ref[3, :d_model, :dim_fc]        # conv1 (kernel_size=1)
    w2 = w_ref[4, :dim_fc, :d_model]        # conv2 (kernel_size=1)
    wp = w_ref[5, :d_model, :d_in]          # final projection

    x = x_ref[...]                          # (N, d_in) f32

    # --- TemporalEmbedding: Linear(d_in -> d_model) ---
    xe = jnp.dot(x, we, preferred_element_type=f32) + be          # (N, d_model)

    # --- fused QKV projection ---
    qkv = jnp.dot(xe, wqkv, preferred_element_type=f32) + bqkv    # (N, 3*H*dk)
    q, k, v = qkv[:, :HK], qkv[:, HK:2 * HK], qkv[:, 2 * HK:QKV]

    # --- additive block mask: same temporal-batch index only ---
    row_i = jax.lax.broadcasted_iota(jnp.int32, (N, N), 0)
    col_i = jax.lax.broadcasted_iota(jnp.int32, (N, N), 1)
    if (batch & (batch - 1)) == 0:          # power-of-two fast path
        same = (row_i & (batch - 1)) == (col_i & (batch - 1))
    else:
        same = (row_i % batch) == (col_i % batch)
    attn_bias = jnp.where(same, 0.0, -1e30).astype(f32)           # (N, N)

    norm_fact = 1.0 / math.sqrt(d_model)    # matches PyTorch source (d_model!)
    attn = None
    for h in range(n_heads):                # static unroll, pure 2-D matmuls
        qh = q[:, h * dim_k:(h + 1) * dim_k]                      # (N, dk)
        kh = k[:, h * dim_k:(h + 1) * dim_k]                      # (N, dk)
        vh = v[:, h * dim_v:(h + 1) * dim_v]                      # (N, dv)
        # scores: contract dk of q with dk of k (rhs-transposed matmul)
        s = jax.lax.dot_general(qh, kh, (((1,), (1,)), ((), ())),
                                preferred_element_type=f32)
        s = s * norm_fact + attn_bias
        s = s - jnp.max(s, axis=-1, keepdims=True)                # stable softmax
        e = jnp.exp(s)
        inv = pl.reciprocal(jnp.sum(e, axis=-1, keepdims=True), approx=False)
        hv = jnp.dot(e, vh, preferred_element_type=f32) * inv     # (N, dv)
        woh = wo[h * dim_v:(h + 1) * dim_v, :]                    # (dv, d_model)
        contrib = jnp.dot(hv, woh, preferred_element_type=f32)
        attn = contrib if attn is None else attn + contrib
    attn = attn + bo                                              # (N, d_model)

    def layer_norm(z, g, b):
        mu = jnp.mean(z, axis=-1, keepdims=True)
        var = jnp.mean((z - mu) * (z - mu), axis=-1, keepdims=True)
        return (z - mu) * jax.lax.rsqrt(var + 1e-5) * g + b

    # --- residual + norm1 (dropout is identity in eval mode) ---
    x1 = layer_norm(xe + attn, g1, beta1)

    # --- conv1(k=1) + relu, conv2(k=1) ---
    y = jnp.maximum(jnp.dot(x1, w1, preferred_element_type=f32) + b1, 0.0)
    y = jnp.dot(y, w2, preferred_element_type=f32) + b2

    # --- residual + norm2, then output projection d_model -> d_in ---
    out = layer_norm(x1 + y, g2, beta2)
    o_ref[...] = jnp.dot(out, wp, preferred_element_type=f32) + bp


# ----------------------------------------------------------------------------
# One-time parameter packing (done outside the jitted forward).
# ----------------------------------------------------------------------------
def pack_params(params, *, n_heads, dim_k, dim_v, d_model, d_in, dim_fc):
    del dim_fc  # shapes are taken from the arrays themselves
    wqkv = jnp.concatenate([params["wq"], params["wk"], params["wv"]], axis=1)
    bqkv = jnp.concatenate([params["bq"], params["bk"], params["bv"]], axis=1)

    weights = [params["we"], wqkv, params["wo"],
               params["w1"], params["w2"], params["wp"]]
    R = max(w.shape[0] for w in weights)
    C = max(w.shape[1] for w in weights)
    wstack = jnp.stack(
        [jnp.pad(w, ((0, R - w.shape[0]), (0, C - w.shape[1]))) for w in weights]
    ).astype(jnp.float32)                                        # (6, R, C)

    vecs = [params["be"], bqkv, params["bo"],
            params["g1"], params["beta1"],
            params["b1"], params["b2"],
            params["g2"], params["beta2"], params["bp"]]
    P = max(int(v.size) for v in vecs)
    P = ((P + 127) // 128) * 128                                 # lane-align
    vec = jnp.concatenate(
        [jnp.pad(v.reshape(1, -1), ((0, 0), (0, P - v.size))) for v in vecs],
        axis=0).astype(jnp.float32)                              # (10, P)
    return wstack, vec


# ----------------------------------------------------------------------------
# JAX wrapper: reshape-only plumbing (no transposes) + single pallas_call.
# ----------------------------------------------------------------------------
@functools.partial(jax.jit, static_argnames=(
    "n_heads", "dim_k", "dim_v", "d_model", "d_in", "dim_fc"))
def spatial_tsfm_forward(x, wstack, vec, *, n_heads, dim_k, dim_v,
                         d_model, d_in, dim_fc):
    """x: (A, B, d_in).  Attention is over axis 0 (spatial), batched over axis 1."""
    A, B, din = x.shape
    assert din == d_in
    N = A * B
    x2d = x.reshape(N, d_in)                # free reshape: row r = a*B + b

    kernel = functools.partial(
        _spatial_tsfm_kernel, n_heads=n_heads, dim_k=dim_k, dim_v=dim_v,
        d_model=d_model, d_in=d_in, dim_fc=dim_fc, batch=B)

    out2d = pl.pallas_call(
        kernel,
        out_shape=jax.ShapeDtypeStruct((N, d_in), jnp.float32),
        grid=(1,),                          # single step: whole problem resident
        in_specs=[pl.BlockSpec((N, d_in), lambda i: (0, 0)),
                  pl.BlockSpec(wstack.shape, lambda i: (0, 0, 0)),
                  pl.BlockSpec(vec.shape, lambda i: (0, 0))],
        out_specs=pl.BlockSpec((N, d_in), lambda i: (0, 0)),
        compiler_params=pltpu.CompilerParams(
            dimension_semantics=("arbitrary",)),
    )(x2d, wstack, vec)

    return out2d.reshape(A, B, d_in)        # free reshape back


# ----------------------------------------------------------------------------
# Pure-JAX reference (sanity check of the kernel semantics).
# ----------------------------------------------------------------------------
def spatial_tsfm_reference(x, params, *, n_heads, dim_k, dim_v, d_model):
    xs = jnp.swapaxes(x, 0, 1)
    xe = xs @ params["we"] + params["be"]
    B, L, _ = xe.shape
    Q = (xe @ params["wq"] + params["bq"]).reshape(B, L, n_heads, dim_k)
    K = (xe @ params["wk"] + params["bk"]).reshape(B, L, n_heads, dim_k)
    V = (xe @ params["wv"] + params["bv"]).reshape(B, L, n_heads, dim_v)
    scores = jnp.einsum("blhe,bshe->bhls", Q, K) / math.sqrt(d_model)
    scores = jax.nn.softmax(scores, axis=-1)
    attn = jnp.einsum("bhls,bshd->blhd", scores, V).reshape(B, L, -1)
    attn = attn @ params["wo"] + params["bo"]

    def ln(z, g, b):
        mu = jnp.mean(z, -1, keepdims=True)
        var = jnp.mean((z - mu) ** 2, -1, keepdims=True)
        return (z - mu) * jax.lax.rsqrt(var + 1e-5) * g + b

    x1 = ln(xe + attn, params["g1"], params["beta1"])
    y = jnp.maximum(x1 @ params["w1"] + params["b1"], 0.0)
    y = y @ params["w2"] + params["b2"]
    out = ln(x1 + y, params["g2"], params["beta2"])
    out = out @ params["wp"] + params["bp"]
    return jnp.swapaxes(out, 0, 1)


if __name__ == "__main__":
    # Module hyper-parameters (small, consistent with the forward pass).
    d_in, d_model = 4, 32
    dim_k, dim_v, n_heads = 8, 8, 4
    dim_fc = 64
    N_SPATIAL, T_BATCH = 16, 8              # input x: (N_SPATIAL, T_BATCH, d_in)

    key = jax.random.PRNGKey(0)
    keys = jax.random.split(key, 32)
    s = 0.1

    def rnd(i, shape):
        return (s * jax.random.normal(keys[i], shape)).astype(jnp.float32)

    params = {
        "we": rnd(0, (d_in, d_model)),            "be": rnd(1, (1, d_model)),
        "wq": rnd(2, (d_model, n_heads * dim_k)), "bq": rnd(3, (1, n_heads * dim_k)),
        "wk": rnd(4, (d_model, n_heads * dim_k)), "bk": rnd(5, (1, n_heads * dim_k)),
        "wv": rnd(6, (d_model, n_heads * dim_v)), "bv": rnd(7, (1, n_heads * dim_v)),
        "wo": rnd(8, (n_heads * dim_v, d_model)), "bo": rnd(9, (1, d_model)),
        "g1": jnp.ones((1, d_model), jnp.float32),
        "beta1": jnp.zeros((1, d_model), jnp.float32),
        # conv1/conv2 have kernel_size=1: weights stored pre-transposed for x @ W.
        "w1": rnd(10, (d_model, dim_fc)),         "b1": rnd(11, (1, dim_fc)),
        "w2": rnd(12, (dim_fc, d_model)),         "b2": rnd(13, (1, d_model)),
        "g2": jnp.ones((1, d_model), jnp.float32),
        "beta2": jnp.zeros((1, d_model), jnp.float32),
        "wp": rnd(14, (d_model, d_in)),           "bp": rnd(15, (1, d_in)),
    }

    x = jax.random.normal(keys[20], (N_SPATIAL, T_BATCH, d_in), dtype=jnp.float32)

    # One-time packing (outside the forward path).
    wstack, vec = pack_params(params, n_heads=n_heads, dim_k=dim_k, dim_v=dim_v,
                              d_model=d_model, d_in=d_in, dim_fc=dim_fc)

    out = spatial_tsfm_forward(x, wstack, vec, n_heads=n_heads, dim_k=dim_k,
                               dim_v=dim_v, d_model=d_model, d_in=d_in,
                               dim_fc=dim_fc)
    out = jax.block_until_ready(out)

    ref = spatial_tsfm_reference(x, params, n_heads=n_heads, dim_k=dim_k,
                                 dim_v=dim_v, d_model=d_model)
    assert out.shape == (N_SPATIAL, T_BATCH, d_in)
    assert jnp.max(jnp.abs(out - ref)) < 1e-4

    print("KERNEL_OK")
</pallas_src>

<mosaic_0001>
module attributes {stable_mosaic.version = 11 : i64} {
  func.func @_spatial_tsfm_kernel(%arg0: i32, %arg1: memref<128x4xf32, #tpu.memory_space<vmem>>, %arg2: memref<6x64x96xf32, #tpu.memory_space<vmem>>, %arg3: memref<10x128xf32, #tpu.memory_space<vmem>>, %arg4: memref<128x4xf32, #tpu.memory_space<vmem>>) attributes {dimension_semantics = [#tpu.dimension_semantics<arbitrary>], iteration_bounds = array<i64: 1>, scalar_prefetch = 0 : i64, scratch_operands = 0 : i64, tpu.core_type = #tpu.core_type<tc>, window_params = [{pipeline_mode = #tpu.pipeline_mode<synchronous>, transform_indices = @transform_0, window_bounds = array<i64: 128, 4>}, {pipeline_mode = #tpu.pipeline_mode<synchronous>, transform_indices = @transform_1, window_bounds = array<i64: 6, 64, 96>}, {pipeline_mode = #tpu.pipeline_mode<synchronous>, transform_indices = @transform_2, window_bounds = array<i64: 10, 128>}, {pipeline_mode = #tpu.pipeline_mode<synchronous>, transform_indices = @transform_3, window_bounds = array<i64: 128, 4>}]} {
    %c0 = arith.constant 0 : index
    %c0_0 = arith.constant 0 : index
    %0 = vector.load %arg3[%c0, %c0_0] : memref<10x128xf32, #tpu.memory_space<vmem>>, vector<10x128xf32>
    %1 = vector.extract_strided_slice %0 {offsets = [0, 0], sizes = [1, 32], strides = [1, 1]} : vector<10x128xf32> to vector<1x32xf32>
    %2 = vector.extract_strided_slice %0 {offsets = [1, 0], sizes = [1, 96], strides = [1, 1]} : vector<10x128xf32> to vector<1x96xf32>
    %3 = vector.extract_strided_slice %0 {offsets = [2, 0], sizes = [1, 32], strides = [1, 1]} : vector<10x128xf32> to vector<1x32xf32>
    %4 = vector.extract_strided_slice %0 {offsets = [3, 0], sizes = [1, 32], strides = [1, 1]} : vector<10x128xf32> to vector<1x32xf32>
    %5 = vector.extract_strided_slice %0 {offsets = [4, 0], sizes = [1, 32], strides = [1, 1]} : vector<10x128xf32> to vector<1x32xf32>
    %6 = vector.extract_strided_slice %0 {offsets = [5, 0], sizes = [1, 64], strides = [1, 1]} : vector<10x128xf32> to vector<1x64xf32>
    %7 = vector.extract_strided_slice %0 {offsets = [6, 0], sizes = [1, 32], strides = [1, 1]} : vector<10x128xf32> to vector<1x32xf32>
    %8 = vector.extract_strided_slice %0 {offsets = [7, 0], sizes = [1, 32], strides = [1, 1]} : vector<10x128xf32> to vector<1x32xf32>
    %9 = vector.extract_strided_slice %0 {offsets = [8, 0], sizes = [1, 32], strides = [1, 1]} : vector<10x128xf32> to vector<1x32xf32>
    %10 = vector.extract_strided_slice %0 {offsets = [9, 0], sizes = [1, 4], strides = [1, 1]} : vector<10x128xf32> to vector<1x4xf32>
    %c0_1 = arith.constant 0 : index
    %c0_2 = arith.constant 0 : index
    %c0_3 = arith.constant 0 : index
    %11 = vector.load %arg2[%c0_1, %c0_2, %c0_3] : memref<6x64x96xf32, #tpu.memory_space<vmem>>, vector<1x4x32xf32>
    %12 = vector.shape_cast %11 : vector<1x4x32xf32> to vector<4x32xf32>
    %c1 = arith.constant 1 : index
    %c0_4 = arith.constant 0 : index
    %c0_5 = arith.constant 0 : index
    %13 = vector.load %arg2[%c1, %c0_4, %c0_5] : memref<6x64x96xf32, #tpu.memory_space<vmem>>, vector<1x32x96xf32>
    %14 = vector.shape_cast %13 : vector<1x32x96xf32> to vector<32x96xf32>
    %c2 = arith.constant 2 : index
    %c0_6 = arith.constant 0 : index
    %c0_7 = arith.constant 0 : index
    %15 = vector.load %arg2[%c2, %c0_6, %c0_7] : memref<6x64x96xf32, #tpu.memory_space<vmem>>, vector<1x32x32xf32>
    %16 = vector.shape_cast %15 : vector<1x32x32xf32> to vector<32x32xf32>
    %c3 = arith.constant 3 : index
    %c0_8 = arith.constant 0 : index
    %c0_9 = arith.constant 0 : index
    %17 = vector.load %arg2[%c3, %c0_8, %c0_9] : memref<6x64x96xf32, #tpu.memory_space<vmem>>, vector<1x32x64xf32>
    %18 = vector.shape_cast %17 : vector<1x32x64xf32> to vector<32x64xf32>
    %c4 = arith.constant 4 : index
    %c0_10 = arith.constant 0 : index
    %c0_11 = arith.constant 0 : index
    %19 = vector.load %arg2[%c4, %c0_10, %c0_11] : memref<6x64x96xf32, #tpu.memory_space<vmem>>, vector<1x64x32xf32>
    %20 = vector.shape_cast %19 : vector<1x64x32xf32> to vector<64x32xf32>
    %c5 = arith.constant 5 : index
    %c0_12 = arith.constant 0 : index
    %c0_13 = arith.constant 0 : index
    %21 = vector.load %arg2[%c5, %c0_12, %c0_13] : memref<6x64x96xf32, #tpu.memory_space<vmem>>, vector<1x32x4xf32>
    %22 = vector.shape_cast %21 : vector<1x32x4xf32> to vector<32x4xf32>
    %c0_14 = arith.constant 0 : index
    %c0_15 = arith.constant 0 : index
    %23 = vector.load %arg1[%c0_14, %c0_15] : memref<128x4xf32, #tpu.memory_space<vmem>>, vector<128x4xf32>
    %cst = arith.constant dense<0.000000e+00> : vector<128x32xf32>
    %24 = tpu.matmul %23, %12, %cst {dimension_numbers = #tpu.dot_dimension_numbers<[1], [0], [0], [1], [0, 0, 1, 1], [], []>} : vector<128x4xf32>, vector<4x32xf32>, vector<128x32xf32> -> vector<128x32xf32>
    %25 = vector.broadcast %1 : vector<1x32xf32> to vector<128x32xf32>
    %26 = arith.addf %24, %25 : vector<128x32xf32>
    %cst_16 = arith.constant dense<0.000000e+00> : vector<128x96xf32>
    %27 = tpu.matmul %26, %14, %cst_16 {dimension_numbers = #tpu.dot_dimension_numbers<[1], [0], [0], [1], [0, 0, 1, 1], [], []>} : vector<128x32xf32>, vector<32x96xf32>, vector<128x96xf32> -> vector<128x96xf32>
    %28 = vector.broadcast %2 : vector<1x96xf32> to vector<128x96xf32>
    %29 = arith.addf %27, %28 : vector<128x96xf32>
    %30 = vector.extract_strided_slice %29 {offsets = [0, 0], sizes = [128, 32], strides = [1, 1]} : vector<128x96xf32> to vector<128x32xf32>
    %31 = vector.extract_strided_slice %29 {offsets = [0, 32], sizes = [128, 32], strides = [1, 1]} : vector<128x96xf32> to vector<128x32xf32>
    %32 = vector.extract_strided_slice %29 {offsets = [0, 64], sizes = [128, 32], strides = [1, 1]} : vector<128x96xf32> to vector<128x32xf32>
    %33 = tpu.iota {dimensions = array<i32: 0>} : vector<128x128xi32>
    %34 = tpu.iota {dimensions = array<i32: 1>} : vector<128x128xi32>
    %c7_i32 = arith.constant 7 : i32
    %35 = vector.broadcast %c7_i32 : i32 to vector<128x128xi32>
    %36 = arith.andi %33, %35 : vector<128x128xi32>
    %c7_i32_17 = arith.constant 7 : i32
    %37 = vector.broadcast %c7_i32_17 : i32 to vector<128x128xi32>
    %38 = arith.andi %34, %37 : vector<128x128xi32>
    %39 = arith.cmpi eq, %36, %38 : vector<128x128xi32>
    %cst_18 = arith.constant 0.000000e+00 : f32
    %cst_19 = arith.constant -1.000000e+30 : f32
    %40 = vector.broadcast %cst_18 : f32 to vector<128x128xf32>
    %41 = vector.broadcast %cst_19 : f32 to vector<128x128xf32>
    %42 = arith.select %39, %40, %41 : vector<128x128xi1>, vector<128x128xf32>
    %43 = vector.extract_strided_slice %30 {offsets = [0, 0], sizes = [128, 8], strides = [1, 1]} : vector<128x32xf32> to vector<128x8xf32>
    %44 = vector.extract_strided_slice %31 {offsets = [0, 0], sizes = [128, 8], strides = [1, 1]} : vector<128x32xf32> to vector<128x8xf32>
    %45 = vector.extract_strided_slice %32 {offsets = [0, 0], sizes = [128, 8], strides = [1, 1]} : vector<128x32xf32> to vector<128x8xf32>
    %cst_20 = arith.constant dense<0.000000e+00> : vector<128x128xf32>
    %46 = tpu.matmul %43, %44, %cst_20 {dimension_numbers = #tpu.dot_dimension_numbers<[1], [1], [0], [0], [0, 0, 1, 0], [], []>} : vector<128x8xf32>, vector<128x8xf32>, vector<128x128xf32> -> vector<128x128xf32>
    %cst_21 = arith.constant 0.176776692 : f32
    %47 = vector.broadcast %cst_21 : f32 to vector<128x128xf32>
    %48 = arith.mulf %46, %47 : vector<128x128xf32>
    %49 = arith.addf %48, %42 : vector<128x128xf32>
    %cst_22 = arith.constant dense<0xFF800000> : vector<128xf32>
    %50 = vector.multi_reduction <maximumf>, %49, %cst_22 [1] : vector<128x128xf32> to vector<128xf32>
    %51 = vector.shape_cast %50 : vector<128xf32> to vector<128x1xf32>
    %52 = vector.broadcast %51 : vector<128x1xf32> to vector<128x128xf32>
    %53 = arith.subf %49, %52 : vector<128x128xf32>
    %54 = math.exp %53 : vector<128x128xf32>
    %cst_23 = arith.constant dense<0.000000e+00> : vector<128xf32>
    %55 = vector.multi_reduction <add>, %54, %cst_23 [1] : vector<128x128xf32> to vector<128xf32>
    %56 = vector.shape_cast %55 : vector<128xf32> to vector<128x1xf32>
    %57 = tpu.reciprocal %56 : vector<128x1xf32> -> vector<128x1xf32>
    %cst_24 = arith.constant dense<0.000000e+00> : vector<128x8xf32>
    %58 = tpu.matmul %54, %45, %cst_24 {dimension_numbers = #tpu.dot_dimension_numbers<[1], [0], [0], [1], [0, 0, 1, 1], [], []>} : vector<128x128xf32>, vector<128x8xf32>, vector<128x8xf32> -> vector<128x8xf32>
    %59 = vector.broadcast %57 : vector<128x1xf32> to vector<128x8xf32>
    %60 = arith.mulf %58, %59 : vector<128x8xf32>
    %61 = vector.extract_strided_slice %16 {offsets = [0, 0], sizes = [8, 32], strides = [1, 1]} : vector<32x32xf32> to vector<8x32xf32>
    %cst_25 = arith.constant dense<0.000000e+00> : vector<128x32xf32>
    %62 = tpu.matmul %60, %61, %cst_25 {dimension_numbers = #tpu.dot_dimension_numbers<[1], [0], [0], [1], [0, 0, 1, 1], [], []>} : vector<128x8xf32>, vector<8x32xf32>, vector<128x32xf32> -> vector<128x32xf32>
    %63 = vector.extract_strided_slice %30 {offsets = [0, 8], sizes = [128, 8], strides = [1, 1]} : vector<128x32xf32> to vector<128x8xf32>
    %64 = vector.extract_strided_slice %31 {offsets = [0, 8], sizes = [128, 8], strides = [1, 1]} : vector<128x32xf32> to vector<128x8xf32>
    %65 = vector.extract_strided_slice %32 {offsets = [0, 8], sizes = [128, 8], strides = [1, 1]} : vector<128x32xf32> to vector<128x8xf32>
    %cst_26 = arith.constant dense<0.000000e+00> : vector<128x128xf32>
    %66 = tpu.matmul %63, %64, %cst_26 {dimension_numbers = #tpu.dot_dimension_numbers<[1], [1], [0], [0], [0, 0, 1, 0], [], []>} : vector<128x8xf32>, vector<128x8xf32>, vector<128x128xf32> -> vector<128x128xf32>
    %cst_27 = arith.constant 0.176776692 : f32
    %67 = vector.broadcast %cst_27 : f32 to vector<128x128xf32>
    %68 = arith.mulf %66, %67 : vector<128x128xf32>
    %69 = arith.addf %68, %42 : vector<128x128xf32>
    %cst_28 = arith.constant dense<0xFF800000> : vector<128xf32>
    %70 = vector.multi_reduction <maximumf>, %69, %cst_28 [1] : vector<128x128xf32> to vector<128xf32>
    %71 = vector.shape_cast %70 : vector<128xf32> to vector<128x1xf32>
    %72 = vector.broadcast %71 : vector<128x1xf32> to vector<128x128xf32>
    %73 = arith.subf %69, %72 : vector<128x128xf32>
    %74 = math.exp %73 : vector<128x128xf32>
    %cst_29 = arith.constant dense<0.000000e+00> : vector<128xf32>
    %75 = vector.multi_reduction <add>, %74, %cst_29 [1] : vector<128x128xf32> to vector<128xf32>
    %76 = vector.shape_cast %75 : vector<128xf32> to vector<128x1xf32>
    %77 = tpu.reciprocal %76 : vector<128x1xf32> -> vector<128x1xf32>
    %cst_30 = arith.constant dense<0.000000e+00> : vector<128x8xf32>
    %78 = tpu.matmul %74, %65, %cst_30 {dimension_numbers = #tpu.dot_dimension_numbers<[1], [0], [0], [1], [0, 0, 1, 1], [], []>} : vector<128x128xf32>, vector<128x8xf32>, vector<128x8xf32> -> vector<128x8xf32>
    %79 = vector.broadcast %77 : vector<128x1xf32> to vector<128x8xf32>
    %80 = arith.mulf %78, %79 : vector<128x8xf32>
    %81 = vector.extract_strided_slice %16 {offsets = [8, 0], sizes = [8, 32], strides = [1, 1]} : vector<32x32xf32> to vector<8x32xf32>
    %cst_31 = arith.constant dense<0.000000e+00> : vector<128x32xf32>
    %82 = tpu.matmul %80, %81, %cst_31 {dimension_numbers = #tpu.dot_dimension_numbers<[1], [0], [0], [1], [0, 0, 1, 1], [], []>} : vector<128x8xf32>, vector<8x32xf32>, vector<128x32xf32> -> vector<128x32xf32>
    %83 = arith.addf %62, %82 : vector<128x32xf32>
    %84 = vector.extract_strided_slice %30 {offsets = [0, 16], sizes = [128, 8], strides = [1, 1]} : vector<128x32xf32> to vector<128x8xf32>
    %85 = vector.extract_strided_slice %31 {offsets = [0, 16], sizes = [128, 8], strides = [1, 1]} : vector<128x32xf32> to vector<128x8xf32>
    %86 = vector.extract_strided_slice %32 {offsets = [0, 16], sizes = [128, 8], strides = [1, 1]} : vector<128x32xf32> to vector<128x8xf32>
    %cst_32 = arith.constant dense<0.000000e+00> : vector<128x128xf32>
    %87 = tpu.matmul %84, %85, %cst_32 {dimension_numbers = #tpu.dot_dimension_numbers<[1], [1], [0], [0], [0, 0, 1, 0], [], []>} : vector<128x8xf32>, vector<128x8xf32>, vector<128x128xf32> -> vector<128x128xf32>
    %cst_33 = arith.constant 0.176776692 : f32
    %88 = vector.broadcast %cst_33 : f32 to vector<128x128xf32>
    %89 = arith.mulf %87, %88 : vector<128x128xf32>
    %90 = arith.addf %89, %42 : vector<128x128xf32>
    %cst_34 = arith.constant dense<0xFF800000> : vector<128xf32>
    %91 = vector.multi_reduction <maximumf>, %90, %cst_34 [1] : vector<128x128xf32> to vector<128xf32>
    %92 = vector.shape_cast %91 : vector<128xf32> to vector<128x1xf32>
    %93 = vector.broadcast %92 : vector<128x1xf32> to vector<128x128xf32>
    %94 = arith.subf %90, %93 : vector<128x128xf32>
    %95 = math.exp %94 : vector<128x128xf32>
    %cst_35 = arith.constant dense<0.000000e+00> : vector<128xf32>
    %96 = vector.multi_reduction <add>, %95, %cst_35 [1] : vector<128x128xf32> to vector<128xf32>
    %97 = vector.shape_cast %96 : vector<128xf32> to vector<128x1xf32>
    %98 = tpu.reciprocal %97 : vector<128x1xf32> -> vector<128x1xf32>
    %cst_36 = arith.constant dense<0.000000e+00> : vector<128x8xf32>
    %99 = tpu.matmul %95, %86, %cst_36 {dimension_numbers = #tpu.dot_dimension_numbers<[1], [0], [0], [1], [0, 0, 1, 1], [], []>} : vector<128x128xf32>, vector<128x8xf32>, vector<128x8xf32> -> vector<128x8xf32>
    %100 = vector.broadcast %98 : vector<128x1xf32> to vector<128x8xf32>
    %101 = arith.mulf %99, %100 : vector<128x8xf32>
    %102 = vector.extract_strided_slice %16 {offsets = [16, 0], sizes = [8, 32], strides = [1, 1]} : vector<32x32xf32> to vector<8x32xf32>
    %cst_37 = arith.constant dense<0.000000e+00> : vector<128x32xf32>
    %103 = tpu.matmul %101, %102, %cst_37 {dimension_numbers = #tpu.dot_dimension_numbers<[1], [0], [0], [1], [0, 0, 1, 1], [], []>} : vector<128x8xf32>, vector<8x32xf32>, vector<128x32xf32> -> vector<128x32xf32>
    %104 = arith.addf %83, %103 : vector<128x32xf32>
    %105 = vector.extract_strided_slice %30 {offsets = [0, 24], sizes = [128, 8], strides = [1, 1]} : vector<128x32xf32> to vector<128x8xf32>
    %106 = vector.extract_strided_slice %31 {offsets = [0, 24], sizes = [128, 8], strides = [1, 1]} : vector<128x32xf32> to vector<128x8xf32>
    %107 = vector.extract_strided_slice %32 {offsets = [0, 24], sizes = [128, 8], strides = [1, 1]} : vector<128x32xf32> to vector<128x8xf32>
    %cst_38 = arith.constant dense<0.000000e+00> : vector<128x128xf32>
    %108 = tpu.matmul %105, %106, %cst_38 {dimension_numbers = #tpu.dot_dimension_numbers<[1], [1], [0], [0], [0, 0, 1, 0], [], []>} : vector<128x8xf32>, vector<128x8xf32>, vector<128x128xf32> -> vector<128x128xf32>
    %cst_39 = arith.constant 0.176776692 : f32
    %109 = vector.broadcast %cst_39 : f32 to vector<128x128xf32>
    %110 = arith.mulf %108, %109 : vector<128x128xf32>
    %111 = arith.addf %110, %42 : vector<128x128xf32>
    %cst_40 = arith.constant dense<0xFF800000> : vector<128xf32>
    %112 = vector.multi_reduction <maximumf>, %111, %cst_40 [1] : vector<128x128xf32> to vector<128xf32>
    %113 = vector.shape_cast %112 : vector<128xf32> to vector<128x1xf32>
    %114 = vector.broadcast %113 : vector<128x1xf32> to vector<128x128xf32>
    %115 = arith.subf %111, %114 : vector<128x128xf32>
    %116 = math.exp %115 : vector<128x128xf32>
    %cst_41 = arith.constant dense<0.000000e+00> : vector<128xf32>
    %117 = vector.multi_reduction <add>, %116, %cst_41 [1] : vector<128x128xf32> to vector<128xf32>
    %118 = vector.shape_cast %117 : vector<128xf32> to vector<128x1xf32>
    %119 = tpu.reciprocal %118 : vector<128x1xf32> -> vector<128x1xf32>
    %cst_42 = arith.constant dense<0.000000e+00> : vector<128x8xf32>
    %120 = tpu.matmul %116, %107, %cst_42 {dimension_numbers = #tpu.dot_dimension_numbers<[1], [0], [0], [1], [0, 0, 1, 1], [], []>} : vector<128x128xf32>, vector<128x8xf32>, vector<128x8xf32> -> vector<128x8xf32>
    %121 = vector.broadcast %119 : vector<128x1xf32> to vector<128x8xf32>
    %122 = arith.mulf %120, %121 : vector<128x8xf32>
    %123 = vector.extract_strided_slice %16 {offsets = [24, 0], sizes = [8, 32], strides = [1, 1]} : vector<32x32xf32> to vector<8x32xf32>
    %cst_43 = arith.constant dense<0.000000e+00> : vector<128x32xf32>
    %124 = tpu.matmul %122, %123, %cst_43 {dimension_numbers = #tpu.dot_dimension_numbers<[1], [0], [0], [1], [0, 0, 1, 1], [], []>} : vector<128x8xf32>, vector<8x32xf32>, vector<128x32xf32> -> vector<128x32xf32>
    %125 = arith.addf %104, %124 : vector<128x32xf32>
    %126 = vector.broadcast %3 : vector<1x32xf32> to vector<128x32xf32>
    %127 = arith.addf %125, %126 : vector<128x32xf32>
    %128 = arith.addf %26, %127 : vector<128x32xf32>
    %cst_44 = arith.constant dense<0.000000e+00> : vector<128xf32>
    %129 = vector.multi_reduction <add>, %128, %cst_44 [1] : vector<128x32xf32> to vector<128xf32>
    %130 = vector.shape_cast %129 : vector<128xf32> to vector<128x1xf32>
    %cst_45 = arith.constant 3.200000e+01 : f32
    %131 = vector.broadcast %cst_45 : f32 to vector<128x1xf32>
    %132 = arith.divf %130, %131 : vector<128x1xf32>
    %133 = vector.broadcast %132 : vector<128x1xf32> to vector<128x32xf32>
    %134 = arith.subf %128, %133 : vector<128x32xf32>
    %135 = vector.broadcast %132 : vector<128x1xf32> to vector<128x32xf32>
    %136 = arith.subf %128, %135 : vector<128x32xf32>
    %137 = arith.mulf %134, %136 : vector<128x32xf32>
    %cst_46 = arith.constant dense<0.000000e+00> : vector<128xf32>
    %138 = vector.multi_reduction <add>, %137, %cst_46 [1] : vector<128x32xf32> to vector<128xf32>
    %139 = vector.shape_cast %138 : vector<128xf32> to vector<128x1xf32>
    %cst_47 = arith.constant 3.200000e+01 : f32
    %140 = vector.broadcast %cst_47 : f32 to vector<128x1xf32>
    %141 = arith.divf %139, %140 : vector<128x1xf32>
    %142 = vector.broadcast %132 : vector<128x1xf32> to vector<128x32xf32>
    %143 = arith.subf %128, %142 : vector<128x32xf32>
    %cst_48 = arith.constant 9.99999974E-6 : f32
    %144 = vector.broadcast %cst_48 : f32 to vector<128x1xf32>
    %145 = arith.addf %141, %144 : vector<128x1xf32>
    %146 = math.rsqrt %145 : vector<128x1xf32>
    %147 = vector.broadcast %146 : vector<128x1xf32> to vector<128x32xf32>
    %148 = arith.mulf %143, %147 : vector<128x32xf32>
    %149 = vector.broadcast %4 : vector<1x32xf32> to vector<128x32xf32>
    %150 = arith.mulf %148, %149 : vector<128x32xf32>
    %151 = vector.broadcast %5 : vector<1x32xf32> to vector<128x32xf32>
    %152 = arith.addf %150, %151 : vector<128x32xf32>
    %cst_49 = arith.constant dense<0.000000e+00> : vector<128x64xf32>
    %153 = tpu.matmul %152, %18, %cst_49 {dimension_numbers = #tpu.dot_dimension_numbers<[1], [0], [0], [1], [0, 0, 1, 1], [], []>} : vector<128x32xf32>, vector<32x64xf32>, vector<128x64xf32> -> vector<128x64xf32>
    %154 = vector.broadcast %6 : vector<1x64xf32> to vector<128x64xf32>
    %155 = arith.addf %153, %154 : vector<128x64xf32>
    %cst_50 = arith.constant 0.000000e+00 : f32
    %156 = vector.broadcast %cst_50 : f32 to vector<128x64xf32>
    %157 = arith.maximumf %155, %156 : vector<128x64xf32>
    %cst_51 = arith.constant dense<0.000000e+00> : vector<128x32xf32>
    %158 = tpu.matmul %157, %20, %cst_51 {dimension_numbers = #tpu.dot_dimension_numbers<[1], [0], [0], [1], [0, 0, 1, 1], [], []>} : vector<128x64xf32>, vector<64x32xf32>, vector<128x32xf32> -> vector<128x32xf32>
    %159 = vector.broadcast %7 : vector<1x32xf32> to vector<128x32xf32>
    %160 = arith.addf %158, %159 : vector<128x32xf32>
    %161 = arith.addf %152, %160 : vector<128x32xf32>
    %cst_52 = arith.constant dense<0.000000e+00> : vector<128xf32>
    %162 = vector.multi_reduction <add>, %161, %cst_52 [1] : vector<128x32xf32> to vector<128xf32>
    %163 = vector.shape_cast %162 : vector<128xf32> to vector<128x1xf32>
    %cst_53 = arith.constant 3.200000e+01 : f32
    %164 = vector.broadcast %cst_53 : f32 to vector<128x1xf32>
    %165 = arith.divf %163, %164 : vector<128x1xf32>
    %166 = vector.broadcast %165 : vector<128x1xf32> to vector<128x32xf32>
    %167 = arith.subf %161, %166 : vector<128x32xf32>
    %168 = vector.broadcast %165 : vector<128x1xf32> to vector<128x32xf32>
    %169 = arith.subf %161, %168 : vector<128x32xf32>
    %170 = arith.mulf %167, %169 : vector<128x32xf32>
    %cst_54 = arith.constant dense<0.000000e+00> : vector<128xf32>
    %171 = vector.multi_reduction <add>, %170, %cst_54 [1] : vector<128x32xf32> to vector<128xf32>
    %172 = vector.shape_cast %171 : vector<128xf32> to vector<128x1xf32>
    %cst_55 = arith.constant 3.200000e+01 : f32
    %173 = vector.broadcast %cst_55 : f32 to vector<128x1xf32>
    %174 = arith.divf %172, %173 : vector<128x1xf32>
    %175 = vector.broadcast %165 : vector<128x1xf32> to vector<128x32xf32>
    %176 = arith.subf %161, %175 : vector<128x32xf32>
    %cst_56 = arith.constant 9.99999974E-6 : f32
    %177 = vector.broadcast %cst_56 : f32 to vector<128x1xf32>
    %178 = arith.addf %174, %177 : vector<128x1xf32>
    %179 = math.rsqrt %178 : vector<128x1xf32>
    %180 = vector.broadcast %179 : vector<128x1xf32> to vector<128x32xf32>
    %181 = arith.mulf %176, %180 : vector<128x32xf32>
    %182 = vector.broadcast %8 : vector<1x32xf32> to vector<128x32xf32>
    %183 = arith.mulf %181, %182 : vector<128x32xf32>
    %184 = vector.broadcast %9 : vector<1x32xf32> to vector<128x32xf32>
    %185 = arith.addf %183, %184 : vector<128x32xf32>
    %cst_57 = arith.constant dense<0.000000e+00> : vector<128x4xf32>
    %186 = tpu.matmul %185, %22, %cst_57 {dimension_numbers = #tpu.dot_dimension_numbers<[1], [0], [0], [1], [0, 0, 1, 1], [], []>} : vector<128x32xf32>, vector<32x4xf32>, vector<128x4xf32> -> vector<128x4xf32>
    %187 = vector.broadcast %10 : vector<1x4xf32> to vector<128x4xf32>
    %188 = arith.addf %186, %187 : vector<128x4xf32>
    %c0_58 = arith.constant 0 : index
    %c0_59 = arith.constant 0 : index
    %189 = vector.load %arg4[%c0_58, %c0_59] : memref<128x4xf32, #tpu.memory_space<vmem>>, vector<128x4xf32>
    tpu.vector_store %arg4[%c0_58, %c0_59], %188 {strides = array<i32>} : memref<128x4xf32, #tpu.memory_space<vmem>>, vector<128x4xf32>,
    return
  }
  func.func @transform_0(%arg0: i32) -> (i32, i32) {
    %c0_i32 = arith.constant 0 : i32
    %c0_i32_0 = arith.constant 0 : i32
    %c0_i32_1 = arith.constant 0 : i32
    return %c0_i32, %c0_i32_0 : i32, i32
  }
  func.func @transform_1(%arg0: i32) -> (i32, i32, i32) {
    %c0_i32 = arith.constant 0 : i32
    %c0_i32_0 = arith.constant 0 : i32
    %c0_i32_1 = arith.constant 0 : i32
    %c0_i32_2 = arith.constant 0 : i32
    return %c0_i32, %c0_i32_0, %c0_i32_1 : i32, i32, i32
  }
  func.func @transform_2(%arg0: i32) -> (i32, i32) {
    %c0_i32 = arith.constant 0 : i32
    %c0_i32_0 = arith.constant 0 : i32
    %c0_i32_1 = arith.constant 0 : i32
    return %c0_i32, %c0_i32_0 : i32, i32
  }
  func.func @transform_3(%arg0: i32) -> (i32, i32) {
    %c0_i32 = arith.constant 0 : i32
    %c0_i32_0 = arith.constant 0 : i32
    %c0_i32_1 = arith.constant 0 : i32
    return %c0_i32, %c0_i32_0 : i32, i32
  }
}

</mosaic_0001>

<bundles_post_ra>
// kernel: spatial_tsfm_forward.1
= control target key start
LH: loop header
LB: loop body
LE: loop exit
PB: predicated region body
PF: predicated region fallthrough
CT: control target
= control target key end

     0   :  { %8 = vsyncpa [#allocation3], 0  ;;  %s7596_s12 = smov [#allocation2]   ;;  %s9945_s0 = inlined_call_operand.vmem [shape: f32[128,4], index: 0, kind: input, shape index: {}]   ;;  %s9946_s1 = inlined_call_operand.hbm [shape: f32[6,64,96], index: 1, kind: input, shape index: {}]   ;;  %s9947_s2 = inlined_call_operand.vmem [shape: f32[10,128], index: 2, kind: input, shape index: {}]   ;;  %s9948_s3 = inlined_call_operand.vmem [shape: f32[128,4], index: 3, kind: output, shape index: {}]  }
   0x1   :  { %s16_s13 = sshll.u32 %s7596_s12, 4  ;;  %s7572_s16 = scalar_lea.hbm %s9946_s1, 6144  ;;  %s17_s13 = int_to_ptr.vmem [resolvable:$true] %s16_s13 }
   0x2   :  { %p7573_p0 = scmp.ne.s32.totalorder %s9946_s1, %s7572_s16  ;;  %p7576_p1 = scmp.lt.u32.totalorder %s7572_s16, %s9946_s1 }
   0x4   :  { %p7578_p2 = pnand %p7576_p1, %p7573_p0 }
   0x6   :  { %7581 = shalt.err (!%p7578_p2)
}
   0x7   :  { %s7582_s21 = scalar_lea.vmem %s17_s13, 6144  ;;  %p7587_p4 = scmp.lt.s32.totalorder %s17_s13, %s17_s13 }
   0x8   :  { %p7583_p3 = scmp.ne.s32.totalorder %s17_s13, %s7582_s21  ;;  %p7588_p5 = scmp.lt.s32.totalorder %s7582_s21, %s7582_s21 }
   0xa   :  { %p7589_p6 = por %p7588_p5, %p7587_p4 }
   0xc   :  { %p7590_p7 = pnand %p7589_p6, %p7583_p3 }
   0xe   :  { %7593 = shalt.err (!%p7590_p7)
}
   0xf   :  { %s7597_s22 = smov 128   ;;  %s7598_s23 = smov 8  }
  0x10   :  { %22 = dma.hbm_to_vmem [thread:$0]  %s9946_s1, 6144, %s17_s13, [#allocation3], %s7597_s22, %s7597_s22, %s7598_s23  }
  0x11   :  { %7594 = dma.done.wait [#allocation3], 6144  }
  0x12   :  { %7595 = vsyncadd [#allocation3], 4294961152  ;;  %vm129_vm0 = vcmask 1043456   ;;  %vm80_vm1 = vcmask 31744   ;;  %v30_v0 = vld [vmem:[#allocation2] sm:$0xf]  ;;  %v76_v23 = vlaneseq }
  0x13   :  { %v60_v1 = vld [vmem:[%s9945_s0] sm:$0xff]  ;;  %v61_v2 = vld [vmem:[%s9945_s0 + $0x8] sm:$0xff]  ;;  %5777 = vmatprep.subr.msk.mxu0 %vm129_vm0, %v30_v0  ;;  %v62_v3 = vld [vmem:[%s9945_s0 + $0x10] sm:$0xff]  ;;  %vm282_vm2 = vcmask 261120   ;;  %vm592_vm3 = vcmask 64512   ;;  %s7600_s1 = smov 64  }
  0x14   :  { %5779 = vmatprep.mubr.msk.f32.mxu0 %vm80_vm1, %v60_v1  ;;  %5778 = vmatpush3.msk.msra.mxu0 %vm129_vm0, %v30_v0  ;;  %v63_v4 = vld [vmem:[%s9945_s0 + $0x18] sm:$0xff]  ;;  %v64_v5 = vld [vmem:[%s9945_s0 + $0x20] sm:$0xff]  ;;  %v33_v7 = vld [vmem:[#allocation2 + $0x48] sm:$0xff]  ;;  %v7708_v24 = vshrl.u32 %v76_v23, 7  ;;  %s7601_s5 = smov 88   ;;  %s7603_s6 = smov 120  }
  0x15   :  { %5780 = vmatmul.mubr.msk.f32.vlgmr.msra.gmra.mrb[0].mxu0 %vm80_vm1, %v61_v2  ;;  %v32_v6 = vld [vmem:[#allocation2 + $0x40] sm:$0xff]  ;;  %v65_v9 = vld [vmem:[%s9945_s0 + $0x28] sm:$0xff]  ;;  %v66_v10 = vld [vmem:[%s9945_s0 + $0x30] sm:$0xff]  ;;  %s7604_s7 = smov 80   ;;  %s7605_s8 = smov 56  }
  0x16   :  { %5782 = vmatprep.mubr.msk.f32.mxu0 %vm80_vm1, %v62_v3  ;;  %v6491_v8 = vpack.c.bf16 %v33_v7, %v32_v6  ;;  %v67_v11 = vld [vmem:[%s9945_s0 + $0x38] sm:$0xff]  ;;  %v68_v12 = vld [vmem:[%s9945_s0 + $0x40] sm:$0xff]  ;;  %v69_v13 = vld [vmem:[%s9945_s0 + $0x48] sm:$0xff]  ;;  %10001 = vst [vmem:[#allocation5_spill] sm:$0xff] %v7708_v24  ;;  %v9950_v25 = vsub.s32 0, %v7708_v24  ;;  %v9949_v60 = vsub.s32 1, %v7708_v24 }
  0x17   :  { %v70_v14 = vld [vmem:[%s9945_s0 + $0x50] sm:$0xff]  ;;  %v71_v15 = vld [vmem:[%s9945_s0 + $0x58] sm:$0xff]  ;;  %v72_v16 = vld [vmem:[%s9945_s0 + $0x60] sm:$0xff]  ;;  %s7606_s9 = smov 112   ;;  %s7607_s10 = smov 72  }
  0x18   :  { %6492 = vmatprep.subr.bf16.mxu1 %v6491_v8  ;;  %v73_v17 = vld [vmem:[%s9945_s0 + $0x68] sm:$0xff]  ;;  %v74_v18 = vld [vmem:[%s9945_s0 + $0x70] sm:$0xff]  ;;  %v75_v19 = vld [vmem:[%s9945_s0 + $0x78] sm:$0xff]  ;;  %s7599_s0 = smov 96   ;;  %s7608_s11 = smov 104  }
  0x19   :  { %5783 = vmatmul.mubr.msk.f32.gmra.mrb[2].mxu0 %vm80_vm1, %v63_v4  ;;  %6494 = vmatpush3.bf16.msra.mxu1 %v6491_v8  ;;  %v34_v20 = vld [vmem:[#allocation2 + $0x50] sm:$0xff]  ;;  %v35_v21 = vld [vmem:[#allocation2 + $0x58] sm:$0xff]  ;;  %v28_v26 = vld [vmem:[%s9947_s2] sm:$0xff]  ;;  %s7609_s12 = smov 48   ;;  %s7610_s13 = smov 40  }
  0x1a   :  { %5785 = vmatprep.mubr.msk.f32.mxu0 %vm80_vm1, %v64_v5  ;;  %v6495_v22 = vpack.c.bf16 %v35_v21, %v34_v20  ;;  %v79_v27 = vrot.slane %v28_v26, %v9950_v25  ;;  %v281_v61 = vrot.slane %v28_v26, %v9949_v60  ;;  %vm7885_vm4 = vmpackc.low %vm592_vm3, %vm592_vm3 }
  0x1c   :  { %6496 = vmatprep.subr.bf16.mxu1 %v6495_v22 }
  0x1d   :  { %5786 = vmatmul.mubr.msk.f32.gmra.mrb[4].mxu0 %vm80_vm1, %v65_v9  ;;  %6498 = vmatpush3.bf16.msra.mxu1 %v6495_v22 }
  0x1e   :  { %5788 = vmatprep.mubr.msk.f32.mxu0 %vm80_vm1, %v66_v10 }
  0x21   :  { %5789 = vmatmul.mubr.msk.f32.gmra.mrb[6].mxu0 %vm80_vm1, %v67_v11 }
  0x22   :  { %5791 = vmatprep.mubr.msk.f32.mxu0 %vm80_vm1, %v68_v12 }
  0x25   :  { %5792 = vmatmul.mubr.msk.f32.gmra.mrb[8].mxu0 %vm80_vm1, %v69_v13 }
  0x26   :  { %5794 = vmatprep.mubr.msk.f32.mxu0 %vm80_vm1, %v70_v14 }
  0x29   :  { %5795 = vmatmul.mubr.msk.f32.gmra.mrb[10].mxu0 %vm80_vm1, %v71_v15 }
  0x2a   :  { %5797 = vmatprep.mubr.msk.f32.mxu0 %vm80_vm1, %v72_v16 }
  0x2d   :  { %5798 = vmatmul.mubr.msk.f32.gmra.mrb[12].mxu0 %vm80_vm1, %v73_v17 }
  0x2e   :  { %5800 = vmatprep.mubr.msk.f32.mxu0 %vm80_vm1, %v74_v18 }
  0x31   :  { %5801 = vmatmul.mubr.msk.f32.gmra.mrb[14].mxu0 %vm80_vm1, %v75_v19 }
  0xe8   :  { %v5781_v28 = vpop.f32.mrb[0].mxu0 }
  0xe9   :  { %v199_v29 = vpop.f32.mrb[1].mxu0  ;;  %v7718_v31 = vadd.f32 %v5781_v28, %v79_v27 }
  0xea   :  { %v7716_v30 = vadd.f32 %v199_v29, %v79_v27 }
  0xeb   :  { %10003 = vst [vmem:[#allocation7_spill] sm:$0xff] %v7718_v31 }
  0xec   :  { %10002 = vst [vmem:[#allocation6_spill] sm:$0xff] %v7716_v30  ;;  %v5784_v32 = vpop.f32.mrb[2].mxu0  ;;  %5811 = vmatprep.mubr.msk.f32.mxu1 %vm282_vm2, %v7716_v30  ;;  %v488_v30 = vadd.s32 88, %v7708_v24 }
  0xed   :  { %v7722_v33 = vadd.f32 %v5784_v32, %v79_v27  ;;  %v209_v34 = vpop.f32.mrb[3].mxu0  ;;  %5812 = vmatmul.mubr.msk.f32.vlgmr.msra.gmra.mrb[0].mxu1 %vm282_vm2, %v7718_v31 }
  0xee   :  { %v7726_v35 = vadd.f32 %v209_v34, %v79_v27 }
  0xef   :  { %10004 = vst [vmem:[#allocation8_spill] sm:$0xff] %v7722_v33 }
  0xf0   :  { %10005 = vst [vmem:[#allocation9_spill] sm:$0xff] %v7726_v35  ;;  %v5787_v36 = vpop.f32.mrb[4].mxu0  ;;  %5814 = vmatprep.mubr.msk.f32.mxu1 %vm282_vm2, %v7726_v35  ;;  %v481_v35 = vadd.s32 32, %v7708_v24 }
  0xf1   :  { %v7730_v37 = vadd.f32 %v5787_v36, %v79_v27  ;;  %v219_v38 = vpop.f32.mrb[5].mxu0  ;;  %5815 = vmatmul.mubr.msk.f32.gmra.mrb[2].mxu1 %vm282_vm2, %v7722_v33 }
  0xf2   :  { %v7734_v39 = vadd.f32 %v219_v38, %v79_v27  ;;  %v499_v31 = vand.u32 7, %v481_v35 }
  0xf3   :  { %10006 = vst [vmem:[#allocation10_spill] sm:$0xff] %v7730_v37 }
  0xf4   :  { %10007 = vst [vmem:[#allocation11_spill] sm:$0xff] %v7734_v39  ;;  %v5790_v40 = vpop.f32.mrb[6].mxu0  ;;  %5817 = vmatprep.mubr.msk.f32.mxu1 %vm282_vm2, %v7734_v39  ;;  %v482_v39 = vadd.s32 40, %v7708_v24 }
  0xf5   :  { %v7738_v41 = vadd.f32 %v5790_v40, %v79_v27  ;;  %v229_v42 = vpop.f32.mrb[7].mxu0  ;;  %5818 = vmatmul.mubr.msk.f32.gmra.mrb[4].mxu1 %vm282_vm2, %v7730_v37 }
  0xf6   :  { %v7742_v43 = vadd.f32 %v229_v42, %v79_v27  ;;  %v500_v33 = vand.u32 7, %v482_v39 }
  0xf7   :  { %10008 = vst [vmem:[#allocation12_spill] sm:$0xff] %v7738_v41 }
  0xf8   :  { %10009 = vst [vmem:[#allocation13_spill] sm:$0xff] %v7742_v43  ;;  %v5793_v44 = vpop.f32.mrb[8].mxu0  ;;  %5820 = vmatprep.mubr.msk.f32.mxu1 %vm282_vm2, %v7742_v43  ;;  %v479_v43 = vadd.s32 16, %v7708_v24 }
  0xf9   :  { %v7746_v45 = vadd.f32 %v5793_v44, %v79_v27  ;;  %v239_v46 = vpop.f32.mrb[9].mxu0  ;;  %5821 = vmatmul.mubr.msk.f32.gmra.mrb[6].mxu1 %vm282_vm2, %v7738_v41 }
  0xfa   :  { %v7750_v47 = vadd.f32 %v239_v46, %v79_v27  ;;  %v497_v37 = vand.u32 7, %v479_v43  ;;  %v506_v43 = vand.u32 7, %v488_v30 }
  0xfb   :  { %10010 = vst [vmem:[#allocation14_spill] sm:$0xff] %v7746_v45 }
  0xfc   :  { %10011 = vst [vmem:[#allocation15_spill] sm:$0xff] %v7750_v47  ;;  %v5796_v48 = vpop.f32.mrb[10].mxu0  ;;  %5823 = vmatprep.mubr.msk.f32.mxu1 %vm282_vm2, %v7750_v47 }
  0xfd   :  { %v7754_v49 = vadd.f32 %v5796_v48, %v79_v27  ;;  %v249_v50 = vpop.f32.mrb[11].mxu0  ;;  %5824 = vmatmul.mubr.msk.f32.gmra.mrb[8].mxu1 %vm282_vm2, %v7746_v45  ;;  %v480_v45 = vadd.s32 24, %v7708_v24 }
  0xfe   :  { %v7758_v51 = vadd.f32 %v249_v50, %v79_v27 }
  0xff   :  { %10012 = vst [vmem:[#allocation16_spill] sm:$0xff] %v7754_v49  ;;  %v498_v41 = vand.u32 7, %v480_v45 }
 0x100   :  { %10013 = vst [vmem:[#allocation17_spill] sm:$0xff] %v7758_v51  ;;  %v5799_v52 = vpop.f32.mrb[12].mxu0  ;;  %5826 = vmatprep.mubr.msk.f32.mxu1 %vm282_vm2, %v7758_v51 }
 0x101   :  { %v7762_v53 = vadd.f32 %v5799_v52, %v79_v27  ;;  %v259_v54 = vpop.f32.mrb[13].mxu0  ;;  %5827 = vmatmul.mubr.msk.f32.gmra.mrb[10].mxu1 %vm282_vm2, %v7754_v49 }
 0x102   :  { %v7766_v55 = vadd.f32 %v259_v54, %v79_v27 }
 0x103   :  { %10014 = vst [vmem:[#allocation18_spill] sm:$0xff] %v7762_v53 }
 0x104   :  { %10015 = vst [vmem:[#allocation19_spill] sm:$0xff] %v7766_v55  ;;  %v5802_v56 = vpop.f32.mrb[14].mxu0  ;;  %5829 = vmatprep.mubr.msk.f32.mxu1 %vm282_vm2, %v7766_v55 }
 0x105   :  { %v7770_v57 = vadd.f32 %v5802_v56, %v79_v27  ;;  %v269_v58 = vpop.f32.mrb[15].mxu0  ;;  %5830 = vmatmul.mubr.msk.f32.gmra.mrb[12].mxu1 %vm282_vm2, %v7762_v53 }
 0x106   :  { %v7774_v59 = vadd.f32 %v269_v58, %v79_v27 }
 0x107   :  { %10016 = vst [vmem:[#allocation20_spill] sm:$0xff] %v7770_v57 }
 0x108   :  { %10017 = vst [vmem:[#allocation21_spill] sm:$0xff] %v7774_v59  ;;  %5832 = vmatprep.mubr.msk.f32.mxu1 %vm282_vm2, %v7774_v59 }
 0x109   :  { %5833 = vmatmul.mubr.msk.f32.gmra.mrb[14].mxu1 %vm282_vm2, %v7770_v57 }
 0x1c0   :  { %v5813_v62 = vpop.f32.mrb[0].mxu1 }
 0x1c1   :  { %v7783_v63 = vadd.f32 %v5813_v62, %v281_v61  ;;  %v397_v0 = vpop.f32.mrb[1].mxu1 }
 0x1c2   :  { %v7785_v1 = vadd.f32 %v397_v0, %v281_v61 }
 0x1c4   :  { %5867 = vmatprep.mubr.msk.f32.mxu0 %vm592_vm3, %v7785_v1  ;;  %v5816_v2 = vpop.f32.mrb[2].mxu1  ;;  %v7791_v3 = vpack.i.bf16 %v7783_v63, %v7785_v1 }
 0x1c5   :  { %v7793_v4 = vadd.f32 %v5816_v2, %v281_v61  ;;  %v407_v5 = vpop.f32.mrb[3].mxu1 }
 0x1c6   :  { %10018 = vst [vmem:[#allocation22_spill] sm:$0xff] %v7791_v3  ;;  %v7795_v6 = vadd.f32 %v407_v5, %v281_v61  ;;  %6931 = vrot.lane.b32.xlu0 %v7791_v3, %s7599_s0 }
 0x1c8   :  { %v7801_v7 = vpack.i.bf16 %v7793_v4, %v7795_v6  ;;  %v5819_v8 = vpop.f32.mrb[4].mxu1 }
 0x1c9   :  { %v7803_v9 = vadd.f32 %v5819_v8, %v281_v61  ;;  %v417_v10 = vpop.f32.mrb[5].mxu1 }
 0x1ca   :  { %6936 = vrot.lane.b32.xlu0 %v7801_v7, %s7599_s0  ;;  %v7807_v11 = vadd.f32 %v417_v10, %v281_v61 }
 0x1cc   :  { %v5822_v12 = vpop.f32.mrb[6].mxu1  ;;  %v7811_v13 = vpack.i.bf16 %v7803_v9, %v7807_v11 }
 0x1cd   :  { %v7813_v14 = vadd.f32 %v5822_v12, %v281_v61  ;;  %v427_v15 = vpop.f32.mrb[7].mxu1 }
 0x1ce   :  { %v7815_v16 = vadd.f32 %v427_v15, %v281_v61  ;;  %6941 = vrot.lane.b32.xlu1 %v7811_v13, %s7599_s0 }
 0x1d0   :  { %v5825_v17 = vpop.f32.mrb[8].mxu1  ;;  %v7821_v18 = vpack.i.bf16 %v7813_v14, %v7815_v16 }
 0x1d1   :  { %v7823_v19 = vadd.f32 %v5825_v17, %v281_v61  ;;  %v437_v20 = vpop.f32.mrb[9].mxu1 }
 0x1d2   :  { %v7825_v21 = vadd.f32 %v437_v20, %v281_v61  ;;  %6946 = vrot.lane.b32.xlu1 %v7821_v18, %s7599_s0 }
 0x1d4   :  { %v5828_v22 = vpop.f32.mrb[10].mxu1  ;;  %v7831_v26 = vpack.i.bf16 %v7823_v19, %v7825_v21 }
 0x1d5   :  { %v7833_v27 = vadd.f32 %v5828_v22, %v281_v61  ;;  %v447_v28 = vpop.f32.mrb[11].mxu1 }
 0x1d6   :  { %v7835_v29 = vadd.f32 %v447_v28, %v281_v61  ;;  %6951 = vrot.lane.b32.xlu0 %v7831_v26, %s7599_s0 }
 0x1d8   :  { %10019 = vst [vmem:[#allocation23_spill] sm:$0xff] %v7835_v29  ;;  %v5831_v32 = vpop.f32.mrb[12].mxu1  ;;  %v7841_v34 = vpack.i.bf16 %v7833_v27, %v7835_v29 }
 0x1d9   :  { %v7843_v36 = vadd.f32 %v5831_v32, %v281_v61  ;;  %v457_v38 = vpop.f32.mrb[13].mxu1 }
 0x1da   :  { %10020 = vst [vmem:[#allocation24_spill] sm:$0xff] %v7841_v34  ;;  %v7845_v40 = vadd.f32 %v457_v38, %v281_v61  ;;  %6956 = vrot.lane.b32.xlu1 %v7841_v34, %s7599_s0 }
 0x1db   :  { %10021 = vst [vmem:[#allocation25_spill] sm:$0xff] %v7843_v36 }
 0x1dc   :  { %10022 = vst [vmem:[#allocation26_spill] sm:$0xff] %v7845_v40  ;;  %v5834_v42 = vpop.f32.mrb[14].mxu1  ;;  %v7851_v44 = vpack.i.bf16 %v7843_v36, %v7845_v40 }
 0x1dd   :  { %v7853_v46 = vadd.f32 %v5834_v42, %v281_v61  ;;  %v467_v48 = vpop.f32.mrb[15].mxu1 }
 0x1de   :  { %10023 = vst [vmem:[#allocation27_spill] sm:$0xff] %v7851_v44  ;;  %v7855_v50 = vadd.f32 %v467_v48, %v281_v61  ;;  %6961 = vrot.lane.b32.xlu0 %v7851_v44, %s7599_s0  ;;  %v10027_v61 = vmov 0 }
 0x1df   :  { %10024 = vst [vmem:[#allocation28_spill] sm:$0xff] %v7853_v46  ;;  %v10028_v61 = vsel %vm7885_vm4, 4294967295, %v10027_v61 }
 0x1e0   :  { %10025 = vst [vmem:[#allocation29_spill] sm:$0xff] %v7855_v50  ;;  %v7861_v52 = vpack.i.bf16 %v7853_v46, %v7855_v50  ;;  %10029 = vst [vmem:[#allocation31_spill] sm:$0xff] %v10028_v61  ;;  %v10041_v61 = vmov -1e+30  }
 0x1e2   :  { %10026 = vst [vmem:[#allocation30_spill] sm:$0xff] %v7861_v52  ;;  %6966 = vrot.lane.b32.xlu1 %v7861_v52, %s7599_s0  ;;  %6971 = vrot.lane.b32.xlu0 %v7791_v3, %s7600_s1 }
 0x1e6   :  { %6976 = vrot.lane.b32.xlu1 %v7801_v7, %s7600_s1  ;;  %6981 = vrot.lane.b32.xlu0 %v7811_v13, %s7600_s1 }
 0x1ea   :  { %6991 = vrot.lane.b32.xlu1 %v7831_v26, %s7600_s1  ;;  %6986 = vrot.lane.b32.xlu0 %v7821_v18, %s7600_s1 }
 0x1ee   :  { %6996 = vrot.lane.b32.xlu1 %v7841_v34, %s7600_s1  ;;  %7001 = vrot.lane.b32.xlu0 %v7851_v44, %s7600_s1 }
 0x1f2   :  { %7021 = vrot.lane.b32.xlu1 %v7821_v18, %s7601_s5  ;;  %7006 = vrot.lane.b32.xlu0 %v7791_v3, %s7601_s5 }
 0x1f6   :  { %7011 = vrot.lane.b32.xlu0 %v7801_v7, %s7601_s5  ;;  %7031 = vrot.lane.b32.xlu1 %v7861_v52, %s7600_s1 }
 0x1fa   :  { %7016 = vrot.lane.b32.xlu0 %v7811_v13, %s7601_s5 }
 0x1fe   :  { %7026 = vrot.lane.b32.xlu0 %v7831_v26, %s7601_s5 }
 0x238   :  { %v6932_v54 = vpop.permute.xlu0 %6931 }
 0x239   :  { %v6934_v56 = vunpack.i.h.bf16 %v6932_v54  ;;  %v6933_v58 = vunpack.i.l.bf16 %v6932_v54 }
 0x23b   :  { %v6499_v62 = vpack.c.bf16 %v6934_v56, %v6933_v58 }
 0x23c   :  { %v6937_v0 = vpop.permute.xlu0 %6936 }
 0x23d   :  { %v6939_v2 = vunpack.i.h.bf16 %v6937_v0  ;;  %v6938_v5 = vunpack.i.l.bf16 %v6937_v0  ;;  %6501 = vmatprep.subr.msk.bf16.mxu0 %vm7885_vm4, %v6499_v62 }
 0x23e   :  { %6504 = vmatpush3.bf16.xpose.msk.msra.mxu0 %vm7885_vm4, %v6499_v62 }
 0x23f   :  { %v6505_v8 = vpack.c.bf16 %v6939_v2, %v6938_v5 }
 0x240   :  { %v6942_v10 = vpop.permute.xlu1 %6941 }
 0x241   :  { %6507 = vmatprep.subr.msk.bf16.mxu0 %vm7885_vm4, %v6505_v8  ;;  %v6944_v12 = vunpack.i.h.bf16 %v6942_v10  ;;  %v6943_v15 = vunpack.i.l.bf16 %v6942_v10 }
 0x243   :  { %v6511_v17 = vpack.c.bf16 %v6944_v12, %v6943_v15 }
 0x244   :  { %v6947_v20 = vpop.permute.xlu1 %6946 }
 0x245   :  { %v6949_v22 = vunpack.i.h.bf16 %v6947_v20  ;;  %v6948_v28 = vunpack.i.l.bf16 %v6947_v20 }
 0x246   :  { %6510 = vmatpush3.bf16.xpose.msk.msra.mxu0 %vm7885_vm4, %v6505_v8 }
 0x247   :  { %6513 = vmatprep.subr.msk.bf16.mxu0 %vm7885_vm4, %v6511_v17  ;;  %v6517_v38 = vpack.c.bf16 %v6949_v22, %v6948_v28 }
 0x248   :  { %v6952_v32 = vpop.permute.xlu0 %6951 }
 0x249   :  { %v6954_v48 = vunpack.i.h.bf16 %v6952_v32  ;;  %v6953_v54 = vunpack.i.l.bf16 %v6952_v32 }
 0x24b   :  { %v6523_v58 = vpack.c.bf16 %v6954_v48, %v6953_v54 }
 0x24c   :  { %v6957_v42 = vpop.permute.xlu1 %6956 }
 0x24d   :  { %v6959_v8 = vunpack.i.h.bf16 %v6957_v42  ;;  %v6958_v10 = vunpack.i.l.bf16 %v6957_v42 }
 0x24e   :  { %6516 = vmatpush3.bf16.xpose.msk.msra.mxu0 %vm7885_vm4, %v6511_v17 }
 0x24f   :  { %6519 = vmatprep.subr.msk.bf16.mxu0 %vm7885_vm4, %v6517_v38  ;;  %v6529_v48 = vpack.c.bf16 %v6959_v8, %v6958_v10 }
 0x250   :  { %v6962_v56 = vpop.permute.xlu0 %6961 }
 0x254   :  { %v6967_v62 = vpop.permute.xlu1 %6966  ;;  %v6972_v0 = vpop.permute.xlu0 %6971 }
 0x255   :  { %v6974_v2 = vunpack.i.h.bf16 %v6972_v0  ;;  %v6973_v5 = vunpack.i.l.bf16 %v6972_v0 }
 0x256   :  { %6522 = vmatpush3.bf16.xpose.msk.msra.mxu0 %vm7885_vm4, %v6517_v38 }
 0x257   :  { %v6547_v12 = vpack.c.bf16 %v6974_v2, %v6973_v5  ;;  %6525 = vmatprep.subr.msk.bf16.mxu0 %vm7885_vm4, %v6523_v58  ;;  %v6964_v2 = vunpack.i.h.bf16 %v6962_v56  ;;  %v6963_v5 = vunpack.i.l.bf16 %v6962_v56  ;;  %v6969_v56 = vunpack.i.h.bf16 %v6967_v62 }
 0x258   :  { %v6977_v15 = vpop.permute.xlu1 %6976  ;;  %v6982_v17 = vpop.permute.xlu0 %6981 }
 0x259   :  { %v6979_v20 = vunpack.i.h.bf16 %v6977_v15  ;;  %v6978_v22 = vunpack.i.l.bf16 %v6977_v15  ;;  %v6984_v28 = vunpack.i.h.bf16 %v6982_v17  ;;  %v6983_v32 = vunpack.i.l.bf16 %v6982_v17  ;;  %6548 = vmatprep.subr.bf16.mxu1 %v6547_v12 }
 0x25a   :  { %6550 = vmatpush3.bf16.msra.mxu1 %v6547_v12  ;;  %v6535_v17 = vpack.c.bf16 %v6964_v2, %v6963_v5 }
 0x25b   :  { %v6551_v54 = vpack.c.bf16 %v6979_v20, %v6978_v22  ;;  %v6555_v42 = vpack.c.bf16 %v6984_v28, %v6983_v32 }
 0x25c   :  { %v6992_v0 = vpop.permute.xlu1 %6991  ;;  %v6987_v60 = vpop.permute.xlu0 %6986 }
 0x25d   :  { %v6989_v25 = vunpack.i.h.bf16 %v6987_v60  ;;  %v6988_v38 = vunpack.i.l.bf16 %v6987_v60  ;;  %6552 = vmatprep.subr.bf16.mxu1 %v6551_v54  ;;  %v6994_v12 = vunpack.i.h.bf16 %v6992_v0  ;;  %v6993_v8 = vunpack.i.l.bf16 %v6992_v0 }
 0x25e   :  { %6528 = vmatpush3.bf16.xpose.msk.msra.mxu0 %vm7885_vm4, %v6523_v58  ;;  %6554 = vmatpush3.bf16.msra.mxu1 %v6551_v54  ;;  %v6968_v58 = vunpack.i.l.bf16 %v6967_v62 }
 0x25f   :  { %6556 = vmatprep.subr.bf16.mxu1 %v6555_v42  ;;  %6531 = vmatprep.subr.msk.bf16.mxu0 %vm7885_vm4, %v6529_v48  ;;  %v6559_v10 = vpack.c.bf16 %v6989_v25, %v6988_v38  ;;  %v6563_v28 = vpack.c.bf16 %v6994_v12, %v6993_v8 }
 0x260   :  { %v6997_v15 = vpop.permute.xlu1 %6996  ;;  %v7002_v32 = vpop.permute.xlu0 %7001 }
 0x261   :  { %v6999_v20 = vunpack.i.h.bf16 %v6997_v15  ;;  %v6998_v22 = vunpack.i.l.bf16 %v6997_v15  ;;  %v7004_v54 = vunpack.i.h.bf16 %v7002_v32  ;;  %v7003_v0 = vunpack.i.l.bf16 %v7002_v32 }
 0x262   :  { %6558 = vmatpush3.bf16.msra.mxu1 %v6555_v42  ;;  %v6541_v42 = vpack.c.bf16 %v6969_v56, %v6968_v58  ;;  %v486_v56 = vadd.s32 72, %v7708_v24  ;;  %v485_v58 = vadd.s32 64, %v7708_v24  ;;  %v9955_v32 = vmov -1e+30  }
 0x263   :  { %6560 = vmatprep.subr.bf16.mxu1 %v6559_v10  ;;  %v6567_v38 = vpack.c.bf16 %v6999_v20, %v6998_v22  ;;  %v6571_v15 = vpack.c.bf16 %v7004_v54, %v7003_v0  ;;  %v483_v20 = vadd.s32 48, %v7708_v24 }
 0x264   :  { %v7911_v60 = vpop.permute.xlu1 %7021  ;;  %v7007_v12 = vpop.permute.xlu0 %7006  ;;  %v504_v54 = vand.u32 7, %v486_v56  ;;  %v503_v0 = vand.u32 7, %v485_v58 }
 0x265   :  { %10030 = vst [vmem:[#allocation32_spill] sm:$0xff] %v7911_v60  ;;  %v7008_v8 = vunpack.i.l.bf16 %v7007_v12 }
 0x266   :  { %6534 = vmatpush3.bf16.xpose.msk.msra.mxu0 %vm7885_vm4, %v6529_v48  ;;  %6562 = vmatpush3.bf16.msra.mxu1 %v6559_v10  ;;  %v7009_v48 = vunpack.i.h.bf16 %v7007_v12 }
 0x267   :  { %6564 = vmatprep.subr.bf16.mxu1 %v6563_v28  ;;  %6537 = vmatprep.subr.msk.bf16.mxu0 %vm7885_vm4, %v6535_v17 }
 0x268   :  { %v7032_v25 = vpop.permute.xlu1 %7031  ;;  %v7921_v10 = vpack.c.bf16 %v7009_v48, %v7008_v8  ;;  %v492_v8 = vadd.s32 120, %v7708_v24 }
 0x269   :  { %v7034_v2 = vunpack.i.h.bf16 %v7032_v25  ;;  %v7033_v5 = vunpack.i.l.bf16 %v7032_v25 }
 0x26a   :  { %6566 = vmatpush3.bf16.msra.mxu1 %v6563_v28  ;;  %10031 = vst [vmem:[#allocation33_spill] sm:$0xff] %v7921_v10  ;;  %v501_v28 = vand.u32 7, %v483_v20  ;;  %v491_v20 = vadd.s32 112, %v7708_v24  ;;  %v510_v56 = vand.u32 7, %v492_v8 }
 0x26b   :  { %6568 = vmatprep.subr.bf16.mxu1 %v6567_v38  ;;  %v6575_v62 = vpack.c.bf16 %v7034_v2, %v7033_v5  ;;  %v490_v5 = vadd.s32 104, %v7708_v24 }
 0x26c   :  { %v509_v58 = vand.u32 7, %v491_v20 }
 0x26d   :  { %v508_v12 = vand.u32 7, %v490_v5  ;;  %v495_v5 = vand.u32 7, %v7708_v24 }
 0x26e   :  { %6540 = vmatpush3.bf16.xpose.msk.msra.mxu0 %vm7885_vm4, %v6535_v17  ;;  %6570 = vmatpush3.bf16.msra.mxu1 %v6567_v38  ;;  %v494_v17 = vand.u32 127, %v76_v23  ;;  %v487_v38 = vadd.s32 80, %v7708_v24 }
 0x26f   :  { %6572 = vmatprep.subr.bf16.mxu1 %v6571_v15  ;;  %6543 = vmatprep.subr.msk.bf16.mxu0 %vm7885_vm4, %v6541_v42 }
 0x270   :  { %v7960_v22 = vand.u32 7, %v494_v17  ;;  %v505_v2 = vand.u32 7, %v487_v38  ;;  %v478_v38 = vadd.s32 8, %v7708_v24 }
 0x272   :  { %6574 = vmatpush3.bf16.msra.mxu1 %v6571_v15  ;;  %vm518_vm5 = vcmp.eq.s32.totalorder %v501_v28, %v7960_v22  ;;  %vm521_vm6 = vcmp.eq.s32.totalorder %v504_v54, %v7960_v22  ;;  %vm520_vm7 = vcmp.eq.s32.totalorder %v503_v0, %v7960_v22  ;;  %vm522_vm8 = vcmp.eq.s32.totalorder %v505_v2, %v7960_v22 }
 0x273   :  { %6576 = vmatprep.subr.bf16.mxu1 %v6575_v62  ;;  %v7966_v25 = vsel %vm518_vm5, 0.0, %v9955_v32  ;;  %v7970_v23 = vsel %vm521_vm6, 0.0, %v9955_v32  ;;  %v489_v15 = vadd.s32 96, %v7708_v24  ;;  %vm525_vm9 = vcmp.eq.s32.totalorder %v508_v12, %v7960_v22 }
 0x274   :  { %10032 = vst [vmem:[#allocation34_spill] sm:$0xff] %v7970_v23  ;;  %v7986_v17 = vsel %vm525_vm9, 0.0, %v9955_v32  ;;  %vm527_vm11 = vcmp.eq.s32.totalorder %v510_v56, %v7960_v22  ;;  %vm526_vm12 = vcmp.eq.s32.totalorder %v509_v58, %v7960_v22  ;;  %v496_v2 = vand.u32 7, %v478_v38 }
 0x275   :  { %v507_v48 = vand.u32 7, %v489_v15  ;;  %10035 = vst [vmem:[#allocation37_spill] sm:$0xff] %v7986_v17  ;;  %v7996_v54 = vsel %vm527_vm11, 0.0, %v9955_v32  ;;  %v7999_v0 = vsel %vm526_vm12, 0.0, %v9955_v32  ;;  %vm512_vm14 = vcmp.eq.s32.totalorder %v495_v5, %v7960_v22 }
 0x276   :  { %6546 = vmatpush3.bf16.xpose.msk.msra.mxu0 %vm7885_vm4, %v6541_v42  ;;  %6578 = vmatpush3.bf16.msra.mxu1 %v6575_v62  ;;  %v7975_v42 = vsel %vm520_vm7, 0.0, %v9955_v32  ;;  %v7981_v62 = vsel %vm522_vm8, 0.0, %v9955_v32  ;;  %10037 = vst [vmem:[#allocation39_spill] sm:$0xff] %v7996_v54  ;;  %10038 = vst [vmem:[#allocation40_spill] sm:$0xff] %v7999_v0  ;;  %vm513_vm13 = vcmp.eq.s32.totalorder %v496_v2, %v7960_v22  ;;  %v8009_v20 = vsel %vm512_vm14, 0.0, %v9955_v32 }
 0x277   :  { %6581 = vmatprep.subr.msk.bf16.mxu1 %vm7885_vm4, %v7921_v10  ;;  %10033 = vst [vmem:[#allocation35_spill] sm:$0xff] %v7975_v42  ;;  %10034 = vst [vmem:[#allocation36_spill] sm:$0xff] %v7981_v62  ;;  %vm524_vm10 = vcmp.eq.s32.totalorder %v507_v48, %v7960_v22  ;;  %v8006_v12 = vsel %vm513_vm13, 0.0, %v9955_v32  ;;  %vm515_vm15 = vcmp.eq.s32.totalorder %v498_v41, %v7960_v22 }
 0x278   :  { %v7991_v28 = vsel %vm524_vm10, 0.0, %v9955_v32  ;;  %10039 = vst [vmem:[#allocation41_spill] sm:$0xff] %v8006_v12  ;;  %10040 = vst [vmem:[#allocation42_spill] sm:$0xff] %v8009_v20  ;;  %vm514_vm0 = vcmp.eq.s32.totalorder %v497_v37, %v7960_v22  ;;  %v8032_v10 = vsel %vm515_vm15, 0.0, %v10041_v61  ;;  %vm517_vm5 = vcmp.eq.s32.totalorder %v500_v33, %v7960_v22 }
 0x279   :  { %10036 = vst [vmem:[#allocation38_spill] sm:$0xff] %v7991_v28  ;;  %v8035_v45 = vsel %vm514_vm0, 0.0, %v10041_v61  ;;  %vm516_vm6 = vcmp.eq.s32.totalorder %v499_v31, %v7960_v22  ;;  %vm523_vm7 = vcmp.eq.s32.totalorder %v506_v43, %v7960_v22 }
 0x27d   :  { %5868 = vmatmul.mubr.msk.f32.vlgmr.msra.gmra.mrb[16].mxu0 %vm592_vm3, %v7783_v63 }
 0x27e   :  { %5870 = vmatprep.mubr.msk.f32.mxu0 %vm592_vm3, %v7795_v6 }
 0x281   :  { %5871 = vmatmul.mubr.msk.f32.gmra.mrb[18].mxu0 %vm592_vm3, %v7793_v4 }
 0x282   :  { %5873 = vmatprep.mubr.msk.f32.mxu0 %vm592_vm3, %v7807_v11 }
 0x285   :  { %5874 = vmatmul.mubr.msk.f32.gmra.mrb[20].mxu0 %vm592_vm3, %v7803_v9 }
 0x286   :  { %5876 = vmatprep.mubr.msk.f32.mxu0 %vm592_vm3, %v7815_v16 }
 0x289   :  { %5877 = vmatmul.mubr.msk.f32.gmra.mrb[22].mxu0 %vm592_vm3, %v7813_v14 }
 0x28a   :  { %5879 = vmatprep.mubr.msk.f32.mxu0 %vm592_vm3, %v7825_v21 }
 0x28d   :  { %5880 = vmatmul.mubr.msk.f32.gmra.mrb[24].mxu0 %vm592_vm3, %v7823_v19 }
 0x28e   :  { %5882 = vmatprep.mubr.msk.f32.mxu0 %vm592_vm3, %v7835_v29 }
 0x291   :  { %5883 = vmatmul.mubr.msk.f32.gmra.mrb[26].mxu0 %vm592_vm3, %v7833_v27 }
 0x292   :  { %5885 = vmatprep.mubr.msk.f32.mxu0 %vm592_vm3, %v7845_v40 }
 0x295   :  { %5886 = vmatmul.mubr.msk.f32.gmra.mrb[28].mxu0 %vm592_vm3, %v7843_v36 }
 0x296   :  { %5888 = vmatprep.mubr.msk.f32.mxu0 %vm592_vm3, %v7855_v50 }
 0x299   :  { %5889 = vmatmul.mubr.msk.f32.gmra.mrb[30].mxu0 %vm592_vm3, %v7853_v46 }
 0x350   :  { %v5869_v15 = vpop.f32.mrb[16].mxu0 }
 0x351   :  { %v803_v48 = vmul.f32 0.17677669, %v5869_v15  ;;  %v723_v8 = vpop.f32.mrb[17].mxu0 }
 0x352   :  { %v802_v56 = vmul.f32 0.17677669, %v723_v8 }
 0x353   :  { %v8012_v58 = vadd.f32 %v803_v48, %v8006_v12 }
 0x354   :  { %v5872_v38 = vpop.f32.mrb[18].mxu0  ;;  %v8015_v59 = vadd.f32 %v802_v56, %v8009_v20  ;;  %v484_v20 = vadd.s32 56, %v7708_v24  ;;  %v8050_v24 = vsel %vm516_vm6, 0.0, %v10041_v61 }
 0x355   :  { %836 = vmax.xlane.f32.xlu0 %v8012_v58  ;;  %v733_v2 = vpop.f32.mrb[19].mxu0  ;;  %v805_v12 = vmul.f32 0.17677669, %v5872_v38 }
 0x356   :  { %834 = vmax.xlane.f32.xlu1 %v8015_v59  ;;  %v804_v60 = vmul.f32 0.17677669, %v733_v2  ;;  %v502_v39 = vand.u32 7, %v484_v20  ;;  %v8046_v2 = vsel %vm517_vm5, 0.0, %v10041_v61 }
 0x357   :  { %v8040_v37 = vadd.f32 %v805_v12, %v8032_v10 }
 0x358   :  { %v5875_v5 = vpop.f32.mrb[20].mxu0  ;;  %v8043_v38 = vadd.f32 %v804_v60, %v8035_v45  ;;  %vm519_vm8 = vcmp.eq.s32.totalorder %v502_v39, %v7960_v22  ;;  %v8062_v60 = vsel %vm523_vm7, 0.0, %v10041_v61 }
 0x359   :  { %v743_v57 = vpop.f32.mrb[21].mxu0  ;;  %v807_v41 = vmul.f32 0.17677669, %v5875_v5  ;;  %10042 = vst [vmem:[#allocation43_spill] sm:$0xff] %v8062_v60  ;;  %v8066_v12 = vsel %vm519_vm8, 0.0, %v10041_v61 }
 0x35a   :  { %v806_v35 = vmul.f32 0.17677669, %v743_v57 }
 0x35b   :  { %v8056_v31 = vadd.f32 %v807_v41, %v8046_v2 }
 0x35c   :  { %v5878_v15 = vpop.f32.mrb[22].mxu0  ;;  %v8059_v57 = vadd.f32 %v806_v35, %v8050_v24 }
 0x35d   :  { %v753_v55 = vpop.f32.mrb[23].mxu0  ;;  %v809_v33 = vmul.f32 0.17677669, %v5878_v15 }
 0x35e   :  { %v808_v22 = vmul.f32 0.17677669, %v753_v55 }
 0x35f   :  { %v8073_v5 = vadd.f32 %v809_v33, %v8066_v12 }
 0x360   :  { %v5881_v53 = vpop.f32.mrb[24].mxu0  ;;  %v8081_v39 = vadd.f32 %v808_v22, %v7966_v25 }
 0x361   :  { %v763_v32 = vpop.f32.mrb[25].mxu0  ;;  %v811_v61 = vmul.f32 0.17677669, %v5881_v53 }
 0x363   :  { %v8089_v41 = vadd.f32 %v811_v61, %v7970_v23 }
 0x364   :  { %v5884_v51 = vpop.f32.mrb[26].mxu0 }
 0x365   :  { %v773_v8 = vpop.f32.mrb[27].mxu0  ;;  %v813_v30 = vmul.f32 0.17677669, %v5884_v51 }
 0x367   :  { %7036 = vrot.lane.b32.xlu1 %v7841_v34, %s7601_s5  ;;  %v8070_v51 = vadd.f32 %v813_v30, %v8062_v60 }
 0x368   :  { %v5887_v48 = vpop.f32.mrb[28].mxu0 }
 0x369   :  { %v783_v49 = vpop.f32.mrb[29].mxu0  ;;  %v815_v20 = vmul.f32 0.17677669, %v5887_v48  ;;  %v810_v48 = vmul.f32 0.17677669, %v763_v32 }
 0x36a   :  { %v814_v35 = vmul.f32 0.17677669, %v783_v49  ;;  %v7012_v49 = vpop.permute.xlu0 %7011 }
 0x36b   :  { %7041 = vrot.lane.b32.xlu0 %v7851_v44, %s7601_s5  ;;  %v8078_v43 = vadd.f32 %v815_v20, %v7986_v17  ;;  %v8094_v53 = vadd.f32 %v810_v48, %v7975_v42 }
 0x36c   :  { %v5890_v56 = vpop.f32.mrb[30].mxu0  ;;  %v8102_v33 = vadd.f32 %v814_v35, %v7991_v28 }
 0x36d   :  { %v793_v47 = vpop.f32.mrb[31].mxu0  ;;  %v817_v32 = vmul.f32 0.17677669, %v5890_v56 }
 0x36e   :  { %v816_v15 = vmul.f32 0.17677669, %v793_v47  ;;  %v812_v47 = vmul.f32 0.17677669, %v773_v8  ;;  %v7017_v8 = vpop.permute.xlu0 %7016 }
 0x36f   :  { %v8106_v20 = vadd.f32 %v817_v32, %v7996_v54 }
 0x370   :  { %v8086_v55 = vadd.f32 %v816_v15, %v7999_v0  ;;  %v8098_v30 = vadd.f32 %v812_v47, %v7981_v62 }
 0x372   :  { %v7027_v56 = vpop.permute.xlu0 %7026 }
 0x38a   :  { %840 = vmax.xlane.f32.xlu0 %v8040_v37 }
 0x38b   :  { %838 = vmax.xlane.f32.xlu1 %v8043_v38 }
 0x38e   :  { %844 = vmax.xlane.f32.xlu0 %v8056_v31 }
 0x38f   :  { %842 = vmax.xlane.f32.xlu1 %v8059_v57 }
 0x392   :  { %856 = vmax.xlane.f32.xlu0 %v8070_v51 }
 0x393   :  { %848 = vmax.xlane.f32.xlu1 %v8073_v5 }
 0x396   :  { %860 = vmax.xlane.f32.xlu0 %v8078_v43 }
 0x397   :  { %846 = vmax.xlane.f32.xlu1 %v8081_v39 }
 0x39a   :  { %862 = vmax.xlane.f32.xlu0 %v8086_v55 }
 0x39b   :  { %852 = vmax.xlane.f32.xlu1 %v8089_v41 }
 0x39f   :  { %850 = vmax.xlane.f32.xlu1 %v8094_v53 }
 0x3a3   :  { %854 = vmax.xlane.f32.xlu1 %v8098_v30 }
 0x3a7   :  { %858 = vmax.xlane.f32.xlu1 %v8102_v33 }
 0x3ab   :  { %864 = vmax.xlane.f32.xlu1 %v8106_v20 }
 0x3b0   :  { %7046 = vrot.lane.b32.xlu0 %v7861_v52, %s7601_s5 }
 0x3b4   :  { %1171 = vrot.lane.b32.xlu0 %v7785_v1, %s7603_s6 }
 0x3b8   :  { %1175 = vrot.lane.b32.xlu0 %v7795_v6, %s7603_s6 }
 0x3bc   :  { %1173 = vrot.lane.b32.xlu1 %v7783_v63, %s7603_s6  ;;  %1179 = vrot.lane.b32.xlu0 %v7807_v11, %s7603_s6 }
 0x3c0   :  { %1177 = vrot.lane.b32.xlu1 %v7793_v4, %s7603_s6  ;;  %1183 = vrot.lane.b32.xlu0 %v7815_v16, %s7603_s6 }
 0x3c4   :  { %1181 = vrot.lane.b32.xlu1 %v7803_v9, %s7603_s6  ;;  %1187 = vrot.lane.b32.xlu0 %v7825_v21, %s7603_s6 }
 0x3c8   :  { %1185 = vrot.lane.b32.xlu1 %v7813_v14, %s7603_s6  ;;  %1191 = vrot.lane.b32.xlu0 %v7835_v29, %s7603_s6 }
 0x3cc   :  { %1189 = vrot.lane.b32.xlu1 %v7823_v19, %s7603_s6  ;;  %1195 = vrot.lane.b32.xlu0 %v7845_v40, %s7603_s6 }
 0x3d0   :  { %1193 = vrot.lane.b32.xlu1 %v7833_v27, %s7603_s6  ;;  %1199 = vrot.lane.b32.xlu0 %v7855_v50, %s7603_s6 }
 0x3d4   :  { %1197 = vrot.lane.b32.xlu1 %v7843_v36, %s7603_s6  ;;  %7051 = vrot.lane.b32.xlu0 %v7791_v3, %s7604_s7 }
 0x3d8   :  { %1201 = vrot.lane.b32.xlu1 %v7853_v46, %s7603_s6  ;;  %7061 = vrot.lane.b32.xlu0 %v7811_v13, %s7604_s7 }
 0x3dc   :  { %7056 = vrot.lane.b32.xlu1 %v7801_v7, %s7604_s7  ;;  %7071 = vrot.lane.b32.xlu0 %v7831_v26, %s7604_s7 }
 0x3e0   :  { %7066 = vrot.lane.b32.xlu1 %v7821_v18, %s7604_s7  ;;  %7081 = vrot.lane.b32.xlu0 %v7851_v44, %s7604_s7 }
 0x3e2   :  { %v837_v22 = vpop.xlane.xlu0 %836 }
 0x3e3   :  { %v867_v15 = vsub.f32 %v8012_v58, %v837_v22  ;;  %v835_v61 = vpop.xlane.xlu1 %834  ;;  %v7013_v58 = vunpack.i.l.bf16 %v7012_v49 }
 0x3e4   :  { %v866_v48 = vsub.f32 %v8015_v59, %v835_v61  ;;  %7076 = vrot.lane.b32.xlu1 %v7841_v34, %s7604_s7  ;;  %7091 = vrot.lane.b32.xlu0 %v7791_v3, %s7605_s8  ;;  %v7014_v59 = vunpack.i.h.bf16 %v7012_v49  ;;  %v10043_v61 = vld [vmem:[#allocation33_spill] sm:$0xff] }
 0x3e5   :  { %v884_v47 = vmul.f32 1.442695, %v867_v15 }
 0x3e6   :  { %v882_v35 = vmul.f32 1.442695, %v866_v48  ;;  %v6585_v15 = vpack.c.bf16 %v7014_v59, %v7013_v58  ;;  %v7019_v48 = vunpack.i.h.bf16 %v7017_v8 }
 0x3e8   :  { %7250 = vpow2.f32 %v882_v35  ;;  %7086 = vrot.lane.b32.xlu1 %v7861_v52, %s7604_s7  ;;  %7096 = vrot.lane.b32.xlu0 %v7801_v7, %s7605_s8 }
 0x3e9   :  { %7252 = vpow2.f32 %v884_v47  ;;  %v7018_v47 = vunpack.i.l.bf16 %v7017_v8  ;;  %v10045_v8 = vld [vmem:[#allocation32_spill] sm:$0xff] }
 0x3ea   :  { %v7024_v59 = vunpack.i.h.bf16 %v10045_v8  ;;  %v7023_v58 = vunpack.i.l.bf16 %v10045_v8  ;;  %v7037_v8 = vpop.permute.xlu1 %7036 }
 0x3eb   :  { %v6591_v35 = vpack.c.bf16 %v7019_v48, %v7018_v47  ;;  %v7028_v48 = vunpack.i.l.bf16 %v7027_v56 }
 0x3ec   :  { %2199 = vrot.lane.b32.xlu1 %v7785_v1, %s7606_s9  ;;  %7101 = vrot.lane.b32.xlu0 %v7811_v13, %s7605_s8 }
 0x3f0   :  { %7106 = vrot.lane.b32.xlu1 %v7821_v18, %s7605_s8  ;;  %2201 = vrot.lane.b32.xlu0 %v7783_v63, %s7606_s9 }
 0x3f2   :  { %v8149_v32 = vpop.eup %7250 }
 0x3f3   :  { %v8151_v22 = vpop.eup %7252  ;;  %5923 = vmatprep.mubr.f32.mxu1 %v8149_v32 }
 0x3f4   :  { %5924 = vmatmul.mubr.f32.vlgmr.msra.gmra.mrb[16].mxu1 %v8151_v22  ;;  %7111 = vrot.lane.b32.xlu1 %v7831_v26, %s7605_s8 }
 0x3f5   :  { %6584 = vmatpush3.bf16.xpose.msk.msra.mxu1 %vm7885_vm4, %v10043_v61  ;;  %2203 = vrot.lane.b32.xlu0 %v7795_v6, %s7606_s9  ;;  %v6597_v61 = vpack.c.bf16 %v7024_v59, %v7023_v58  ;;  %v7042_v59 = vpop.permute.xlu0 %7041 }
 0x3f6   :  { %6587 = vmatprep.subr.msk.bf16.mxu1 %vm7885_vm4, %v6585_v15 }
 0x3f8   :  { %7116 = vrot.lane.b32.xlu1 %v7841_v34, %s7605_s8 }
 0x3f9   :  { %2205 = vrot.lane.b32.xlu0 %v7793_v4, %s7606_s9 }
 0x3fc   :  { %7121 = vrot.lane.b32.xlu1 %v7851_v44, %s7605_s8 }
 0x3fd   :  { %6590 = vmatpush3.bf16.xpose.msk.msra.mxu1 %vm7885_vm4, %v6585_v15  ;;  %2207 = vrot.lane.b32.xlu0 %v7807_v11, %s7606_s9  ;;  %v7029_v15 = vunpack.i.h.bf16 %v7027_v56  ;;  %v7039_v56 = vunpack.i.h.bf16 %v7037_v8 }
 0x3fe   :  { %6593 = vmatprep.subr.msk.bf16.mxu1 %vm7885_vm4, %v6591_v35 }
 0x3ff   :  { %v6603_v47 = vpack.c.bf16 %v7029_v15, %v7028_v48  ;;  %v7044_v15 = vunpack.i.h.bf16 %v7042_v59  ;;  %v7043_v48 = vunpack.i.l.bf16 %v7042_v59 }
 0x400   :  { %7126 = vrot.lane.b32.xlu1 %v7861_v52, %s7605_s8 }
 0x401   :  { %2209 = vrot.lane.b32.xlu0 %v7803_v9, %s7606_s9 }
 0x404   :  { %2219 = vrot.lane.b32.xlu1 %v7835_v29, %s7606_s9 }
 0x405   :  { %6596 = vmatpush3.bf16.xpose.msk.msra.mxu1 %vm7885_vm4, %v6591_v35  ;;  %2211 = vrot.lane.b32.xlu0 %v7815_v16, %s7606_s9  ;;  %v7038_v35 = vunpack.i.l.bf16 %v7037_v8 }
 0x406   :  { %6599 = vmatprep.subr.msk.bf16.mxu1 %vm7885_vm4, %v6597_v61 }
 0x407   :  { %v6609_v58 = vpack.c.bf16 %v7039_v56, %v7038_v35 }
 0x408   :  { %2221 = vrot.lane.b32.xlu1 %v7833_v27, %s7606_s9 }
 0x409   :  { %2213 = vrot.lane.b32.xlu0 %v7813_v14, %s7606_s9 }
 0x40c   :  { %2223 = vrot.lane.b32.xlu1 %v7845_v40, %s7606_s9 }
 0x40d   :  { %6602 = vmatpush3.bf16.xpose.msk.msra.mxu1 %vm7885_vm4, %v6597_v61  ;;  %2215 = vrot.lane.b32.xlu0 %v7825_v21, %s7606_s9 }
 0x40e   :  { %6605 = vmatprep.subr.msk.bf16.mxu1 %vm7885_vm4, %v6603_v47 }
 0x410   :  { %2225 = vrot.lane.b32.xlu1 %v7843_v36, %s7606_s9 }
 0x411   :  { %2217 = vrot.lane.b32.xlu0 %v7823_v19, %s7606_s9 }
 0x414   :  { %2229 = vrot.lane.b32.xlu1 %v7853_v46, %s7606_s9 }
 0x415   :  { %6608 = vmatpush3.bf16.xpose.msk.msra.mxu1 %vm7885_vm4, %v6603_v47  ;;  %2227 = vrot.lane.b32.xlu0 %v7855_v50, %s7606_s9  ;;  %v6615_v50 = vpack.c.bf16 %v7044_v15, %v7043_v48 }
 0x416   :  { %6611 = vmatprep.subr.msk.bf16.mxu1 %vm7885_vm4, %v6609_v58 }
 0x417   :  { %v841_v61 = vpop.xlane.xlu0 %840 }
 0x418   :  { %v869_v8 = vsub.f32 %v8040_v37, %v841_v61  ;;  %v839_v36 = vpop.xlane.xlu1 %838  ;;  %7131 = vrot.lane.b32.xlu1 %v7791_v3, %s7607_s10 }
 0x419   :  { %v868_v56 = vsub.f32 %v8043_v38, %v839_v36  ;;  %7151 = vrot.lane.b32.xlu0 %v7831_v26, %s7607_s10 }
 0x41a   :  { %v888_v47 = vmul.f32 1.442695, %v869_v8 }
 0x41b   :  { %v886_v35 = vmul.f32 1.442695, %v868_v56  ;;  %v845_v46 = vpop.xlane.xlu0 %844 }
 0x41c   :  { %v871_v40 = vsub.f32 %v8056_v31, %v845_v46  ;;  %v843_v29 = vpop.xlane.xlu1 %842  ;;  %7136 = vrot.lane.b32.xlu1 %v7801_v7, %s7607_s10 }
 0x41d   :  { %7254 = vpow2.f32 %v886_v35  ;;  %6614 = vmatpush3.bf16.xpose.msk.msra.mxu1 %vm7885_vm4, %v6609_v58  ;;  %v870_v37 = vsub.f32 %v8059_v57, %v843_v29  ;;  %7161 = vrot.lane.b32.xlu0 %v7851_v44, %s7607_s10 }
 0x41e   :  { %7256 = vpow2.f32 %v888_v47  ;;  %v892_v36 = vmul.f32 1.442695, %v871_v40  ;;  %6617 = vmatprep.subr.msk.bf16.mxu1 %vm7885_vm4, %v6615_v50 }
 0x41f   :  { %v890_v38 = vmul.f32 1.442695, %v870_v37  ;;  %v857_v46 = vpop.xlane.xlu0 %856 }
 0x420   :  { %v849_v31 = vpop.xlane.xlu1 %848  ;;  %7141 = vrot.lane.b32.xlu1 %v7811_v13, %s7607_s10 }
 0x421   :  { %7258 = vpow2.f32 %v890_v38  ;;  %3050 = vrot.lane.b32.xlu0 %v7785_v1, %s7608_s11  ;;  %v873_v29 = vsub.f32 %v8073_v5, %v849_v31 }
 0x422   :  { %7260 = vpow2.f32 %v892_v36 }
 0x423   :  { %v861_v57 = vpop.xlane.xlu0 %860  ;;  %v896_v58 = vmul.f32 1.442695, %v873_v29 }
 0x424   :  { %v847_v59 = vpop.xlane.xlu1 %846  ;;  %7146 = vrot.lane.b32.xlu1 %v7821_v18, %s7607_s10 }
 0x425   :  { %6620 = vmatpush3.bf16.xpose.msk.msra.mxu1 %vm7885_vm4, %v6615_v50  ;;  %v872_v40 = vsub.f32 %v8081_v39, %v847_v59  ;;  %3054 = vrot.lane.b32.xlu0 %v7795_v6, %s7608_s11 }
 0x427   :  { %v8242_v61 = vpop.eup %7254  ;;  %v894_v1 = vmul.f32 1.442695, %v872_v40  ;;  %v863_v15 = vpop.xlane.xlu0 %862 }
 0x428   :  { %v8244_v48 = vpop.eup %7256  ;;  %5926 = vmatprep.mubr.f32.mxu1 %v8242_v61  ;;  %v853_v5 = vpop.xlane.xlu1 %852  ;;  %7156 = vrot.lane.b32.xlu1 %v7841_v34, %s7607_s10 }
 0x429   :  { %7262 = vpow2.f32 %v894_v1  ;;  %3058 = vrot.lane.b32.xlu0 %v7807_v11, %s7608_s11  ;;  %5927 = vmatmul.mubr.f32.gmra.mrb[18].mxu1 %v8244_v48  ;;  %v875_v6 = vsub.f32 %v8089_v41, %v853_v5  ;;  %v877_v41 = vsub.f32 %v8070_v51, %v857_v46  ;;  %v879_v51 = vsub.f32 %v8078_v43, %v861_v57 }
 0x42a   :  { %7264 = vpow2.f32 %v896_v58 }
 0x42b   :  { %v8253_v50 = vpop.eup %7258  ;;  %v7047_v39 = vpop.permute.xlu0 %7046  ;;  %v900_v37 = vmul.f32 1.442695, %v875_v6  ;;  %v908_v43 = vmul.f32 1.442695, %v879_v51 }
 0x42c   :  { %v8255_v8 = vpop.eup %7260  ;;  %v7049_v56 = vunpack.i.h.bf16 %v7047_v39  ;;  %v7048_v47 = vunpack.i.l.bf16 %v7047_v39  ;;  %5929 = vmatprep.mubr.f32.mxu1 %v8253_v50  ;;  %v851_v35 = vpop.xlane.xlu1 %850  ;;  %7166 = vrot.lane.b32.xlu1 %v7861_v52, %s7607_s10 }
 0x42d   :  { %v874_v11 = vsub.f32 %v8094_v53, %v851_v35  ;;  %3062 = vrot.lane.b32.xlu0 %v7815_v16, %s7608_s11  ;;  %5930 = vmatmul.mubr.f32.gmra.mrb[20].mxu1 %v8255_v8  ;;  %v904_v16 = vmul.f32 1.442695, %v877_v41 }
 0x42e   :  { %v6621_v36 = vpack.c.bf16 %v7049_v56, %v7048_v47 }
 0x42f   :  { %v898_v38 = vmul.f32 1.442695, %v874_v11  ;;  %v1172_v31 = vpop.permute.xlu0 %1171 }
 0x430   :  { %v855_v29 = vpop.xlane.xlu1 %854  ;;  %3052 = vrot.lane.b32.xlu1 %v7783_v63, %s7608_s11  ;;  %6623 = vmatprep.subr.msk.bf16.mxu1 %vm7885_vm4, %v6621_v36  ;;  %v880_v63 = vsub.f32 %v8086_v55, %v863_v15 }
 0x431   :  { %7266 = vpow2.f32 %v898_v38  ;;  %v876_v53 = vsub.f32 %v8098_v30, %v855_v29  ;;  %3066 = vrot.lane.b32.xlu0 %v7825_v21, %s7608_s11  ;;  %6626 = vmatpush3.bf16.xpose.msk.msra.mxu1 %vm7885_vm4, %v6621_v36 }
 0x432   :  { %7268 = vpow2.f32 %v900_v37  ;;  %v910_v57 = vmul.f32 1.442695, %v880_v63 }
 0x433   :  { %v8275_v46 = vpop.eup %7262  ;;  %v902_v59 = vmul.f32 1.442695, %v876_v53  ;;  %v1176_v40 = vpop.permute.xlu0 %1175 }
 0x434   :  { %v8278_v58 = vpop.eup %7264  ;;  %5932 = vmatprep.mubr.f32.mxu1 %v8275_v46  ;;  %v859_v30 = vpop.xlane.xlu1 %858  ;;  %3056 = vrot.lane.b32.xlu1 %v7793_v4, %s7608_s11 }
 0x435   :  { %7270 = vpow2.f32 %v902_v59  ;;  %v878_v21 = vsub.f32 %v8102_v33, %v859_v30  ;;  %5933 = vmatmul.mubr.f32.gmra.mrb[22].mxu1 %v8278_v58 }
 0x436   :  { %7272 = vpow2.f32 %v904_v16 }
 0x437   :  { %v906_v1 = vmul.f32 1.442695, %v878_v21  ;;  %v1180_v55 = vpop.permute.xlu0 %1179 }
 0x438   :  { %3060 = vrot.lane.b32.xlu1 %v7803_v9, %s7608_s11  ;;  %v865_v15 = vpop.xlane.xlu1 %864 }
 0x439   :  { %7274 = vpow2.f32 %v906_v1  ;;  %v881_v5 = vsub.f32 %v8106_v20, %v865_v15 }
 0x43a   :  { %7276 = vpow2.f32 %v908_v43 }
 0x43b   :  { %v8288_v6 = vpop.eup %7266  ;;  %7278 = vpow2.f32 %v910_v57  ;;  %v912_v4 = vmul.f32 1.442695, %v881_v5  ;;  %v1184_v33 = vpop.permute.xlu0 %1183 }
 0x43c   :  { %v8290_v39 = vpop.eup %7268  ;;  %5935 = vmatprep.mubr.f32.mxu1 %v8288_v6  ;;  %3064 = vrot.lane.b32.xlu1 %v7813_v14, %s7608_s11  ;;  %v1174_v56 = vpop.permute.xlu1 %1173 }
 0x43d   :  { %7280 = vpow2.f32 %v912_v4  ;;  %5936 = vmatmul.mubr.f32.gmra.mrb[24].mxu1 %v8290_v39 }
 0x43f   :  { %v8296_v9 = vpop.eup %7270  ;;  %v1188_v20 = vpop.permute.xlu0 %1187 }
 0x440   :  { %v8298_v47 = vpop.eup %7272  ;;  %5938 = vmatprep.mubr.f32.mxu1 %v8296_v9  ;;  %3068 = vrot.lane.b32.xlu1 %v7823_v19, %s7608_s11  ;;  %v1178_v35 = vpop.permute.xlu1 %1177 }
 0x441   :  { %5939 = vmatmul.mubr.f32.gmra.mrb[26].mxu1 %v8298_v47 }
 0x443   :  { %v8304_v11 = vpop.eup %7274  ;;  %v1192_v14 = vpop.permute.xlu0 %1191 }
 0x444   :  { %v8306_v41 = vpop.eup %7276  ;;  %5941 = vmatprep.mubr.f32.mxu1 %v8304_v11  ;;  %v1182_v37 = vpop.permute.xlu1 %1181 }
 0x445   :  { %v8309_v36 = vpop.eup %7278  ;;  %5942 = vmatmul.mubr.f32.gmra.mrb[28].mxu1 %v8306_v41 }
 0x446   :  { %5944 = vmatprep.mubr.f32.mxu1 %v8309_v36 }
 0x447   :  { %v8313_v38 = vpop.eup %7280  ;;  %v1196_v19 = vpop.permute.xlu0 %1195 }
 0x448   :  { %v1186_v29 = vpop.permute.xlu1 %1185 }
 0x449   :  { %5945 = vmatmul.mubr.f32.gmra.mrb[30].mxu1 %v8313_v38 }
 0x44a   :  { %5979 = vmatprep.mubr.msk.f32.mxu1 %vm592_vm3, %v1172_v31 }
 0x44b   :  { %v1200_v53 = vpop.permute.xlu0 %1199 }
 0x44c   :  { %v1190_v16 = vpop.permute.xlu1 %1189 }
 0x44d   :  { %5980 = vmatmul.mubr.msk.f32.vlgmr.msra.gmra.mrb[32].mxu1 %vm592_vm3, %v1174_v56 }
 0x44e   :  { %5982 = vmatprep.mubr.msk.f32.mxu1 %vm592_vm3, %v1176_v40 }
 0x44f   :  { %v7052_v51 = vpop.permute.xlu0 %7051 }
 0x450   :  { %916 = vadd.xlane.f32.xlu0 %v8151_v22  ;;  %v7054_v63 = vunpack.i.h.bf16 %v7052_v51  ;;  %v7053_v59 = vunpack.i.l.bf16 %v7052_v51  ;;  %v1194_v30 = vpop.permute.xlu1 %1193 }
 0x451   :  { %5983 = vmatmul.mubr.msk.f32.gmra.mrb[34].mxu1 %vm592_vm3, %v1178_v35 }
 0x452   :  { %v6659_v21 = vpack.c.bf16 %v7054_v63, %v7053_v59  ;;  %5985 = vmatprep.mubr.msk.f32.mxu1 %vm592_vm3, %v1180_v55 }
 0x453   :  { %v7062_v43 = vpop.permute.xlu0 %7061 }
 0x454   :  { %914 = vadd.xlane.f32.xlu0 %v8149_v32  ;;  %v1198_v31 = vpop.permute.xlu1 %1197  ;;  %6661 = vmatprep.subr.msk.bf16.mxu1 %vm7885_vm4, %v6659_v21  ;;  %v7064_v1 = vunpack.i.h.bf16 %v7062_v43  ;;  %v7063_v55 = vunpack.i.l.bf16 %v7062_v43 }
 0x455   :  { %5986 = vmatmul.mubr.msk.f32.gmra.mrb[36].mxu1 %vm592_vm3, %v1182_v37 }
 0x456   :  { %6664 = vmatpush3.bf16.xpose.msk.msra.mxu1 %vm7885_vm4, %v6659_v21  ;;  %5988 = vmatprep.mubr.msk.f32.mxu1 %vm592_vm3, %v1184_v33  ;;  %v6671_v35 = vpack.c.bf16 %v7064_v1, %v7063_v55 }
 0x457   :  { %v8329_v22 = vpop.permute.xlu0 %7071 }
 0x458   :  { %918 = vadd.xlane.f32.xlu0 %v8242_v61  ;;  %v1202_v40 = vpop.permute.xlu1 %1201 }
 0x459   :  { %5989 = vmatmul.mubr.msk.f32.gmra.mrb[38].mxu1 %vm592_vm3, %v1186_v29 }
 0x45a   :  { %5991 = vmatprep.mubr.msk.f32.mxu1 %vm592_vm3, %v1188_v20 }
 0x45b   :  { %v8334_v32 = vpop.permute.xlu0 %7081 }
 0x45c   :  { %922 = vadd.xlane.f32.xlu0 %v8253_v50  ;;  %v7057_v57 = vpop.permute.xlu1 %7056 }
 0x45d   :  { %v7059_v15 = vunpack.i.h.bf16 %v7057_v57  ;;  %v7058_v5 = vunpack.i.l.bf16 %v7057_v57  ;;  %5992 = vmatmul.mubr.msk.f32.gmra.mrb[40].mxu1 %vm592_vm3, %v1190_v16 }
 0x45e   :  { %5994 = vmatprep.mubr.msk.f32.mxu1 %vm592_vm3, %v1192_v14 }
 0x45f   :  { %v6665_v4 = vpack.c.bf16 %v7059_v15, %v7058_v5  ;;  %v7092_v61 = vpop.permute.xlu0 %7091 }
 0x460   :  { %926 = vadd.xlane.f32.xlu0 %v8275_v46  ;;  %v7094_v33 = vunpack.i.h.bf16 %v7092_v61  ;;  %v7093_v56 = vunpack.i.l.bf16 %v7092_v61  ;;  %v7067_v20 = vpop.permute.xlu1 %7066 }
 0x461   :  { %5995 = vmatmul.mubr.msk.f32.gmra.mrb[42].mxu1 %vm592_vm3, %v1194_v30  ;;  %6667 = vmatprep.subr.msk.bf16.mxu1 %vm7885_vm4, %v6665_v4  ;;  %v7069_v16 = vunpack.i.h.bf16 %v7067_v20  ;;  %v7068_v51 = vunpack.i.l.bf16 %v7067_v20 }
 0x462   :  { %5997 = vmatprep.mubr.msk.f32.mxu1 %vm592_vm3, %v1196_v19  ;;  %6670 = vmatpush3.bf16.xpose.msk.msra.mxu1 %vm7885_vm4, %v6665_v4  ;;  %v6627_v50 = vpack.c.bf16 %v7094_v33, %v7093_v56 }
 0x463   :  { %v7097_v14 = vpop.permute.xlu0 %7096  ;;  %6673 = vmatprep.subr.msk.bf16.mxu1 %vm7885_vm4, %v6671_v35 }
 0x464   :  { %930 = vadd.xlane.f32.xlu0 %v8288_v6  ;;  %v7099_v46 = vunpack.i.h.bf16 %v7097_v14  ;;  %v7098_v37 = vunpack.i.l.bf16 %v7097_v14  ;;  %920 = vadd.xlane.f32.xlu1 %v8244_v48  ;;  %v7077_v29 = vpop.permute.xlu1 %7076  ;;  %v6677_v48 = vpack.c.bf16 %v7069_v16, %v7068_v51 }
 0x465   :  { %6628 = vmatprep.subr.bf16.mxu0 %v6627_v50  ;;  %5998 = vmatmul.mubr.msk.f32.gmra.mrb[44].mxu1 %vm592_vm3, %v1198_v31  ;;  %v7079_v15 = vunpack.i.h.bf16 %v7077_v29  ;;  %v7078_v5 = vunpack.i.l.bf16 %v7077_v29 }
 0x466   :  { %6630 = vmatpush3.bf16.msra.mxu0 %v6627_v50  ;;  %6000 = vmatprep.mubr.msk.f32.mxu1 %vm592_vm3, %v1200_v53  ;;  %v6631_v19 = vpack.c.bf16 %v7099_v46, %v7098_v37  ;;  %v7073_v53 = vunpack.i.l.bf16 %v8329_v22  ;;  %v7084_v46 = vunpack.i.h.bf16 %v8334_v32  ;;  %v7083_v37 = vunpack.i.l.bf16 %v8334_v32 }
 0x467   :  { %v7102_v63 = vpop.permute.xlu0 %7101  ;;  %v6689_v56 = vpack.c.bf16 %v7079_v15, %v7078_v5 }
 0x468   :  { %934 = vadd.xlane.f32.xlu0 %v8296_v9  ;;  %v7104_v59 = vunpack.i.h.bf16 %v7102_v63  ;;  %v7103_v30 = vunpack.i.l.bf16 %v7102_v63  ;;  %924 = vadd.xlane.f32.xlu1 %v8255_v8  ;;  %v8354_v6 = vpop.permute.xlu1 %7086  ;;  %v7074_v8 = vunpack.i.h.bf16 %v8329_v22 }
 0x469   :  { %6632 = vmatprep.subr.bf16.mxu0 %v6631_v19  ;;  %6001 = vmatmul.mubr.msk.f32.gmra.mrb[46].mxu1 %vm592_vm3, %v1202_v40 }
 0x46a   :  { %6634 = vmatpush3.bf16.msra.mxu0 %v6631_v19  ;;  %6676 = vmatpush3.bf16.xpose.msk.msra.mxu1 %vm7885_vm4, %v6671_v35  ;;  %v6635_v21 = vpack.c.bf16 %v7104_v59, %v7103_v30  ;;  %v6683_v40 = vpack.c.bf16 %v7074_v8, %v7073_v53  ;;  %v6695_v59 = vpack.c.bf16 %v7084_v46, %v7083_v37  ;;  %v7088_v8 = vunpack.i.l.bf16 %v8354_v6 }
 0x46b   :  { %6679 = vmatprep.subr.msk.bf16.mxu1 %vm7885_vm4, %v6677_v48  ;;  %v8364_v43 = vpop.permute.xlu0 %2201 }
 0x46c   :  { %928 = vadd.xlane.f32.xlu1 %v8278_v58  ;;  %v2200_v9 = vpop.permute.xlu1 %2199  ;;  %6636 = vmatprep.subr.bf16.mxu0 %v6635_v21 }
 0x46d   :  { %6143 = vmatprep.mubr.msk.f32.mxu1 %vm592_vm3, %v2200_v9  ;;  %v7089_v9 = vunpack.i.h.bf16 %v8354_v6 }
 0x46e   :  { %6638 = vmatpush3.bf16.msra.mxu0 %v6635_v21 }
 0x46f   :  { %v2204_v58 = vpop.permute.xlu0 %2203 }
 0x470   :  { %932 = vadd.xlane.f32.xlu1 %v8290_v39  ;;  %v7107_v31 = vpop.permute.xlu1 %7106 }
 0x471   :  { %v7109_v57 = vunpack.i.h.bf16 %v7107_v31  ;;  %v7108_v1 = vunpack.i.l.bf16 %v7107_v31 }
 0x472   :  { %6682 = vmatpush3.bf16.xpose.msk.msra.mxu1 %vm7885_vm4, %v6677_v48 }
 0x473   :  { %6685 = vmatprep.subr.msk.bf16.mxu1 %vm7885_vm4, %v6683_v40  ;;  %v6639_v55 = vpack.c.bf16 %v7109_v57, %v7108_v1  ;;  %v2206_v20 = vpop.permute.xlu0 %2205 }
 0x474   :  { %936 = vadd.xlane.f32.xlu1 %v8298_v47  ;;  %v7112_v22 = vpop.permute.xlu1 %7111 }
 0x475   :  { %v7114_v4 = vunpack.i.h.bf16 %v7112_v22  ;;  %v7113_v61 = vunpack.i.l.bf16 %v7112_v22  ;;  %6640 = vmatprep.subr.bf16.mxu0 %v6639_v55 }
 0x476   :  { %6642 = vmatpush3.bf16.msra.mxu0 %v6639_v55 }
 0x477   :  { %v6643_v39 = vpack.c.bf16 %v7114_v4, %v7113_v61  ;;  %v2208_v51 = vpop.permute.xlu0 %2207 }
 0x478   :  { %v7117_v33 = vpop.permute.xlu1 %7116 }
 0x479   :  { %v7119_v35 = vunpack.i.h.bf16 %v7117_v33  ;;  %v7118_v50 = vunpack.i.l.bf16 %v7117_v33  ;;  %6644 = vmatprep.subr.bf16.mxu0 %v6643_v39 }
 0x47a   :  { %6646 = vmatpush3.bf16.msra.mxu0 %v6643_v39  ;;  %6688 = vmatpush3.bf16.xpose.msk.msra.mxu1 %vm7885_vm4, %v6683_v40  ;;  %v6701_v40 = vpack.c.bf16 %v7089_v9, %v7088_v8 }
 0x47b   :  { %6691 = vmatprep.subr.msk.bf16.mxu1 %vm7885_vm4, %v6689_v56  ;;  %v6647_v47 = vpack.c.bf16 %v7119_v35, %v7118_v50  ;;  %v2210_v53 = vpop.permute.xlu0 %2209 }
 0x47c   :  { %v7122_v14 = vpop.permute.xlu1 %7121 }
 0x47d   :  { %v7124_v29 = vunpack.i.h.bf16 %v7122_v14  ;;  %v7123_v16 = vunpack.i.l.bf16 %v7122_v14  ;;  %6648 = vmatprep.subr.bf16.mxu0 %v6647_v47 }
 0x47e   :  { %6650 = vmatpush3.bf16.msra.mxu0 %v6647_v47 }
 0x47f   :  { %v6651_v19 = vpack.c.bf16 %v7124_v29, %v7123_v16  ;;  %v2212_v57 = vpop.permute.xlu0 %2211 }
 0x480   :  { %v7127_v63 = vpop.permute.xlu1 %7126 }
 0x481   :  { %v7129_v30 = vunpack.i.h.bf16 %v7127_v63  ;;  %v7128_v48 = vunpack.i.l.bf16 %v7127_v63  ;;  %6652 = vmatprep.subr.bf16.mxu0 %v6651_v19 }
 0x482   :  { %6654 = vmatpush3.bf16.msra.mxu0 %v6651_v19  ;;  %6694 = vmatpush3.bf16.xpose.msk.msra.mxu1 %vm7885_vm4, %v6689_v56 }
 0x483   :  { %6697 = vmatprep.subr.msk.bf16.mxu1 %vm7885_vm4, %v6695_v59  ;;  %v6655_v21 = vpack.c.bf16 %v7129_v30, %v7128_v48  ;;  %v2214_v22 = vpop.permute.xlu0 %2213 }
 0x484   :  { %v2220_v32 = vpop.permute.xlu1 %2219 }
 0x485   :  { %6656 = vmatprep.subr.bf16.mxu0 %v6655_v21 }
 0x486   :  { %6658 = vmatpush3.bf16.msra.mxu0 %v6655_v21 }
 0x487   :  { %v2216_v6 = vpop.permute.xlu0 %2215 }
 0x488   :  { %v2222_v31 = vpop.permute.xlu1 %2221 }
 0x48a   :  { %6700 = vmatpush3.bf16.xpose.msk.msra.mxu1 %vm7885_vm4, %v6695_v59 }
 0x48b   :  { %6703 = vmatprep.subr.msk.bf16.mxu1 %vm7885_vm4, %v6701_v40  ;;  %v2218_v56 = vpop.permute.xlu0 %2217 }
 0x48c   :  { %v2224_v1 = vpop.permute.xlu1 %2223 }
 0x490   :  { %v2226_v55 = vpop.permute.xlu1 %2225 }
 0x492   :  { %6706 = vmatpush3.bf16.xpose.msk.msra.mxu1 %vm7885_vm4, %v6701_v40 }
 0x494   :  { %v2230_v15 = vpop.permute.xlu1 %2229 }
 0x498   :  { %v7132_v5 = vpop.permute.xlu1 %7131 }
 0x499   :  { %v7134_v4 = vunpack.i.h.bf16 %v7132_v5  ;;  %v7133_v61 = vunpack.i.l.bf16 %v7132_v5  ;;  %6144 = vmatmul.mubr.msk.f32.vlgmr.msra.gmra.mrb[48].mxu1 %vm592_vm3, %v8364_v43 }
 0x49a   :  { %6146 = vmatprep.mubr.msk.f32.mxu1 %vm592_vm3, %v2204_v58  ;;  %v2228_v58 = vpop.permute.xlu0 %2227 }
 0x49b   :  { %v6739_v39 = vpack.c.bf16 %v7134_v4, %v7133_v61 }
 0x49c   :  { %v7137_v33 = vpop.permute.xlu1 %7136 }
 0x49d   :  { %v7139_v35 = vunpack.i.h.bf16 %v7137_v33  ;;  %v7138_v50 = vunpack.i.l.bf16 %v7137_v33  ;;  %6147 = vmatmul.mubr.msk.f32.gmra.mrb[50].mxu1 %vm592_vm3, %v2206_v20  ;;  %6741 = vmatprep.subr.msk.bf16.mxu1 %vm7885_vm4, %v6739_v39 }
 0x49e   :  { %6149 = vmatprep.mubr.msk.f32.mxu1 %vm592_vm3, %v2208_v51  ;;  %6744 = vmatpush3.bf16.xpose.msk.msra.mxu1 %vm7885_vm4, %v6739_v39  ;;  %v7152_v29 = vpop.permute.xlu0 %7151 }
 0x49f   :  { %v6745_v47 = vpack.c.bf16 %v7139_v35, %v7138_v50  ;;  %v7154_v59 = vunpack.i.h.bf16 %v7152_v29  ;;  %v7153_v30 = vunpack.i.l.bf16 %v7152_v29 }
 0x4a0   :  { %v7142_v14 = vpop.permute.xlu1 %7141 }
 0x4a1   :  { %v7144_v43 = vunpack.i.h.bf16 %v7142_v14  ;;  %v7143_v46 = vunpack.i.l.bf16 %v7142_v14  ;;  %6150 = vmatmul.mubr.msk.f32.gmra.mrb[52].mxu1 %vm592_vm3, %v2210_v53  ;;  %6747 = vmatprep.subr.msk.bf16.mxu1 %vm7885_vm4, %v6745_v47  ;;  %v6763_v48 = vpack.c.bf16 %v7154_v59, %v7153_v30 }
 0x4a2   :  { %6152 = vmatprep.mubr.msk.f32.mxu1 %vm592_vm3, %v2212_v57  ;;  %v7162_v63 = vpop.permute.xlu0 %7161 }
 0x4a3   :  { %v6751_v20 = vpack.c.bf16 %v7144_v43, %v7143_v46  ;;  %v7163_v40 = vunpack.i.l.bf16 %v7162_v63 }
 0x4a4   :  { %v7147_v37 = vpop.permute.xlu1 %7146 }
 0x4a5   :  { %6153 = vmatmul.mubr.msk.f32.gmra.mrb[54].mxu1 %vm592_vm3, %v2214_v22  ;;  %v7149_v16 = vunpack.i.h.bf16 %v7147_v37  ;;  %v7148_v51 = vunpack.i.l.bf16 %v7147_v37 }
 0x4a6   :  { %6155 = vmatprep.mubr.msk.f32.mxu1 %vm592_vm3, %v2216_v6  ;;  %6750 = vmatpush3.bf16.xpose.msk.msra.mxu1 %vm7885_vm4, %v6745_v47  ;;  %v3051_v21 = vpop.permute.xlu0 %3050 }
 0x4a7   :  { %6753 = vmatprep.subr.msk.bf16.mxu1 %vm7885_vm4, %v6751_v20  ;;  %v6757_v19 = vpack.c.bf16 %v7149_v16, %v7148_v51 }
 0x4a9   :  { %6156 = vmatmul.mubr.msk.f32.gmra.mrb[56].mxu1 %vm592_vm3, %v2218_v56 }
 0x4aa   :  { %6158 = vmatprep.mubr.msk.f32.mxu1 %vm592_vm3, %v2220_v32  ;;  %v7157_v32 = vpop.permute.xlu1 %7156  ;;  %v3055_v61 = vpop.permute.xlu0 %3054 }
 0x4ab   :  { %v7159_v9 = vunpack.i.h.bf16 %v7157_v32  ;;  %v7158_v8 = vunpack.i.l.bf16 %v7157_v32 }
 0x4ad   :  { %6159 = vmatmul.mubr.msk.f32.gmra.mrb[58].mxu1 %vm592_vm3, %v2222_v31  ;;  %v6769_v53 = vpack.c.bf16 %v7159_v9, %v7158_v8  ;;  %v7164_v31 = vunpack.i.h.bf16 %v7162_v63 }
 0x4ae   :  { %6161 = vmatprep.mubr.msk.f32.mxu1 %vm592_vm3, %v2224_v1  ;;  %6756 = vmatpush3.bf16.xpose.msk.msra.mxu1 %vm7885_vm4, %v6751_v20  ;;  %v7167_v1 = vpop.permute.xlu1 %7166  ;;  %v3059_v33 = vpop.permute.xlu0 %3058 }
 0x4af   :  { %6759 = vmatprep.subr.msk.bf16.mxu1 %vm7885_vm4, %v6757_v19  ;;  %v6775_v57 = vpack.c.bf16 %v7164_v31, %v7163_v40  ;;  %v7168_v6 = vunpack.i.l.bf16 %v7167_v1  ;;  %v10063_v40 = vld [vmem:[#allocation42_spill] sm:$0xff] }
 0x4b1   :  { %6162 = vmatmul.mubr.msk.f32.gmra.mrb[60].mxu1 %vm592_vm3, %v2226_v55 }
 0x4b2   :  { %6164 = vmatprep.mubr.msk.f32.mxu1 %vm592_vm3, %v2228_v58  ;;  %v3053_v4 = vpop.permute.xlu1 %3052  ;;  %v3063_v35 = vpop.permute.xlu0 %3062 }
 0x4b5   :  { %6165 = vmatmul.mubr.msk.f32.gmra.mrb[62].mxu1 %vm592_vm3, %v2230_v15  ;;  %v7169_v15 = vunpack.i.h.bf16 %v7167_v1 }
 0x4b6   :  { %6762 = vmatpush3.bf16.xpose.msk.msra.mxu1 %vm7885_vm4, %v6757_v19  ;;  %6281 = vmatprep.mubr.msk.f32.mxu1 %vm592_vm3, %v3051_v21  ;;  %v3057_v39 = vpop.permute.xlu1 %3056  ;;  %v3067_v49 = vpop.permute.xlu0 %3066 }
 0x4b7   :  { %6765 = vmatprep.subr.msk.bf16.mxu1 %vm7885_vm4, %v6763_v48  ;;  %v6781_v5 = vpack.c.bf16 %v7169_v15, %v7168_v6 }
 0x4ba   :  { %v3061_v56 = vpop.permute.xlu1 %3060 }
 0x4be   :  { %6768 = vmatpush3.bf16.xpose.msk.msra.mxu1 %vm7885_vm4, %v6763_v48  ;;  %v3065_v50 = vpop.permute.xlu1 %3064 }
 0x4bf   :  { %6771 = vmatprep.subr.msk.bf16.mxu1 %vm7885_vm4, %v6769_v53 }
 0x4c2   :  { %v3069_v47 = vpop.permute.xlu1 %3068 }
 0x4c6   :  { %6774 = vmatpush3.bf16.xpose.msk.msra.mxu1 %vm7885_vm4, %v6769_v53  ;;  %v10062_v53 = vld [vmem:[#allocation41_spill] sm:$0xff] }
 0x4c7   :  { %v8432_v55 = vpop.f32.mrb[16].mxu1  ;;  %6777 = vmatprep.subr.msk.bf16.mxu1 %vm7885_vm4, %v6775_v57 }
 0x4c8   :  { %10046 = vst [vmem:[#allocation33_spill] sm:$0xff] %v8432_v55  ;;  %v8436_v22 = vpop.f32.mrb[17].mxu1 }
 0x4c9   :  { %10047 = vst [vmem:[#allocation31_spill] sm:$0xff] %v8436_v22 }
 0x4ce   :  { %6780 = vmatpush3.bf16.xpose.msk.msra.mxu1 %vm7885_vm4, %v6775_v57 }
 0x4cf   :  { %6783 = vmatprep.subr.msk.bf16.mxu1 %vm7885_vm4, %v6781_v5 }
 0x4d6   :  { %6786 = vmatpush3.bf16.xpose.msk.msra.mxu1 %vm7885_vm4, %v6781_v5 }
 0x4dd   :  { %6282 = vmatmul.mubr.msk.f32.vlgmr.msra.gmra.mrb[64].mxu1 %vm592_vm3, %v3053_v4 }
 0x4de   :  { %6284 = vmatprep.mubr.msk.f32.mxu1 %vm592_vm3, %v3055_v61 }
 0x4e1   :  { %6285 = vmatmul.mubr.msk.f32.gmra.mrb[66].mxu1 %vm592_vm3, %v3057_v39 }
 0x4e2   :  { %6287 = vmatprep.mubr.msk.f32.mxu1 %vm592_vm3, %v3059_v33 }
 0x4e5   :  { %6288 = vmatmul.mubr.msk.f32.gmra.mrb[68].mxu1 %vm592_vm3, %v3061_v56 }
 0x4e6   :  { %6290 = vmatprep.mubr.msk.f32.mxu1 %vm592_vm3, %v3063_v35 }
 0x4e9   :  { %6291 = vmatmul.mubr.msk.f32.gmra.mrb[70].mxu1 %vm592_vm3, %v3065_v50 }
 0x4ea   :  { %6293 = vmatprep.mubr.msk.f32.mxu1 %vm592_vm3, %v3067_v49 }
 0x4ed   :  { %6294 = vmatmul.mubr.msk.f32.gmra.mrb[72].mxu1 %vm592_vm3, %v3069_v47 }
 0x4f1   :  { %v8593_v55 = vpop.xlane.xlu1 %920 }
 0x4f2   :  { %10071 = vst [vmem:[#allocation58_spill] sm:$0xff] %v8593_v55 }
 0x4fc   :  { %v8453_v14 = vpop.f32.mrb[18].mxu1 }
 0x4fd   :  { %10048 = vst [vmem:[#allocation32_spill] sm:$0xff] %v8453_v14  ;;  %v8455_v43 = vpop.f32.mrb[19].mxu1  ;;  %v8585_v14 = vpop.xlane.xlu0 %916 }
 0x4fe   :  { %10049 = vst [vmem:[#allocation44_spill] sm:$0xff] %v8455_v43 }
 0x500   :  { %v8457_v46 = vpop.f32.mrb[20].mxu1 }
 0x501   :  { %10050 = vst [vmem:[#allocation45_spill] sm:$0xff] %v8457_v46  ;;  %v8459_v58 = vpop.f32.mrb[21].mxu1  ;;  %v8587_v43 = vpop.xlane.xlu0 %914 }
 0x502   :  { %10051 = vst [vmem:[#allocation46_spill] sm:$0xff] %v8459_v58 }
 0x508   :  { %v8461_v20 = vpop.f32.mrb[22].mxu1 }
 0x509   :  { %10052 = vst [vmem:[#allocation47_spill] sm:$0xff] %v8461_v20  ;;  %v8463_v37 = vpop.f32.mrb[23].mxu1 }
 0x50a   :  { %10053 = vst [vmem:[#allocation48_spill] sm:$0xff] %v8463_v37 }
 0x510   :  { %v8465_v29 = vpop.f32.mrb[24].mxu1 }
 0x511   :  { %10054 = vst [vmem:[#allocation49_spill] sm:$0xff] %v8465_v29  ;;  %v8467_v16 = vpop.f32.mrb[25].mxu1 }
 0x512   :  { %10055 = vst [vmem:[#allocation50_spill] sm:$0xff] %v8467_v16 }
 0x514   :  { %v8469_v51 = vpop.f32.mrb[26].mxu1 }
 0x515   :  { %10056 = vst [vmem:[#allocation51_spill] sm:$0xff] %v8469_v51  ;;  %v8471_v19 = vpop.f32.mrb[27].mxu1 }
 0x516   :  { %10057 = vst [vmem:[#allocation52_spill] sm:$0xff] %v8471_v19 }
 0x518   :  { %v8473_v63 = vpop.f32.mrb[28].mxu1 }
 0x519   :  { %10058 = vst [vmem:[#allocation53_spill] sm:$0xff] %v8473_v63  ;;  %v8475_v59 = vpop.f32.mrb[29].mxu1 }
 0x51a   :  { %10059 = vst [vmem:[#allocation54_spill] sm:$0xff] %v8475_v59 }
 0x51c   :  { %v8477_v30 = vpop.f32.mrb[30].mxu1 }
 0x51d   :  { %10060 = vst [vmem:[#allocation55_spill] sm:$0xff] %v8477_v30  ;;  %v8479_v48 = vpop.f32.mrb[31].mxu1 }
 0x51e   :  { %10061 = vst [vmem:[#allocation56_spill] sm:$0xff] %v8479_v48 }
 0x520   :  { %v5981_v21 = vpop.f32.mrb[32].mxu1 }
 0x521   :  { %v1445_v32 = vmul.f32 0.17677669, %v5981_v21  ;;  %v1365_v9 = vpop.f32.mrb[33].mxu1 }
 0x522   :  { %v1444_v8 = vmul.f32 0.17677669, %v1365_v9 }
 0x523   :  { %v8482_v31 = vadd.f32 %v1445_v32, %v10062_v53 }
 0x524   :  { %v8485_v57 = vadd.f32 %v1444_v8, %v10063_v40  ;;  %v5984_v1 = vpop.f32.mrb[34].mxu1 }
 0x525   :  { %v1447_v15 = vmul.f32 0.17677669, %v5984_v1  ;;  %1478 = vmax.xlane.f32.xlu0 %v8482_v31  ;;  %v1375_v6 = vpop.f32.mrb[35].mxu1 }
 0x526   :  { %1476 = vmax.xlane.f32.xlu1 %v8485_v57  ;;  %v1446_v4 = vmul.f32 0.17677669, %v1375_v6 }
 0x527   :  { %v8490_v5 = vadd.f32 %v1447_v15, %v8032_v10 }
 0x528   :  { %v5987_v61 = vpop.f32.mrb[36].mxu1  ;;  %v8494_v56 = vadd.f32 %v1446_v4, %v8035_v45 }
 0x529   :  { %v1385_v39 = vpop.f32.mrb[37].mxu1  ;;  %v1449_v35 = vmul.f32 0.17677669, %v5987_v61 }
 0x52a   :  { %v1448_v33 = vmul.f32 0.17677669, %v1385_v39  ;;  %1482 = vmax.xlane.f32.xlu1 %v8490_v5 }
 0x52b   :  { %v8502_v32 = vadd.f32 %v1449_v35, %v8046_v2 }
 0x52c   :  { %v8497_v50 = vadd.f32 %v1448_v33, %v8050_v24  ;;  %v5990_v49 = vpop.f32.mrb[38].mxu1 }
 0x52d   :  { %v1395_v47 = vpop.f32.mrb[39].mxu1  ;;  %v1451_v9 = vmul.f32 0.17677669, %v5990_v49 }
 0x52e   :  { %v1450_v21 = vmul.f32 0.17677669, %v1395_v47  ;;  %1480 = vmax.xlane.f32.xlu1 %v8494_v56  ;;  %1484 = vmax.xlane.f32.xlu0 %v8497_v50 }
 0x52f   :  { %v8510_v4 = vadd.f32 %v1451_v9, %v8066_v12 }
 0x530   :  { %v8505_v8 = vadd.f32 %v1450_v21, %v7966_v25  ;;  %v5993_v1 = vpop.f32.mrb[40].mxu1 }
 0x531   :  { %v1405_v15 = vpop.f32.mrb[41].mxu1  ;;  %v1453_v61 = vmul.f32 0.17677669, %v5993_v1 }
 0x532   :  { %v1452_v6 = vmul.f32 0.17677669, %v1405_v15  ;;  %1486 = vmax.xlane.f32.xlu1 %v8502_v32  ;;  %1488 = vmax.xlane.f32.xlu0 %v8505_v8 }
 0x533   :  { %v8518_v47 = vadd.f32 %v1453_v61, %v7970_v23 }
 0x534   :  { %v8513_v39 = vadd.f32 %v1452_v6, %v7975_v42  ;;  %v5996_v33 = vpop.f32.mrb[42].mxu1 }
 0x535   :  { %v1415_v35 = vpop.f32.mrb[43].mxu1  ;;  %v1455_v21 = vmul.f32 0.17677669, %v5996_v33 }
 0x536   :  { %v1454_v49 = vmul.f32 0.17677669, %v1415_v35  ;;  %1490 = vmax.xlane.f32.xlu1 %v8510_v4  ;;  %1492 = vmax.xlane.f32.xlu0 %v8513_v39 }
 0x537   :  { %v8529_v35 = vadd.f32 %v1455_v21, %v8062_v60 }
 0x538   :  { %v8521_v15 = vadd.f32 %v1454_v49, %v7981_v62  ;;  %v5999_v9 = vpop.f32.mrb[44].mxu1 }
 0x539   :  { %v1457_v30 = vmul.f32 0.17677669, %v5999_v9  ;;  %v1425_v1 = vpop.f32.mrb[45].mxu1 }
 0x53a   :  { %1494 = vmax.xlane.f32.xlu1 %v8518_v47  ;;  %1496 = vmax.xlane.f32.xlu0 %v8521_v15  ;;  %v1456_v48 = vmul.f32 0.17677669, %v1425_v1 }
 0x53b   :  { %v8526_v6 = vadd.f32 %v1457_v30, %v7986_v17 }
 0x53c   :  { %v6002_v61 = vpop.f32.mrb[46].mxu1  ;;  %v8534_v33 = vadd.f32 %v1456_v48, %v7991_v28  ;;  %v10064_v48 = vld [vmem:[#allocation23_spill] sm:$0xff] }
 0x53d   :  { %v1435_v63 = vpop.f32.mrb[47].mxu1  ;;  %v1459_v49 = vmul.f32 0.17677669, %v6002_v61  ;;  %10068 = vst [vmem:[#allocation23_spill] sm:$0xff] %v8585_v14 }
 0x53e   :  { %1498 = vmax.xlane.f32.xlu1 %v8529_v35  ;;  %1502 = vmax.xlane.f32.xlu0 %v8526_v6  ;;  %v1458_v30 = vmul.f32 0.17677669, %v1435_v63 }
 0x53f   :  { %v8538_v9 = vadd.f32 %v1459_v49, %v7996_v54 }
 0x540   :  { %v8542_v21 = vadd.f32 %v1458_v30, %v7999_v0  ;;  %v8599_v0 = vpop.xlane.xlu1 %924 }
 0x541   :  { %10074 = vst [vmem:[#allocation59_spill] sm:$0xff] %v8599_v0 }
 0x542   :  { %1500 = vmax.xlane.f32.xlu0 %v8534_v33 }
 0x544   :  { %v8603_v14 = vpop.xlane.xlu1 %928 }
 0x545   :  { %10076 = vst [vmem:[#allocation61_spill] sm:$0xff] %v8603_v14 }
 0x546   :  { %1506 = vmax.xlane.f32.xlu0 %v8538_v9 }
 0x54a   :  { %1504 = vmax.xlane.f32.xlu0 %v8542_v21 }
 0x54f   :  { %3072 = vrot.lane.b32.xlu1 %v7833_v27, %s7608_s11 }
 0x560   :  { %3070 = vrot.lane.b32.xlu0 %v10064_v48, %s7608_s11 }
 0x56c   :  { %v8549_v1 = vpop.f32.mrb[48].mxu1 }
 0x56d   :  { %v8551_v61 = vpop.f32.mrb[49].mxu1 }
 0x570   :  { %v8553_v49 = vpop.f32.mrb[50].mxu1 }
 0x571   :  { %v8555_v63 = vpop.f32.mrb[51].mxu1 }
 0x573   :  { %940 = vadd.xlane.f32.xlu1 %v8306_v41  ;;  %v10065_v41 = vld [vmem:[#allocation26_spill] sm:$0xff] }
 0x574   :  { %v8558_v30 = vpop.f32.mrb[52].mxu1  ;;  %10069 = vst [vmem:[#allocation26_spill] sm:$0xff] %v8587_v43 }
 0x575   :  { %v8560_v59 = vpop.f32.mrb[53].mxu1 }
 0x578   :  { %v8562_v51 = vpop.f32.mrb[54].mxu1 }
 0x579   :  { %v8564_v27 = vpop.f32.mrb[55].mxu1 }
 0x57c   :  { %v8566_v19 = vpop.f32.mrb[56].mxu1 }
 0x57d   :  { %v8568_v48 = vpop.f32.mrb[57].mxu1 }
 0x57f   :  { %938 = vadd.xlane.f32.xlu0 %v8304_v11  ;;  %v8591_v11 = vpop.xlane.xlu0 %918 }
 0x580   :  { %v8571_v29 = vpop.f32.mrb[58].mxu1  ;;  %10070 = vst [vmem:[#allocation57_spill] sm:$0xff] %v8591_v11 }
 0x581   :  { %v8573_v16 = vpop.f32.mrb[59].mxu1 }
 0x583   :  { %v8597_v22 = vpop.xlane.xlu0 %922 }
 0x584   :  { %3074 = vrot.lane.b32.xlu1 %v10065_v41, %s7608_s11  ;;  %v8577_v20 = vpop.f32.mrb[60].mxu1  ;;  %v10072_v41 = vld [vmem:[#allocation25_spill] sm:$0xff] }
 0x585   :  { %v8579_v37 = vpop.f32.mrb[61].mxu1  ;;  %10073 = vst [vmem:[#allocation25_spill] sm:$0xff] %v8597_v22 }
 0x588   :  { %v8581_v46 = vpop.f32.mrb[62].mxu1 }
 0x589   :  { %10066 = vst [vmem:[#allocation41_spill] sm:$0xff] %v8581_v46  ;;  %v8583_v58 = vpop.f32.mrb[63].mxu1 }
 0x58a   :  { %10067 = vst [vmem:[#allocation42_spill] sm:$0xff] %v8583_v58  ;;  %v8601_v58 = vpop.xlane.xlu0 %926 }
 0x58b   :  { %10075 = vst [vmem:[#allocation60_spill] sm:$0xff] %v8601_v58 }
 0x58e   :  { %v8605_v43 = vpop.xlane.xlu0 %930 }
 0x58f   :  { %10077 = vst [vmem:[#allocation62_spill] sm:$0xff] %v8605_v43 }
 0x592   :  { %v8610_v11 = vpop.xlane.xlu0 %934 }
 0x593   :  { %10079 = vst [vmem:[#allocation64_spill] sm:$0xff] %v8610_v11 }
 0x595   :  { %7171 = vrot.lane.b32.xlu0 %v7791_v3, %s7609_s12  ;;  %v8608_v3 = vpop.xlane.xlu1 %932 }
 0x596   :  { %10078 = vst [vmem:[#allocation63_spill] sm:$0xff] %v8608_v3 }
 0x599   :  { %3076 = vrot.lane.b32.xlu0 %v10072_v41, %s7608_s11  ;;  %v8612_v55 = vpop.xlane.xlu1 %936 }
 0x59a   :  { %10080 = vst [vmem:[#allocation65_spill] sm:$0xff] %v8612_v55 }
 0x5a8   :  { %944 = vadd.xlane.f32.xlu1 %v8313_v38 }
 0x5b0   :  { %v8614_v52 = vpop.f32.mrb[64].mxu1 }
 0x5b1   :  { %10081 = vst [vmem:[#allocation66_spill] sm:$0xff] %v8614_v52  ;;  %v8616_v41 = vpop.f32.mrb[65].mxu1 }
 0x5b2   :  { %v1479_v22 = vpop.xlane.xlu0 %1478 }
 0x5b3   :  { %v1509_v0 = vsub.f32 %v8482_v31, %v1479_v22  ;;  %v1477_v58 = vpop.xlane.xlu1 %1476  ;;  %v10084_v22 = vld [vmem:[#allocation29_spill] sm:$0xff] }
 0x5b4   :  { %v1508_v14 = vsub.f32 %v8485_v57, %v1477_v58  ;;  %v8620_v54 = vpop.f32.mrb[66].mxu1 }
 0x5b5   :  { %10082 = vst [vmem:[#allocation67_spill] sm:$0xff] %v8620_v54  ;;  %v1526_v43 = vmul.f32 1.442695, %v1509_v0  ;;  %v8622_v38 = vpop.f32.mrb[67].mxu1 }
 0x5b6   :  { %v1524_v3 = vmul.f32 1.442695, %v1508_v14 }
 0x5b7   :  { %v1483_v46 = vpop.xlane.xlu1 %1482 }
 0x5b8   :  { %7282 = vpow2.f32 %v1524_v3  ;;  %v8624_v11 = vpop.f32.mrb[68].mxu1  ;;  %942 = vadd.xlane.f32.xlu0 %v8309_v36  ;;  %v1511_v55 = vsub.f32 %v8490_v5, %v1483_v46 }
 0x5b9   :  { %10083 = vst [vmem:[#allocation68_spill] sm:$0xff] %v8624_v11  ;;  %7284 = vpow2.f32 %v1526_v43  ;;  %3078 = vrot.lane.b32.xlu1 %v10084_v22, %s7608_s11  ;;  %v8630_v31 = vpop.f32.mrb[69].mxu1  ;;  %v10086_v11 = vld [vmem:[#allocation28_spill] sm:$0xff] }
 0x5ba   :  { %10085 = vst [vmem:[#allocation29_spill] sm:$0xff] %v8630_v31  ;;  %v1530_v3 = vmul.f32 1.442695, %v1511_v55 }
 0x5bb   :  { %v1481_v58 = vpop.xlane.xlu1 %1480  ;;  %v1485_v57 = vpop.xlane.xlu0 %1484 }
 0x5bc   :  { %v1510_v0 = vsub.f32 %v8494_v56, %v1481_v58  ;;  %v1512_v14 = vsub.f32 %v8497_v50, %v1485_v57  ;;  %v8634_v52 = vpop.f32.mrb[70].mxu1 }
 0x5bd   :  { %3080 = vrot.lane.b32.xlu1 %v10086_v11, %s7608_s11  ;;  %v8638_v36 = vpop.f32.mrb[71].mxu1 }
 0x5be   :  { %v1528_v43 = vmul.f32 1.442695, %v1510_v0  ;;  %v1532_v46 = vmul.f32 1.442695, %v1512_v14 }
 0x5bf   :  { %v1487_v5 = vpop.xlane.xlu1 %1486  ;;  %v1489_v22 = vpop.xlane.xlu0 %1488 }
 0x5c0   :  { %7286 = vpow2.f32 %v1528_v43  ;;  %v1513_v31 = vsub.f32 %v8502_v32, %v1487_v5  ;;  %v1514_v54 = vsub.f32 %v8505_v8, %v1489_v22  ;;  %v8642_v56 = vpop.f32.mrb[72].mxu1 }
 0x5c1   :  { %10087 = vst [vmem:[#allocation28_spill] sm:$0xff] %v8642_v56  ;;  %7288 = vpow2.f32 %v1530_v3  ;;  %7186 = vrot.lane.b32.xlu1 %v7821_v18, %s7609_s12  ;;  %v8646_v55 = vpop.f32.mrb[73].mxu1 }
 0x5c2   :  { %10088 = vst [vmem:[#allocation69_spill] sm:$0xff] %v8646_v55  ;;  %v8648_v50 = vpop.eup %7282  ;;  %7290 = vpow2.f32 %v1532_v46  ;;  %v1534_v11 = vmul.f32 1.442695, %v1513_v31  ;;  %v1536_v58 = vmul.f32 1.442695, %v1514_v54 }
 0x5c3   :  { %v8650_v57 = vpop.eup %7284  ;;  %6035 = vmatprep.mubr.f32.mxu0 %v8648_v50  ;;  %v1491_v32 = vpop.xlane.xlu1 %1490 }
 0x5c4   :  { %v1493_v0 = vpop.xlane.xlu0 %1492  ;;  %7292 = vpow2.f32 %v1534_v11  ;;  %v1515_v8 = vsub.f32 %v8510_v4, %v1491_v32  ;;  %6036 = vmatmul.mubr.f32.vlgmr.msra.gmra.mrb[32].mxu0 %v8650_v57 }
 0x5c5   :  { %v1516_v14 = vsub.f32 %v8513_v39, %v1493_v0  ;;  %7294 = vpow2.f32 %v1536_v58 }
 0x5c6   :  { %v1538_v3 = vmul.f32 1.442695, %v1515_v8 }
 0x5c7   :  { %v1540_v43 = vmul.f32 1.442695, %v1516_v14  ;;  %v1495_v5 = vpop.xlane.xlu1 %1494 }
 0x5c8   :  { %v1497_v46 = vpop.xlane.xlu0 %1496  ;;  %7296 = vpow2.f32 %v1538_v3  ;;  %v1517_v54 = vsub.f32 %v8518_v47, %v1495_v5 }
 0x5c9   :  { %v1518_v31 = vsub.f32 %v8521_v15, %v1497_v46  ;;  %7298 = vpow2.f32 %v1540_v43 }
 0x5ca   :  { %v8658_v22 = vpop.eup %7286  ;;  %v1542_v11 = vmul.f32 1.442695, %v1517_v54 }
 0x5cb   :  { %v1544_v56 = vmul.f32 1.442695, %v1518_v31  ;;  %v8660_v4 = vpop.eup %7288  ;;  %6038 = vmatprep.mubr.f32.mxu0 %v8658_v22  ;;  %v1499_v39 = vpop.xlane.xlu1 %1498 }
 0x5cc   :  { %v1503_v58 = vpop.xlane.xlu0 %1502  ;;  %v8663_v32 = vpop.eup %7290  ;;  %7300 = vpow2.f32 %v1542_v11  ;;  %v1519_v0 = vsub.f32 %v8529_v35, %v1499_v39  ;;  %6039 = vmatmul.mubr.f32.gmra.mrb[34].mxu0 %v8660_v4 }
 0x5cd   :  { %v1521_v47 = vsub.f32 %v8526_v6, %v1503_v58  ;;  %6041 = vmatprep.mubr.f32.mxu0 %v8663_v32  ;;  %7302 = vpow2.f32 %v1544_v56 }
 0x5ce   :  { %v8669_v15 = vpop.eup %7292  ;;  %v1546_v8 = vmul.f32 1.442695, %v1519_v0  ;;  %7176 = vrot.lane.b32.xlu0 %v7801_v7, %s7609_s12 }
 0x5cf   :  { %v8673_v3 = vpop.eup %7294  ;;  %v1550_v35 = vmul.f32 1.442695, %v1521_v47 }
 0x5d0   :  { %v1501_v14 = vpop.xlane.xlu0 %1500  ;;  %7304 = vpow2.f32 %v1546_v8  ;;  %6042 = vmatmul.mubr.f32.gmra.mrb[36].mxu0 %v8669_v15 }
 0x5d1   :  { %v1520_v43 = vsub.f32 %v8534_v33, %v1501_v14  ;;  %6044 = vmatprep.mubr.f32.mxu0 %v8673_v3 }
 0x5d2   :  { %v8678_v6 = vpop.eup %7296  ;;  %7181 = vrot.lane.b32.xlu0 %v7811_v13, %s7609_s12 }
 0x5d3   :  { %v1548_v5 = vmul.f32 1.442695, %v1520_v43  ;;  %v8682_v46 = vpop.eup %7298 }
 0x5d4   :  { %v1507_v56 = vpop.xlane.xlu0 %1506  ;;  %6045 = vmatmul.mubr.f32.gmra.mrb[38].mxu0 %v8678_v6 }
 0x5d5   :  { %7306 = vpow2.f32 %v1548_v5  ;;  %v1523_v33 = vsub.f32 %v8538_v9, %v1507_v56  ;;  %6047 = vmatprep.mubr.f32.mxu0 %v8682_v46  ;;  %v3073_v9 = vpop.permute.xlu1 %3072  ;;  %v2474_v5 = vmul.f32 0.17677669, %v8555_v63  ;;  %v2479_v63 = vmul.f32 0.17677669, %v8562_v51 }
 0x5d6   :  { %7308 = vpow2.f32 %v1550_v35  ;;  %v7301_v54 = vpop.eup %7300  ;;  %7191 = vrot.lane.b32.xlu0 %v7831_v26, %s7609_s12  ;;  %v2480_v51 = vmul.f32 0.17677669, %v8568_v48 }
 0x5d7   :  { %v8689_v11 = vpop.eup %7302  ;;  %v1554_v58 = vmul.f32 1.442695, %v1523_v33 }
 0x5d8   :  { %v1505_v31 = vpop.xlane.xlu0 %1504  ;;  %6048 = vmatmul.mubr.f32.gmra.mrb[40].mxu0 %v7301_v54 }
 0x5d9   :  { %v1522_v39 = vsub.f32 %v8542_v21, %v1505_v31  ;;  %6050 = vmatprep.mubr.f32.mxu0 %v8689_v11  ;;  %v2475_v21 = vmul.f32 0.17677669, %v8553_v49  ;;  %v8710_v31 = vadd.f32 %v2474_v5, %v8035_v45  ;;  %v8741_v5 = vadd.f32 %v2480_v51, %v7975_v42 }
 0x5da   :  { %v8693_v0 = vpop.eup %7304 }
 0x5db   :  { %v1552_v47 = vmul.f32 1.442695, %v1522_v39  ;;  %v8703_v35 = vadd.f32 %v2475_v21, %v8032_v10  ;;  %v2476_v39 = vmul.f32 0.17677669, %v8560_v59 }
 0x5dc   :  { %v3071_v8 = vpop.permute.xlu0 %3070  ;;  %6051 = vmatmul.mubr.f32.gmra.mrb[42].mxu0 %v8693_v0 }
 0x5dd   :  { %7310 = vpow2.f32 %v1552_v47  ;;  %6296 = vmatprep.mubr.msk.f32.mxu1 %vm592_vm3, %v3071_v8  ;;  %v8716_v49 = vadd.f32 %v2476_v39, %v8050_v24  ;;  %v8722_v47 = vadd.f32 %v2479_v63, %v8066_v12  ;;  %v2478_v8 = vmul.f32 0.17677669, %v8564_v27  ;;  %v10090_v63 = vld [vmem:[#allocation39_spill] sm:$0xff] }
 0x5de   :  { %7312 = vpow2.f32 %v1554_v58  ;;  %6297 = vmatmul.mubr.msk.f32.gmra.mrb[74].mxu1 %vm592_vm3, %v3073_v9  ;;  %v2473_v58 = vmul.f32 0.17677669, %v8549_v1  ;;  %v2472_v9 = vmul.f32 0.17677669, %v8551_v61  ;;  %v2477_v27 = vmul.f32 0.17677669, %v8558_v30 }
 0x5df   :  { %v7307_v14 = vpop.eup %7306  ;;  %v8731_v21 = vadd.f32 %v2478_v8, %v7966_v25  ;;  %v3323_v8 = vmul.f32 0.17677669, %v8616_v41 }
 0x5e0   :  { %v8698_v43 = vpop.eup %7308  ;;  %6053 = vmatprep.mubr.f32.mxu0 %v7307_v14  ;;  %v8727_v59 = vadd.f32 %v2473_v58, %v10062_v53  ;;  %v8737_v1 = vadd.f32 %v2472_v9, %v10063_v40  ;;  %v8746_v61 = vadd.f32 %v2477_v27, %v8046_v2 }
 0x5e1   :  { %6054 = vmatmul.mubr.f32.gmra.mrb[44].mxu0 %v8698_v43 }
 0x5e5   :  { %2510 = vmax.xlane.f32.xlu1 %v8703_v35 }
 0x5e7   :  { %v7311_v56 = vpop.eup %7310 }
 0x5e8   :  { %v8707_v33 = vpop.eup %7312  ;;  %6056 = vmatprep.mubr.f32.mxu0 %v7311_v56 }
 0x5e9   :  { %6057 = vmatmul.mubr.f32.gmra.mrb[46].mxu0 %v8707_v33  ;;  %2508 = vmax.xlane.f32.xlu1 %v8710_v31 }
 0x5ed   :  { %2512 = vmax.xlane.f32.xlu1 %v8716_v49 }
 0x5f1   :  { %2518 = vmax.xlane.f32.xlu1 %v8722_v47 }
 0x5f5   :  { %2516 = vmax.xlane.f32.xlu1 %v8731_v21  ;;  %2506 = vmax.xlane.f32.xlu0 %v8727_v59 }
 0x5f9   :  { %2520 = vmax.xlane.f32.xlu1 %v8741_v5  ;;  %2504 = vmax.xlane.f32.xlu0 %v8737_v1 }
 0x5fd   :  { %1558 = vadd.xlane.f32.xlu1 %v8650_v57  ;;  %2514 = vmax.xlane.f32.xlu0 %v8746_v61  ;;  %v2481_v57 = vmul.f32 0.17677669, %v8566_v19  ;;  %v8773_v19 = vld [vmem:[#allocation2 + $0x80] sm:$0xff] }
 0x600   :  { %v8750_v48 = vpop.xlane.xlu1 %940 }
 0x601   :  { %1562 = vadd.xlane.f32.xlu1 %v8660_v4  ;;  %1556 = vadd.xlane.f32.xlu0 %v8648_v50  ;;  %v8767_v50 = vadd.f32 %v2481_v57, %v7970_v23 }
 0x604   :  { %v3075_v30 = vpop.permute.xlu1 %3074 }
 0x605   :  { %1560 = vadd.xlane.f32.xlu1 %v8658_v22  ;;  %1568 = vadd.xlane.f32.xlu0 %v8673_v3 }
 0x606   :  { %6299 = vmatprep.mubr.msk.f32.mxu1 %vm592_vm3, %v3075_v30 }
 0x609   :  { %1566 = vadd.xlane.f32.xlu1 %v8669_v15  ;;  %1574 = vadd.xlane.f32.xlu0 %v7301_v54  ;;  %v38_v15 = vld [vmem:[#allocation2 + $0x88] sm:$0xff] }
 0x60a   :  { %6059 = vmatprep.subr.mxu0 %v38_v15 }
 0x60b   :  { %6060 = vmatpush3.msra.mxu0 %v38_v15 }
 0x60c   :  { %v8758_v39 = vpop.xlane.xlu0 %938  ;;  %6085 = vmatprep.subr.mxu0 %v8773_v19 }
 0x60d   :  { %1564 = vadd.xlane.f32.xlu1 %v8663_v32  ;;  %1572 = vadd.xlane.f32.xlu0 %v8682_v46  ;;  %v2482_v46 = vmul.f32 0.17677669, %v8573_v16  ;;  %v2485_v16 = vmul.f32 0.17677669, %v8577_v20  ;;  %v10092_v20 = vld [vmem:[#allocation30_spill] sm:$0xff] }
 0x60f   :  { %v8788_v54 = vadd.f32 %v2482_v46, %v7981_v62  ;;  %v10094_v46 = vld [vmem:[#allocation40_spill] sm:$0xff] }
 0x610   :  { %v8763_v4 = vpop.permute.xlu0 %7171 }
 0x611   :  { %1570 = vadd.xlane.f32.xlu1 %v8678_v6  ;;  %v7174_v42 = vunpack.i.h.bf16 %v8763_v4 }
 0x614   :  { %v3077_v22 = vpop.permute.xlu0 %3076 }
 0x615   :  { %2522 = vmax.xlane.f32.xlu1 %v8767_v50  ;;  %6300 = vmatmul.mubr.msk.f32.gmra.mrb[76].mxu1 %vm592_vm3, %v3077_v22  ;;  %v10093_v22 = vld [vmem:[#allocation42_spill] sm:$0xff] }
 0x616   :  { %v2486_v15 = vmul.f32 0.17677669, %v10093_v22 }
 0x619   :  { %1578 = vadd.xlane.f32.xlu1 %v8693_v0 }
 0x61d   :  { %1576 = vadd.xlane.f32.xlu1 %v8689_v11  ;;  %v2484_v11 = vmul.f32 0.17677669, %v8579_v37  ;;  %v10089_v37 = vld [vmem:[#allocation41_spill] sm:$0xff] }
 0x61f   :  { %v8793_v0 = vadd.f32 %v2484_v11, %v7991_v28  ;;  %v8840_v11 = vadd.f32 %v2486_v15, %v10094_v46  ;;  %v3325_v46 = vmul.f32 0.17677669, %v8622_v38  ;;  %v7173_v38 = vunpack.i.l.bf16 %v8763_v4 }
 0x621   :  { %1580 = vadd.xlane.f32.xlu1 %v7307_v14  ;;  %v2483_v14 = vmul.f32 0.17677669, %v8571_v29  ;;  %v8813_v29 = vadd.f32 %v3323_v8, %v10063_v40  ;;  %10095 = vst [vmem:[#allocation42_spill] sm:$0xff] %v8840_v11  ;;  %v8869_v4 = vpack.c.bf16 %v7174_v42, %v7173_v38 }
 0x623   :  { %7196 = vrot.lane.b32.xlu0 %v7841_v34, %s7609_s12  ;;  %10091 = vst [vmem:[#allocation41_spill] sm:$0xff] %v8813_v29  ;;  %v10097_v34 = vld [vmem:[#allocation22_spill] sm:$0xff] }
 0x625   :  { %1584 = vadd.xlane.f32.xlu1 %v7311_v56  ;;  %v8803_v56 = vadd.f32 %v2485_v16, %v7986_v17 }
 0x635   :  { %v8778_v32 = vpop.xlane.xlu1 %944 }
 0x636   :  { %7201 = vrot.lane.b32.xlu1 %v7851_v44, %s7609_s12  ;;  %v8856_v44 = vadd.f32 %v3325_v46, %v8035_v45  ;;  %v10098_v45 = vld [vmem:[#allocation29_spill] sm:$0xff] }
 0x637   :  { %v3327_v46 = vmul.f32 0.17677669, %v10098_v45 }
 0x639   :  { %v3079_v3 = vpop.permute.xlu1 %3078 }
 0x63a   :  { %6302 = vmatprep.mubr.msk.f32.mxu1 %vm592_vm3, %v3079_v3 }
 0x63d   :  { %v3081_v6 = vpop.permute.xlu1 %3080 }
 0x63e   :  { %6303 = vmatmul.mubr.msk.f32.gmra.mrb[78].mxu1 %vm592_vm3, %v3081_v6 }
 0x641   :  { %v8820_v51 = vpop.permute.xlu1 %7186 }
 0x642   :  { %1582 = vadd.xlane.f32.xlu0 %v8698_v43  ;;  %v8798_v43 = vadd.f32 %v2483_v14, %v8062_v60  ;;  %v10096_v60 = vld [vmem:[#allocation67_spill] sm:$0xff] }
 0x643   :  { %v3326_v23 = vmul.f32 0.17677669, %v10096_v60 }
 0x645   :  { %v8818_v9 = vpop.xlane.xlu0 %942  ;;  %v8864_v60 = vadd.f32 %v3326_v23, %v8032_v10 }
 0x646   :  { %1586 = vadd.xlane.f32.xlu0 %v8707_v33  ;;  %v2487_v33 = vmul.f32 0.17677669, %v10089_v37 }
 0x648   :  { %v8808_v58 = vadd.f32 %v2487_v33, %v10090_v63 }
 0x649   :  { %v8822_v27 = vpop.permute.xlu0 %7176 }
 0x64a   :  { %2524 = vmax.xlane.f32.xlu0 %v8788_v54 }
 0x64d   :  { %v8830_v40 = vpop.permute.xlu0 %7181 }
 0x64e   :  { %2528 = vmax.xlane.f32.xlu0 %v8793_v0 }
 0x651   :  { %v8835_v3 = vpop.permute.xlu0 %7191 }
 0x65a   :  { %2526 = vmax.xlane.f32.xlu1 %v8798_v43 }
 0x65e   :  { %2530 = vmax.xlane.f32.xlu1 %v8803_v56 }
 0x662   :  { %2534 = vmax.xlane.f32.xlu1 %v8808_v58 }
 0x664   :  { %7206 = vrot.lane.b32.xlu0 %v10092_v20, %s7609_s12 }
 0x666   :  { %3355 = vmax.xlane.f32.xlu1 %v8813_v29 }
 0x672   :  { %v8824_v30 = vpop.xlane.xlu1 %2510 }
 0x676   :  { %v8826_v57 = vpop.xlane.xlu1 %2508 }
 0x677   :  { %7216 = vrot.lane.b32.xlu1 %v7801_v7, %s7610_s13 }
 0x67a   :  { %v8832_v41 = vpop.xlane.xlu1 %2512 }
 0x67e   :  { %v8837_v6 = vpop.xlane.xlu1 %2518 }
 0x682   :  { %v8842_v14 = vpop.xlane.xlu1 %2516  ;;  %v8844_v16 = vpop.xlane.xlu0 %2506 }
 0x683   :  { %2532 = vmax.xlane.f32.xlu0 %v8840_v11 }
 0x686   :  { %v8847_v7 = vpop.xlane.xlu1 %2520  ;;  %v8849_v37 = vpop.xlane.xlu0 %2504 }
 0x68a   :  { %v1559_v33 = vpop.xlane.xlu1 %1558  ;;  %v8851_v8 = vpop.xlane.xlu0 %2514 }
 0x68e   :  { %v1563_v22 = vpop.xlane.xlu1 %1562  ;;  %v1557_v17 = vpop.xlane.xlu0 %1556 }
 0x68f   :  { %7314 = vrcp.f32 %v1557_v17 }
 0x690   :  { %7316 = vrcp.f32 %v1559_v33 }
 0x692   :  { %v1561_v63 = vpop.xlane.xlu1 %1560  ;;  %v1569_v15 = vpop.xlane.xlu0 %1568 }
 0x693   :  { %7318 = vrcp.f32 %v1561_v63 }
 0x694   :  { %7320 = vrcp.f32 %v1563_v22 }
 0x696   :  { %v1567_v20 = vpop.xlane.xlu1 %1566  ;;  %v1575_v62 = vpop.xlane.xlu0 %1574 }
 0x697   :  { %v6037_v28 = vpop.f32.mrb[32].mxu0 }
 0x698   :  { %v1718_v29 = vpop.f32.mrb[33].mxu0 }
 0x699   :  { %7211 = vrot.lane.b32.xlu0 %v10097_v34, %s7610_s13  ;;  %v7315_v33 = vpop.eup %7314 }
 0x69a   :  { %v1565_v17 = vpop.xlane.xlu1 %1564  ;;  %v7317_v63 = vpop.eup %7316  ;;  %v1797_v22 = vmul.f32 %v7315_v33, %v1718_v29 }
 0x69b   :  { %7322 = vrcp.f32 %v1565_v17  ;;  %3359 = vmax.xlane.f32.xlu1 %v8856_v44  ;;  %v1798_v55 = vmul.f32 %v7317_v63, %v6037_v28  ;;  %v1573_v11 = vpop.xlane.xlu0 %1572  ;;  %v8874_v28 = vadd.f32 %v3327_v46, %v8050_v24 }
 0x69c   :  { %7324 = vrcp.f32 %v1567_v20  ;;  %6061 = vmatprep.mubr.msk.f32.mxu0 %vm592_vm3, %v1797_v22 }
 0x69d   :  { %7326 = vrcp.f32 %v1569_v15  ;;  %6062 = vmatmul.mubr.msk.f32.vlgmr.msra.gmra.mrb[48].mxu0 %vm592_vm3, %v1798_v55  ;;  %v7319_v29 = vpop.eup %7318 }
 0x69e   :  { %v1571_v34 = vpop.xlane.xlu1 %1570  ;;  %6086 = vmatpush3.msra.mxu0 %v8773_v19  ;;  %v7321_v23 = vpop.eup %7320 }
 0x69f   :  { %7328 = vrcp.f32 %v1571_v34  ;;  %v6040_v17 = vpop.f32.mrb[34].mxu0  ;;  %3361 = vmax.xlane.f32.xlu1 %v8864_v60  ;;  %6708 = vmatprep.subr.bf16.mxu0 %v8869_v4 }
 0x6a0   :  { %v1728_v10 = vpop.f32.mrb[35].mxu0  ;;  %7330 = vrcp.f32 %v1573_v11  ;;  %v1800_v15 = vmul.f32 %v7321_v23, %v6040_v17 }
 0x6a1   :  { %v1799_v20 = vmul.f32 %v7319_v29, %v1728_v10  ;;  %7332 = vrcp.f32 %v1575_v62 }
 0x6a2   :  { %v8877_v55 = vpop.xlane.xlu1 %2522 }
 0x6a3   :  { %v6043_v42 = vpop.f32.mrb[36].mxu0  ;;  %3363 = vmax.xlane.f32.xlu1 %v8874_v28  ;;  %6064 = vmatprep.mubr.msk.f32.mxu0 %vm592_vm3, %v1799_v20 }
 0x6a4   :  { %v1738_v33 = vpop.f32.mrb[37].mxu0  ;;  %6065 = vmatmul.mubr.msk.f32.gmra.mrb[50].mxu0 %vm592_vm3, %v1800_v15 }
 0x6a5   :  { %v7323_v19 = vpop.eup %7322 }
 0x6a6   :  { %v7325_v38 = vpop.eup %7324  ;;  %v1801_v24 = vmul.f32 %v7323_v19, %v1738_v33  ;;  %v1579_v63 = vpop.xlane.xlu1 %1578 }
 0x6a7   :  { %v1802_v22 = vmul.f32 %v7325_v38, %v6043_v42  ;;  %v6046_v45 = vpop.f32.mrb[38].mxu0  ;;  %v7327_v46 = vpop.eup %7326  ;;  %7334 = vrcp.f32 %v1579_v63 }
 0x6a8   :  { %v1748_v11 = vpop.f32.mrb[39].mxu0  ;;  %6067 = vmatprep.mubr.msk.f32.mxu0 %vm592_vm3, %v1801_v24 }
 0x6a9   :  { %v7329_v34 = vpop.eup %7328  ;;  %v1803_v17 = vmul.f32 %v7327_v46, %v1748_v11  ;;  %6068 = vmatmul.mubr.msk.f32.gmra.mrb[52].mxu0 %vm592_vm3, %v1802_v22 }
 0x6aa   :  { %v1804_v29 = vmul.f32 %v7329_v34, %v6046_v45  ;;  %v1577_v62 = vpop.xlane.xlu1 %1576  ;;  %v7331_v23 = vpop.eup %7330  ;;  %v10099_v45 = vld [vmem:[#allocation66_spill] sm:$0xff] }
 0x6ab   :  { %7336 = vrcp.f32 %v1577_v62  ;;  %v6049_v10 = vpop.f32.mrb[40].mxu0  ;;  %6070 = vmatprep.mubr.msk.f32.mxu0 %vm592_vm3, %v1803_v17  ;;  %v7333_v42 = vpop.eup %7332  ;;  %v3324_v46 = vmul.f32 0.17677669, %v10099_v45  ;;  %v2536_v45 = vsub.f32 %v8737_v1, %v8849_v37  ;;  %v2538_v37 = vsub.f32 %v8710_v31, %v8826_v57  ;;  %v10105_v57 = vld [vmem:[#allocation59_spill] sm:$0xff] }
 0x6ac   :  { %v1758_v20 = vpop.f32.mrb[41].mxu0  ;;  %v1806_v19 = vmul.f32 %v7333_v42, %v6049_v10 }
 0x6ad   :  { %v1805_v15 = vmul.f32 %v7331_v23, %v1758_v20  ;;  %6071 = vmatmul.mubr.msk.f32.gmra.mrb[54].mxu0 %vm592_vm3, %v1804_v29  ;;  %v8896_v62 = vadd.f32 %v3324_v46, %v10062_v53  ;;  %v2537_v53 = vsub.f32 %v8727_v59, %v8844_v16  ;;  %v3329_v46 = vmul.f32 0.17677669, %v8638_v36  ;;  %v10101_v16 = vld [vmem:[#allocation23_spill] sm:$0xff] }
 0x6ae   :  { %v1581_v33 = vpop.xlane.xlu1 %1580  ;;  %v2552_v59 = vmul.f32 1.442695, %v2536_v45  ;;  %v7179_v45 = vunpack.i.h.bf16 %v8822_v27 }
 0x6af   :  { %7338 = vrcp.f32 %v1581_v33  ;;  %v6052_v38 = vpop.f32.mrb[42].mxu0  ;;  %6073 = vmatprep.mubr.msk.f32.mxu0 %vm592_vm3, %v1805_v15 }
 0x6b0   :  { %v1768_v24 = vpop.f32.mrb[43].mxu0 }
 0x6b1   :  { %v8887_v63 = vpop.f32.mrb[74].mxu1  ;;  %6074 = vmatmul.mubr.msk.f32.gmra.mrb[56].mxu0 %vm592_vm3, %v1806_v19  ;;  %v7335_v34 = vpop.eup %7334 }
 0x6b2   :  { %v8890_v22 = vpop.f32.mrb[75].mxu1  ;;  %v1808_v23 = vmul.f32 %v7335_v34, %v6052_v38  ;;  %v8902_v19 = vpop.permute.xlu0 %7196  ;;  %v10100_v34 = vld [vmem:[#allocation26_spill] sm:$0xff] }
 0x6b4   :  { %v6055_v11 = vpop.f32.mrb[44].mxu0  ;;  %7226 = vrot.lane.b32.xlu1 %v7821_v18, %s7610_s13  ;;  %v1585_v18 = vpop.xlane.xlu1 %1584 }
 0x6b5   :  { %v1778_v17 = vpop.f32.mrb[45].mxu0  ;;  %v7337_v29 = vpop.eup %7336  ;;  %7340 = vrcp.f32 %v1585_v18 }
 0x6b6   :  { %v1807_v10 = vmul.f32 %v7337_v29, %v1768_v24  ;;  %v2554_v24 = vmul.f32 1.442695, %v2537_v53  ;;  %v2539_v29 = vsub.f32 %v8703_v35, %v8824_v30  ;;  %v10103_v30 = vld [vmem:[#allocation58_spill] sm:$0xff]  ;;  %v2556_v53 = vmul.f32 1.442695, %v2538_v37 }
 0x6b8   :  { %3357 = vmax.xlane.f32.xlu0 %v8896_v62  ;;  %6076 = vmatprep.mubr.msk.f32.mxu0 %vm592_vm3, %v1807_v10  ;;  %v8917_v10 = vadd.f32 %v3329_v46, %v7966_v25  ;;  %v2558_v1 = vmul.f32 1.442695, %v2539_v29  ;;  %v7178_v46 = vunpack.i.l.bf16 %v8822_v27  ;;  %v8949_v27 = vpop.permute.xlu1 %7201 }
 0x6b9   :  { %v7339_v20 = vpop.eup %7338  ;;  %6077 = vmatmul.mubr.msk.f32.gmra.mrb[58].mxu0 %vm592_vm3, %v1808_v23  ;;  %v10102_v23 = vld [vmem:[#allocation57_spill] sm:$0xff] }
 0x6ba   :  { %v1809_v15 = vmul.f32 %v7339_v20, %v1778_v17 }
 0x6bc   :  { %v6058_v42 = vpop.f32.mrb[46].mxu0  ;;  %6079 = vmatprep.mubr.msk.f32.mxu0 %vm592_vm3, %v1809_v15  ;;  %v10104_v15 = vld [vmem:[#allocation25_spill] sm:$0xff] }
 0x6bd   :  { %v1788_v33 = vpop.f32.mrb[47].mxu0 }
 0x6bf   :  { %v7341_v36 = vpop.eup %7340 }
 0x6c0   :  { %v1811_v25 = vmul.f32 %v7341_v36, %v1788_v33  ;;  %v10106_v33 = vld [vmem:[#allocation60_spill] sm:$0xff]  ;;  %v10110_v36 = vld [vmem:[#allocation61_spill] sm:$0xff] }
 0x6ce   :  { %7221 = vrot.lane.b32.xlu0 %v7811_v13, %s7610_s13  ;;  %v3330_v13 = vmul.f32 0.17677669, %v8634_v52 }
 0x6cf   :  { %v1583_v38 = vpop.xlane.xlu0 %1582 }
 0x6d0   :  { %7342 = vrcp.f32 %v1583_v38  ;;  %v8925_v20 = vadd.f32 %v3330_v13, %v8066_v12  ;;  %v2541_v38 = vsub.f32 %v8746_v61, %v8851_v8  ;;  %v10107_v61 = vld [vmem:[#allocation31_spill] sm:$0xff]  ;;  %v10109_v13 = vld [vmem:[#allocation62_spill] sm:$0xff] }
 0x6d1   :  { %7344 = vrcp.f32 %v10100_v34  ;;  %v2540_v34 = vsub.f32 %v8716_v49, %v8832_v41  ;;  %v7184_v49 = vunpack.i.h.bf16 %v8830_v40  ;;  %v6711_v41 = vpack.c.bf16 %v7179_v45, %v7178_v46 }
 0x6d3   :  { %v1587_v17 = vpop.xlane.xlu0 %1586 }
 0x6d4   :  { %7346 = vrcp.f32 %v1587_v17  ;;  %v2562_v17 = vmul.f32 1.442695, %v2541_v38 }
 0x6d5   :  { %7348 = vpow2.f32 %v2554_v24 }
 0x6d6   :  { %7350 = vrcp.f32 %v10101_v16 }
 0x6d7   :  { %7352 = vrcp.f32 %v10102_v23 }
 0x6d8   :  { %3367 = vmax.xlane.f32.xlu1 %v8917_v10  ;;  %7354 = vpow2.f32 %v2552_v59  ;;  %v10108_v59 = vld [vmem:[#allocation33_spill] sm:$0xff] }
 0x6d9   :  { %7356 = vrcp.f32 %v10103_v30  ;;  %v2560_v30 = vmul.f32 1.442695, %v2540_v34 }
 0x6da   :  { %v7343_v35 = vpop.eup %7342  ;;  %7358 = vrcp.f32 %v10104_v15 }
 0x6db   :  { %v1810_v52 = vmul.f32 %v7343_v35, %v6055_v11  ;;  %v7345_v18 = vpop.eup %7344  ;;  %7360 = vpow2.f32 %v2558_v1  ;;  %v10111_v1 = vld [vmem:[#allocation44_spill] sm:$0xff]  ;;  %v7183_v35 = vunpack.i.l.bf16 %v8830_v40 }
 0x6dc   :  { %3369 = vmax.xlane.f32.xlu1 %v8925_v20  ;;  %7362 = vrcp.f32 %v10105_v57  ;;  %v1155_v8 = vmul.f32 %v7345_v18, %v10107_v61  ;;  %v10112_v18 = vld [vmem:[#allocation64_spill] sm:$0xff]  ;;  %v2545_v61 = vsub.f32 %v8767_v50, %v8877_v55  ;;  %v10118_v50 = vld [vmem:[#allocation65_spill] sm:$0xff] }
 0x6dd   :  { %6080 = vmatmul.mubr.msk.f32.gmra.mrb[60].mxu0 %vm592_vm3, %v1810_v52  ;;  %7364 = vrcp.f32 %v10106_v33  ;;  %v2543_v52 = vsub.f32 %v8722_v47, %v8837_v6  ;;  %v10115_v47 = vld [vmem:[#allocation63_spill] sm:$0xff]  ;;  %v10116_v6 = vld [vmem:[#allocation46_spill] sm:$0xff]  ;;  %v7189_v33 = vunpack.i.h.bf16 %v8820_v51  ;;  %v6715_v34 = vpack.c.bf16 %v7184_v49, %v7183_v35  ;;  %v10119_v55 = vld [vmem:[#allocation48_spill] sm:$0xff] }
 0x6de   :  { %v7347_v31 = vpop.eup %7346  ;;  %6082 = vmatprep.mubr.msk.f32.mxu0 %vm592_vm3, %v1811_v25  ;;  %7366 = vpow2.f32 %v2556_v53  ;;  %v10113_v53 = vld [vmem:[#allocation32_spill] sm:$0xff] }
 0x6df   :  { %v8934_v12 = vpop.eup %7348  ;;  %v1812_v11 = vmul.f32 %v7347_v31, %v6058_v42  ;;  %7368 = vrcp.f32 %v10109_v13  ;;  %v10114_v31 = vld [vmem:[#allocation68_spill] sm:$0xff]  ;;  %v2566_v46 = vmul.f32 1.442695, %v2543_v52 }
 0x6e0   :  { %v7351_v24 = vpop.eup %7350  ;;  %2586 = vadd.xlane.f32.xlu1 %v8934_v12  ;;  %7370 = vrcp.f32 %v10110_v36  ;;  %v3328_v40 = vmul.f32 0.17677669, %v10114_v31  ;;  %v7194_v36 = vunpack.i.h.bf16 %v8835_v3  ;;  %v7198_v31 = vunpack.i.l.bf16 %v8902_v19 }
 0x6e1   :  { %6083 = vmatmul.mubr.msk.f32.gmra.mrb[62].mxu0 %vm592_vm3, %v1812_v11  ;;  %v7353_v29 = vpop.eup %7352  ;;  %v1156_v16 = vmul.f32 %v7351_v24, %v10108_v59  ;;  %7372 = vpow2.f32 %v2562_v17  ;;  %v10117_v59 = vld [vmem:[#allocation45_spill] sm:$0xff] }
 0x6e2   :  { %6087 = vmatprep.mubr.msk.f32.mxu0 %vm592_vm3, %v1155_v8  ;;  %v8945_v42 = vpop.eup %7354  ;;  %v1157_v37 = vmul.f32 %v7353_v29, %v10111_v1  ;;  %7374 = vrcp.f32 %v10112_v18  ;;  %v8978_v29 = vpop.xlane.xlu0 %2524  ;;  %v8985_v13 = vadd.f32 %v3328_v40, %v8046_v2  ;;  %v7193_v1 = vunpack.i.l.bf16 %v8835_v3 }
 0x6e3   :  { %v7357_v23 = vpop.eup %7356  ;;  %7376 = vrcp.f32 %v10115_v47  ;;  %v7199_v18 = vunpack.i.h.bf16 %v8902_v19 }
 0x6e4   :  { %2584 = vadd.xlane.f32.xlu1 %v8945_v42  ;;  %v7359_v15 = vpop.eup %7358  ;;  %v1158_v38 = vmul.f32 %v7357_v23, %v10113_v53  ;;  %7378 = vpow2.f32 %v2560_v30  ;;  %v10120_v30 = vld [vmem:[#allocation47_spill] sm:$0xff] }
 0x6e5   :  { %6088 = vmatmul.mubr.msk.f32.vlgmr.msra.gmra.mrb[48].mxu0 %vm592_vm3, %v1156_v16  ;;  %v8961_v25 = vpop.eup %7360  ;;  %v1159_v24 = vmul.f32 %v7359_v15, %v10116_v6  ;;  %7380 = vrcp.f32 %v8758_v39  ;;  %v10121_v15 = vld [vmem:[#allocation50_spill] sm:$0xff]  ;;  %v10122_v6 = vld [vmem:[#allocation49_spill] sm:$0xff] }
 0x6e6   :  { %6710 = vmatpush3.bf16.msra.mxu0 %v8869_v4  ;;  %6090 = vmatprep.mubr.msk.f32.mxu0 %vm592_vm3, %v1157_v37  ;;  %v7363_v11 = vpop.eup %7362  ;;  %v7188_v4 = vunpack.i.l.bf16 %v8820_v51  ;;  %7382 = vrcp.f32 %v10118_v50  ;;  %v9004_v53 = vpop.xlane.xlu0 %2528  ;;  %v10124_v50 = vld [vmem:[#allocation51_spill] sm:$0xff] }
 0x6e7   :  { %6712 = vmatprep.subr.bf16.mxu0 %v6711_v41  ;;  %v2527_v57 = vpop.xlane.xlu1 %2526  ;;  %v7365_v17 = vpop.eup %7364  ;;  %v1160_v16 = vmul.f32 %v7363_v11, %v10117_v59  ;;  %7384 = vpow2.f32 %v2566_v46 }
 0x6e8   :  { %v8970_v45 = vpop.f32.mrb[76].mxu1  ;;  %2590 = vadd.xlane.f32.xlu1 %v8961_v25  ;;  %v8981_v51 = vpop.eup %7366  ;;  %v1161_v23 = vmul.f32 %v7365_v17, %v10119_v55  ;;  %v2547_v2 = vsub.f32 %v8798_v43, %v2527_v57  ;;  %v6719_v39 = vpack.c.bf16 %v7189_v33, %v7188_v4  ;;  %7386 = vrcp.f32 %v8750_v48  ;;  %v10123_v33 = vld [vmem:[#allocation52_spill] sm:$0xff] }
 0x6e9   :  { %6091 = vmatmul.mubr.msk.f32.gmra.mrb[50].mxu0 %vm592_vm3, %v1158_v38  ;;  %v8976_v8 = vpop.f32.mrb[77].mxu1  ;;  %v7369_v49 = vpop.eup %7368  ;;  %7388 = vrcp.f32 %v8818_v9  ;;  %v6723_v38 = vpack.c.bf16 %v7194_v36, %v7193_v1  ;;  %v7204_v4 = vunpack.i.h.bf16 %v8949_v27 }
 0x6ea   :  { %6714 = vmatpush3.bf16.msra.mxu0 %v6711_v41  ;;  %6093 = vmatprep.mubr.msk.f32.mxu0 %vm592_vm3, %v1159_v24  ;;  %v2570_v41 = vmul.f32 1.442695, %v2545_v61  ;;  %v7371_v35 = vpop.eup %7370  ;;  %v1163_v43 = vmul.f32 %v7369_v49, %v10121_v15  ;;  %v2574_v40 = vmul.f32 1.442695, %v2547_v2  ;;  %v7207_v59 = vpop.permute.xlu0 %7206  ;;  %v10127_v15 = vld [vmem:[#allocation56_spill] sm:$0xff] }
 0x6eb   :  { %6716 = vmatprep.subr.bf16.mxu0 %v6715_v34  ;;  %v2531_v37 = vpop.xlane.xlu1 %2530  ;;  %v8998_v3 = vpop.eup %7372  ;;  %v1162_v52 = vmul.f32 %v7371_v35, %v10120_v30  ;;  %v7208_v49 = vunpack.i.l.bf16 %v7207_v59  ;;  %v10126_v35 = vld [vmem:[#allocation53_spill] sm:$0xff] }
 0x6ec   :  { %2588 = vadd.xlane.f32.xlu1 %v8981_v51  ;;  %v7375_v48 = vpop.eup %7374  ;;  %7390 = vpow2.f32 %v2570_v41  ;;  %v2549_v57 = vsub.f32 %v8803_v56, %v2531_v37  ;;  %v7203_v56 = vunpack.i.l.bf16 %v8949_v27  ;;  %v7209_v37 = vunpack.i.h.bf16 %v7207_v59  ;;  %v10130_v59 = vld [vmem:[#allocation69_spill] sm:$0xff] }
 0x6ed   :  { %3365 = vmax.xlane.f32.xlu0 %v8985_v13  ;;  %6094 = vmatmul.mubr.msk.f32.gmra.mrb[52].mxu0 %vm592_vm3, %v1160_v16  ;;  %v7377_v9 = vpop.eup %7376  ;;  %7392 = vrcp.f32 %v8778_v32  ;;  %v1165_v19 = vmul.f32 %v7375_v48, %v10123_v33 }
 0x6ee   :  { %6718 = vmatpush3.bf16.msra.mxu0 %v6715_v34  ;;  %6096 = vmatprep.mubr.msk.f32.mxu0 %vm592_vm3, %v1161_v23  ;;  %v9012_v47 = vpop.eup %7378  ;;  %v1164_v24 = vmul.f32 %v7377_v9, %v10122_v6  ;;  %7394 = vpow2.f32 %v2574_v40  ;;  %v2578_v32 = vmul.f32 1.442695, %v2549_v57  ;;  %v6727_v34 = vpack.c.bf16 %v7199_v18, %v7198_v31  ;;  %v10125_v23 = vld [vmem:[#allocation54_spill] sm:$0xff]  ;;  %v39_v40 = vld [vmem:[#allocation2 + $0x90] sm:$0xff] }
 0x6ef   :  { %6720 = vmatprep.subr.bf16.mxu0 %v6719_v39  ;;  %v2535_v11 = vpop.xlane.xlu1 %2534  ;;  %v7381_v46 = vpop.eup %7380  ;;  %v6731_v1 = vpack.c.bf16 %v7204_v4, %v7203_v56  ;;  %v6735_v18 = vpack.c.bf16 %v7209_v37, %v7208_v49  ;;  %v2544_v31 = vsub.f32 %v8741_v5, %v8847_v7  ;;  %v10129_v6 = vld [vmem:[#allocation42_spill] sm:$0xff] }
 0x6f0   :  { %2594 = vadd.xlane.f32.xlu1 %v8998_v3  ;;  %v2551_v61 = vsub.f32 %v8808_v58, %v2535_v11  ;;  %v7383_v17 = vpop.eup %7382  ;;  %v1167_v36 = vmul.f32 %v7381_v46, %v10125_v23  ;;  %7396 = vpow2.f32 %v2578_v32  ;;  %v2546_v11 = vsub.f32 %v8788_v54, %v8978_v29  ;;  %v10132_v23 = vld [vmem:[#allocation24_spill] sm:$0xff] }
 0x6f1   :  { %6097 = vmatmul.mubr.msk.f32.gmra.mrb[54].mxu0 %vm592_vm3, %v1162_v52  ;;  %v9022_v16 = vpop.eup %7384  ;;  %v1166_v55 = vmul.f32 %v7383_v17, %v10124_v50  ;;  %v2568_v9 = vmul.f32 1.442695, %v2544_v31  ;;  %v10131_v50 = vld [vmem:[#allocation35_spill] sm:$0xff]  ;;  %v10136_v31 = vld [vmem:[#allocation34_spill] sm:$0xff] }
 0x6f2   :  { %6722 = vmatpush3.bf16.msra.mxu0 %v6719_v39  ;;  %6099 = vmatprep.mubr.msk.f32.mxu0 %vm592_vm3, %v1163_v43  ;;  %v7387_v27 = vpop.eup %7386  ;;  %v2582_v41 = vmul.f32 1.442695, %v2551_v61  ;;  %v2542_v39 = vsub.f32 %v8731_v21, %v8842_v14  ;;  %v10128_v21 = vld [vmem:[#allocation55_spill] sm:$0xff]  ;;  %v2572_v7 = vmul.f32 1.442695, %v2546_v11 }
 0x6f3   :  { %6724 = vmatprep.subr.bf16.mxu0 %v6723_v38  ;;  %v7389_v58 = vpop.eup %7388  ;;  %v1168_v30 = vmul.f32 %v7387_v27, %v10126_v35  ;;  %v9050_v29 = vpop.xlane.xlu1 %3355  ;;  %v3333_v27 = vmul.f32 0.17677669, %v8890_v22 }
 0x6f4   :  { %2592 = vadd.xlane.f32.xlu1 %v9012_v47  ;;  %v1169_v43 = vmul.f32 %v7389_v58, %v10127_v15  ;;  %7398 = vpow2.f32 %v2582_v41  ;;  %v2564_v48 = vmul.f32 1.442695, %v2542_v39 }
 0x6f5   :  { %6100 = vmatmul.mubr.msk.f32.gmra.mrb[56].mxu0 %vm592_vm3, %v1164_v24 }
 0x6f6   :  { %6726 = vmatpush3.bf16.msra.mxu0 %v6723_v38  ;;  %6102 = vmatprep.mubr.msk.f32.mxu0 %vm592_vm3, %v1165_v19  ;;  %v7391_v2 = vpop.eup %7390  ;;  %7400 = vpow2.f32 %v2564_v48 }
 0x6f7   :  { %6728 = vmatprep.subr.bf16.mxu0 %v6727_v34  ;;  %v7393_v52 = vpop.eup %7392  ;;  %7402 = vpow2.f32 %v2568_v9  ;;  %v10138_v9 = vld [vmem:[#allocation41_spill] sm:$0xff] }
 0x6f8   :  { %2598 = vadd.xlane.f32.xlu1 %v9022_v16  ;;  %v7395_v38 = vpop.eup %7394  ;;  %v1170_v14 = vmul.f32 %v7393_v52, %v10128_v21  ;;  %7404 = vpow2.f32 %v2572_v7  ;;  %v3387_v11 = vsub.f32 %v10138_v9, %v9050_v29 }
 0x6f9   :  { %6103 = vmatmul.mubr.msk.f32.gmra.mrb[58].mxu0 %vm592_vm3, %v1166_v55 }
 0x6fa   :  { %6730 = vmatpush3.bf16.msra.mxu0 %v6727_v34  ;;  %6105 = vmatprep.mubr.msk.f32.mxu0 %vm592_vm3, %v1167_v36  ;;  %v7397_v57 = vpop.eup %7396  ;;  %v10133_v36 = vld [vmem:[#allocation36_spill] sm:$0xff] }
 0x6fb   :  { %6732 = vmatprep.subr.bf16.mxu0 %v6731_v1 }
 0x6fc   :  { %2602 = vadd.xlane.f32.xlu1 %v7391_v2 }
 0x6fd   :  { %6106 = vmatmul.mubr.msk.f32.gmra.mrb[60].mxu0 %vm592_vm3, %v1168_v30 }
 0x6fe   :  { %6734 = vmatpush3.bf16.msra.mxu0 %v6731_v1  ;;  %6108 = vmatprep.mubr.msk.f32.mxu0 %vm592_vm3, %v1169_v43  ;;  %v7399_v5 = vpop.eup %7398  ;;  %v9077_v1 = vadd.f32 %v3333_v27, %v10133_v36  ;;  %v10134_v43 = vld [vmem:[#allocation27_spill] sm:$0xff] }
 0x6ff   :  { %6736 = vmatprep.subr.bf16.mxu0 %v6735_v18 }
 0x700   :  { %2606 = vadd.xlane.f32.xlu1 %v7395_v38  ;;  %v7401_v54 = vpop.eup %7400 }
 0x701   :  { %6109 = vmatmul.mubr.msk.f32.gmra.mrb[62].mxu0 %vm592_vm3, %v1170_v14  ;;  %v3334_v14 = vmul.f32 0.17677669, %v8887_v63 }
 0x702   :  { %6738 = vmatpush3.bf16.msra.mxu0 %v6735_v18  ;;  %6199 = vmatprep.mubr.f32.mxu0 %v8945_v42  ;;  %v2548_v42 = vsub.f32 %v8793_v0, %v9004_v53  ;;  %v7217_v53 = vpop.permute.xlu1 %7216 }
 0x703   :  { %7231 = vrot.lane.b32.xlu0 %v7831_v26, %s7610_s13  ;;  %6223 = vmatprep.subr.mxu0 %v39_v40  ;;  %v7219_v56 = vunpack.i.h.bf16 %v7217_v53  ;;  %v7218_v46 = vunpack.i.l.bf16 %v7217_v53  ;;  %v10141_v53 = vld [vmem:[#allocation40_spill] sm:$0xff] }
 0x704   :  { %2610 = vadd.xlane.f32.xlu1 %v7397_v57  ;;  %v2576_v26 = vmul.f32 1.442695, %v2548_v42  ;;  %v3403_v42 = vmul.f32 1.442695, %v3387_v11 }
 0x705   :  { %6200 = vmatmul.mubr.f32.vlgmr.msra.gmra.mrb[64].mxu0 %v8934_v12  ;;  %v9062_v34 = vpack.c.bf16 %v7219_v56, %v7218_v46 }
 0x706   :  { %6202 = vmatprep.mubr.f32.mxu0 %v8981_v51  ;;  %6224 = vmatpush3.msra.mxu0 %v39_v40  ;;  %7406 = vpow2.f32 %v2576_v26  ;;  %v7403_v51 = vpop.eup %7402  ;;  %v10137_v40 = vld [vmem:[#allocation43_spill] sm:$0xff] }
 0x707   :  { %v7405_v19 = vpop.eup %7404 }
 0x708   :  { %2614 = vadd.xlane.f32.xlu1 %v7399_v5 }
 0x709   :  { %6203 = vmatmul.mubr.f32.gmra.mrb[66].mxu0 %v8961_v25 }
 0x70a   :  { %6205 = vmatprep.mubr.f32.mxu0 %v9012_v47 }
 0x70d   :  { %6206 = vmatmul.mubr.f32.gmra.mrb[68].mxu0 %v8998_v3 }
 0x70e   :  { %6208 = vmatprep.mubr.f32.mxu0 %v7401_v54 }
 0x710   :  { %v2533_v12 = vpop.xlane.xlu0 %2532  ;;  %v7407_v61 = vpop.eup %7406 }
 0x711   :  { %v2550_v24 = vsub.f32 %v10129_v6, %v2533_v12  ;;  %6209 = vmatmul.mubr.f32.gmra.mrb[70].mxu0 %v9022_v16  ;;  %v9055_v0 = vpop.f32.mrb[78].mxu1  ;;  %v3331_v16 = vmul.f32 0.17677669, %v10130_v59  ;;  %v10140_v6 = vld [vmem:[#allocation30_spill] sm:$0xff] }
 0x712   :  { %6211 = vmatprep.mubr.f32.mxu0 %v7403_v51  ;;  %v9057_v25 = vpop.f32.mrb[79].mxu1 }
 0x713   :  { %v2580_v47 = vmul.f32 1.442695, %v2550_v24  ;;  %v9070_v55 = vadd.f32 %v3331_v16, %v10131_v50  ;;  %v3337_v12 = vmul.f32 0.17677669, %v9057_v25 }
 0x714   :  { %v7212_v33 = vpop.permute.xlu0 %7211 }
 0x715   :  { %7408 = vpow2.f32 %v2580_v47  ;;  %v7214_v4 = vunpack.i.h.bf16 %v7212_v33  ;;  %v7213_v3 = vunpack.i.l.bf16 %v7212_v33  ;;  %6212 = vmatmul.mubr.f32.gmra.mrb[72].mxu0 %v7391_v2  ;;  %v9114_v47 = vadd.f32 %v3337_v12, %v10141_v53 }
 0x716   :  { %6214 = vmatprep.mubr.f32.mxu0 %v7405_v19  ;;  %7410 = vpow2.f32 %v3403_v42 }
 0x717   :  { %v9059_v32 = vpack.c.bf16 %v7214_v4, %v7213_v3 }
 0x719   :  { %6215 = vmatmul.mubr.f32.gmra.mrb[74].mxu0 %v7395_v38  ;;  %6788 = vmatprep.subr.bf16.mxu0 %v9059_v32  ;;  %v10135_v38 = vld [vmem:[#allocation28_spill] sm:$0xff] }
 0x71a   :  { %6851 = vmatprep.subr.bf16.mxu1 %v9059_v32  ;;  %6217 = vmatprep.mubr.f32.mxu0 %v7407_v61  ;;  %v3332_v48 = vmul.f32 0.17677669, %v10135_v38 }
 0x71b   :  { %6859 = vmatpush3.bf16.msra.mxu1 %v9059_v32 }
 0x71c   :  { %6852 = vmatprep.subr.bf16.mxu1 %v9062_v34  ;;  %v9091_v21 = vadd.f32 %v3332_v48, %v10136_v31 }
 0x71d   :  { %6218 = vmatmul.mubr.f32.gmra.mrb[76].mxu0 %v7397_v57  ;;  %v9097_v57 = vadd.f32 %v3334_v14, %v10137_v40 }
 0x71f   :  { %v7409_v17 = vpop.eup %7408  ;;  %6860 = vmatpush3.bf16.msra.mxu1 %v9062_v34 }
 0x720   :  { %2612 = vadd.xlane.f32.xlu1 %v7409_v17  ;;  %6220 = vmatprep.mubr.f32.mxu0 %v7409_v17  ;;  %v9127_v56 = vpop.eup %7410 }
 0x721   :  { %6221 = vmatmul.mubr.f32.gmra.mrb[78].mxu0 %v7399_v5  ;;  %v3335_v5 = vmul.f32 0.17677669, %v8976_v8  ;;  %v3338_v8 = vmul.f32 0.17677669, %v9055_v0 }
 0x722   :  { %2596 = vadd.xlane.f32.xlu0 %v7401_v54  ;;  %v10139_v54 = vld [vmem:[#allocation38_spill] sm:$0xff] }
 0x723   :  { %v9105_v63 = vadd.f32 %v3335_v5, %v10139_v54 }
 0x726   :  { %2600 = vadd.xlane.f32.xlu0 %v7403_v51 }
 0x728   :  { %v3360_v58 = vpop.xlane.xlu1 %3359 }
 0x729   :  { %v3389_v29 = vsub.f32 %v8856_v44, %v3360_v58 }
 0x72a   :  { %2604 = vadd.xlane.f32.xlu0 %v7405_v19  ;;  %v10142_v19 = vld [vmem:[#allocation39_spill] sm:$0xff] }
 0x72b   :  { %v3407_v25 = vmul.f32 1.442695, %v3389_v29  ;;  %v9121_v4 = vadd.f32 %v3338_v8, %v10142_v19 }
 0x72c   :  { %v3362_v37 = vpop.xlane.xlu1 %3361 }
 0x72d   :  { %v3390_v33 = vsub.f32 %v8864_v60, %v3362_v37 }
 0x72e   :  { %2608 = vadd.xlane.f32.xlu0 %v7407_v61 }
 0x72f   :  { %v3409_v44 = vmul.f32 1.442695, %v3390_v33 }
 0x730   :  { %v3364_v49 = vpop.xlane.xlu1 %3363 }
 0x731   :  { %7236 = vrot.lane.b32.xlu1 %v10132_v23, %s7610_s13  ;;  %v3391_v0 = vsub.f32 %v8874_v28, %v3364_v49 }
 0x732   :  { %3371 = vmax.xlane.f32.xlu0 %v9070_v55 }
 0x733   :  { %v3411_v46 = vmul.f32 1.442695, %v3391_v0 }
 0x734   :  { %v7227_v2 = vpop.permute.xlu1 %7226 }
 0x735   :  { %v7229_v35 = vunpack.i.h.bf16 %v7227_v2  ;;  %v7228_v30 = vunpack.i.l.bf16 %v7227_v2 }
 0x736   :  { %3375 = vmax.xlane.f32.xlu0 %v9077_v1 }
 0x737   :  { %v9084_v18 = vpack.c.bf16 %v7229_v35, %v7228_v30  ;;  %v3336_v35 = vmul.f32 0.17677669, %v8970_v45 }
 0x745   :  { %v3358_v41 = vpop.xlane.xlu0 %3357 }
 0x746   :  { %v3388_v26 = vsub.f32 %v8896_v62, %v3358_v41 }
 0x748   :  { %v3405_v24 = vmul.f32 1.442695, %v3388_v26 }
 0x749   :  { %v7222_v39 = vpop.permute.xlu0 %7221 }
 0x74a   :  { %v7224_v52 = vunpack.i.h.bf16 %v7222_v39  ;;  %v7223_v22 = vunpack.i.l.bf16 %v7222_v39  ;;  %7412 = vpow2.f32 %v3405_v24 }
 0x74b   :  { %7414 = vpow2.f32 %v3407_v25 }
 0x74c   :  { %v9080_v15 = vpack.c.bf16 %v7224_v52, %v7223_v22  ;;  %7241 = vrot.lane.b32.xlu0 %v10134_v43, %s7610_s13  ;;  %7416 = vpow2.f32 %v3409_v44  ;;  %v10143_v52 = vld [vmem:[#allocation37_spill] sm:$0xff] }
 0x74d   :  { %7418 = vpow2.f32 %v3411_v46  ;;  %v9158_v22 = vadd.f32 %v3336_v35, %v10143_v52 }
 0x74e   :  { %6853 = vmatprep.subr.bf16.mxu1 %v9080_v15 }
 0x74f   :  { %6861 = vmatpush3.bf16.msra.mxu1 %v9080_v15 }
 0x750   :  { %6854 = vmatprep.subr.bf16.mxu1 %v9084_v18 }
 0x753   :  { %6862 = vmatpush3.bf16.msra.mxu1 %v9084_v18 }
 0x754   :  { %v9133_v17 = vpop.eup %7412 }
 0x755   :  { %3373 = vmax.xlane.f32.xlu1 %v9091_v21  ;;  %v9136_v50 = vpop.eup %7414 }
 0x756   :  { %v9144_v37 = vpop.eup %7416 }
 0x759   :  { %3377 = vmax.xlane.f32.xlu1 %v9097_v57 }
 0x765   :  { %v3368_v7 = vpop.xlane.xlu1 %3367 }
 0x766   :  { %v3393_v60 = vsub.f32 %v8917_v10, %v3368_v7 }
 0x768   :  { %v3415_v16 = vmul.f32 1.442695, %v3393_v60 }
 0x769   :  { %v3370_v51 = vpop.xlane.xlu1 %3369 }
 0x76a   :  { %7246 = vrot.lane.b32.xlu1 %v10140_v6, %s7610_s13  ;;  %7420 = vpow2.f32 %v3415_v16  ;;  %v3394_v49 = vsub.f32 %v8925_v20, %v3370_v51 }
 0x76b   :  { %3379 = vmax.xlane.f32.xlu0 %v9105_v63 }
 0x76c   :  { %v3417_v39 = vmul.f32 1.442695, %v3394_v49 }
 0x76d   :  { %v9116_v62 = vpop.xlane.xlu1 %2586 }
 0x76f   :  { %3383 = vmax.xlane.f32.xlu0 %v9114_v47 }
 0x771   :  { %v9123_v3 = vpop.xlane.xlu1 %2584 }
 0x773   :  { %3385 = vmax.xlane.f32.xlu0 %v9121_v4 }
 0x775   :  { %v9131_v61 = vpop.xlane.xlu1 %2590 }
 0x777   :  { %3435 = vadd.xlane.f32.xlu0 %v9127_v56 }
 0x779   :  { %v9138_v27 = vpop.xlane.xlu1 %2588 }
 0x77a   :  { %v3366_v59 = vpop.xlane.xlu0 %3365 }
 0x77b   :  { %3437 = vadd.xlane.f32.xlu0 %v9133_v17  ;;  %v3392_v23 = vsub.f32 %v8985_v13, %v3366_v59  ;;  %v9150_v13 = vpop.eup %7418 }
 0x77c   :  { %v9154_v30 = vpop.eup %7420 }
 0x77d   :  { %v3413_v41 = vmul.f32 1.442695, %v3392_v23  ;;  %v2595_v2 = vpop.xlane.xlu1 %2594 }
 0x77e   :  { %v7232_v28 = vpop.permute.xlu0 %7231 }
 0x77f   :  { %v7234_v36 = vunpack.i.h.bf16 %v7232_v28  ;;  %v7233_v58 = vunpack.i.l.bf16 %v7232_v28  ;;  %3439 = vadd.xlane.f32.xlu0 %v9136_v50  ;;  %7422 = vpow2.f32 %v3413_v41 }
 0x780   :  { %7424 = vpow2.f32 %v3417_v39 }
 0x781   :  { %v9142_v10 = vpack.c.bf16 %v7234_v36, %v7233_v58  ;;  %v2593_v20 = vpop.xlane.xlu1 %2592 }
 0x783   :  { %3441 = vadd.xlane.f32.xlu0 %v9144_v37  ;;  %6855 = vmatprep.subr.bf16.mxu1 %v9142_v10 }
 0x784   :  { %6863 = vmatpush3.bf16.msra.mxu1 %v9142_v10 }
 0x785   :  { %v2599_v38 = vpop.xlane.xlu1 %2598 }
 0x787   :  { %3443 = vadd.xlane.f32.xlu0 %v9150_v13 }
 0x789   :  { %v9161_v43 = vpop.eup %7422  ;;  %v2603_v45 = vpop.xlane.xlu1 %2602 }
 0x78a   :  { %v9164_v48 = vpop.eup %7424 }
 0x78b   :  { %3447 = vadd.xlane.f32.xlu0 %v9154_v30 }
 0x78d   :  { %v9167_v31 = vpop.xlane.xlu1 %2606 }
 0x78e   :  { %3381 = vmax.xlane.f32.xlu1 %v9158_v22 }
 0x791   :  { %v9169_v14 = vpop.xlane.xlu1 %2610 }
 0x792   :  { %3445 = vadd.xlane.f32.xlu1 %v9161_v43 }
 0x795   :  { %v9171_v40 = vpop.xlane.xlu1 %2614 }
 0x796   :  { %3449 = vadd.xlane.f32.xlu1 %v9164_v48 }
 0x7ad   :  { %v9173_v9 = vpop.xlane.xlu1 %2612 }
 0x7af   :  { %v2597_v11 = vpop.xlane.xlu0 %2596 }
 0x7b1   :  { %v7237_v5 = vpop.permute.xlu1 %7236 }
 0x7b2   :  { %v7239_v7 = vunpack.i.h.bf16 %v7237_v5  ;;  %v7238_v42 = vunpack.i.l.bf16 %v7237_v5 }
 0x7b3   :  { %v2601_v26 = vpop.xlane.xlu0 %2600 }
 0x7b4   :  { %v9175_v54 = vpack.c.bf16 %v7239_v7, %v7238_v42 }
 0x7b6   :  { %6856 = vmatprep.subr.bf16.mxu1 %v9175_v54 }
 0x7b7   :  { %v2605_v12 = vpop.xlane.xlu0 %2604  ;;  %6864 = vmatpush3.bf16.msra.mxu1 %v9175_v54 }
 0x7bb   :  { %v9179_v51 = vpop.xlane.xlu0 %2608 }
 0x7bf   :  { %v3372_v6 = vpop.xlane.xlu0 %3371 }
 0x7c0   :  { %v3395_v29 = vsub.f32 %v9070_v55, %v3372_v6 }
 0x7c2   :  { %v3419_v24 = vmul.f32 1.442695, %v3395_v29 }
 0x7c3   :  { %v3376_v8 = vpop.xlane.xlu0 %3375 }
 0x7c4   :  { %7426 = vpow2.f32 %v3419_v24  ;;  %v3397_v53 = vsub.f32 %v9077_v1, %v3376_v8 }
 0x7c6   :  { %v3423_v25 = vmul.f32 1.442695, %v3397_v53 }
 0x7c7   :  { %v7242_v33 = vpop.permute.xlu0 %7241 }
 0x7c8   :  { %7428 = vpow2.f32 %v3423_v25  ;;  %v7244_v19 = vunpack.i.h.bf16 %v7242_v33  ;;  %v7243_v44 = vunpack.i.l.bf16 %v7242_v33 }
 0x7c9   :  { %7430 = vrcp.f32 %v9123_v3 }
 0x7ca   :  { %v9183_v0 = vpack.c.bf16 %v7244_v19, %v7243_v44  ;;  %7432 = vrcp.f32 %v9116_v62 }
 0x7cb   :  { %7434 = vrcp.f32 %v9138_v27 }
 0x7cc   :  { %6857 = vmatprep.subr.bf16.mxu1 %v9183_v0  ;;  %7436 = vrcp.f32 %v9131_v61 }
 0x7cd   :  { %6865 = vmatpush3.bf16.msra.mxu1 %v9183_v0  ;;  %7438 = vrcp.f32 %v2593_v20 }
 0x7ce   :  { %v9187_v46 = vpop.eup %7426  ;;  %7440 = vrcp.f32 %v2595_v2 }
 0x7cf   :  { %3451 = vadd.xlane.f32.xlu0 %v9187_v46  ;;  %7442 = vrcp.f32 %v2599_v38 }
 0x7d0   :  { %7444 = vrcp.f32 %v2597_v11 }
 0x7d1   :  { %7446 = vrcp.f32 %v2603_v45 }
 0x7d2   :  { %v7429_v55 = vpop.eup %7428  ;;  %7448 = vrcp.f32 %v2601_v26 }
 0x7d3   :  { %3455 = vadd.xlane.f32.xlu0 %v7429_v55  ;;  %6352 = vmatprep.mubr.f32.mxu1 %v7429_v55  ;;  %v7431_v60 = vpop.eup %7430  ;;  %7450 = vrcp.f32 %v9167_v31 }
 0x7d4   :  { %v7433_v16 = vpop.eup %7432  ;;  %7452 = vrcp.f32 %v2605_v12 }
 0x7d5   :  { %v7435_v62 = vpop.eup %7434  ;;  %7454 = vrcp.f32 %v9169_v14 }
 0x7d6   :  { %v7437_v27 = vpop.eup %7436  ;;  %7456 = vrcp.f32 %v9179_v51 }
 0x7d7   :  { %v7439_v41 = vpop.eup %7438 }
 0x7d8   :  { %v6201_v1 = vpop.f32.mrb[64].mxu0  ;;  %v7441_v39 = vpop.eup %7440 }
 0x7d9   :  { %v2746_v59 = vpop.f32.mrb[65].mxu0  ;;  %v2826_v3 = vmul.f32 %v7433_v16, %v6201_v1  ;;  %v7443_v38 = vpop.eup %7442 }
 0x7da   :  { %v2825_v28 = vmul.f32 %v7431_v60, %v2746_v59  ;;  %v7445_v11 = vpop.eup %7444 }
 0x7db   :  { %v7447_v26 = vpop.eup %7446 }
 0x7dc   :  { %v6204_v23 = vpop.f32.mrb[66].mxu0  ;;  %6225 = vmatprep.mubr.msk.f32.mxu0 %vm592_vm3, %v2825_v28  ;;  %v7449_v14 = vpop.eup %7448 }
 0x7dd   :  { %v2756_v36 = vpop.f32.mrb[67].mxu0  ;;  %6226 = vmatmul.mubr.msk.f32.vlgmr.msra.gmra.mrb[48].mxu0 %vm592_vm3, %v2826_v3  ;;  %v2828_v58 = vmul.f32 %v7437_v27, %v6204_v23  ;;  %v7451_v53 = vpop.eup %7450 }
 0x7de   :  { %v2827_v61 = vmul.f32 %v7435_v62, %v2756_v36  ;;  %6790 = vmatpush3.bf16.msra.mxu0 %v9059_v32 }
 0x7df   :  { %6792 = vmatprep.subr.bf16.mxu0 %v9062_v34 }
 0x7e0   :  { %v6207_v49 = vpop.f32.mrb[68].mxu0  ;;  %6228 = vmatprep.mubr.msk.f32.mxu0 %vm592_vm3, %v2827_v61 }
 0x7e1   :  { %v2766_v2 = vpop.f32.mrb[69].mxu0  ;;  %6229 = vmatmul.mubr.msk.f32.gmra.mrb[50].mxu0 %vm592_vm3, %v2828_v58  ;;  %v2830_v32 = vmul.f32 %v7441_v39, %v6207_v49 }
 0x7e2   :  { %v2829_v35 = vmul.f32 %v7439_v41, %v2766_v2  ;;  %6794 = vmatpush3.bf16.msra.mxu0 %v9062_v34  ;;  %v3374_v20 = vpop.xlane.xlu1 %3373 }
 0x7e3   :  { %v3396_v52 = vsub.f32 %v9091_v21, %v3374_v20  ;;  %6796 = vmatprep.subr.bf16.mxu0 %v9080_v15 }
 0x7e4   :  { %v6210_v45 = vpop.f32.mrb[70].mxu0  ;;  %6231 = vmatprep.mubr.msk.f32.mxu0 %vm592_vm3, %v2829_v35 }
 0x7e5   :  { %v3421_v5 = vmul.f32 1.442695, %v3396_v52  ;;  %v2832_v7 = vmul.f32 %v7443_v38, %v6210_v45  ;;  %v2776_v31 = vpop.f32.mrb[71].mxu0  ;;  %6232 = vmatmul.mubr.msk.f32.gmra.mrb[52].mxu0 %vm592_vm3, %v2830_v32 }
 0x7e6   :  { %v2831_v34 = vmul.f32 %v7445_v11, %v2776_v31  ;;  %6798 = vmatpush3.bf16.msra.mxu0 %v9080_v15  ;;  %v3378_v21 = vpop.xlane.xlu1 %3377 }
 0x7e7   :  { %7458 = vpow2.f32 %v3421_v5  ;;  %v3398_v42 = vsub.f32 %v9097_v57, %v3378_v21  ;;  %6800 = vmatprep.subr.bf16.mxu0 %v9084_v18 }
 0x7e8   :  { %v6213_v12 = vpop.f32.mrb[72].mxu0  ;;  %6234 = vmatprep.mubr.msk.f32.mxu0 %vm592_vm3, %v2831_v34  ;;  %7460 = vrcp.f32 %v9171_v40  ;;  %v7453_v40 = vpop.eup %7452 }
 0x7e9   :  { %v3425_v6 = vmul.f32 1.442695, %v3398_v42  ;;  %v2834_v29 = vmul.f32 %v7447_v26, %v6213_v12  ;;  %v2786_v24 = vpop.f32.mrb[73].mxu0  ;;  %6235 = vmatmul.mubr.msk.f32.gmra.mrb[54].mxu0 %vm592_vm3, %v2832_v7  ;;  %7462 = vrcp.f32 %v9173_v9 }
 0x7ea   :  { %v2833_v15 = vmul.f32 %v7449_v14, %v2786_v24  ;;  %6802 = vmatpush3.bf16.msra.mxu0 %v9084_v18  ;;  %v7247_v57 = vpop.permute.xlu1 %7246  ;;  %v7455_v18 = vpop.eup %7454 }
 0x7eb   :  { %7464 = vpow2.f32 %v3425_v6  ;;  %v7249_v51 = vunpack.i.h.bf16 %v7247_v57  ;;  %v7248_v8 = vunpack.i.l.bf16 %v7247_v57  ;;  %6804 = vmatprep.subr.bf16.mxu0 %v9142_v10  ;;  %v7457_v55 = vpop.eup %7456 }
 0x7ec   :  { %v6216_v25 = vpop.f32.mrb[74].mxu0  ;;  %6237 = vmatprep.mubr.msk.f32.mxu0 %vm592_vm3, %v2833_v15 }
 0x7ed   :  { %v6815_v33 = vpack.c.bf16 %v7249_v51, %v7248_v8  ;;  %v2836_v19 = vmul.f32 %v7451_v53, %v6216_v25  ;;  %v2796_v44 = vpop.f32.mrb[75].mxu0  ;;  %6238 = vmatmul.mubr.msk.f32.gmra.mrb[56].mxu0 %vm592_vm3, %v2834_v29 }
 0x7ee   :  { %v2835_v9 = vmul.f32 %v7453_v40, %v2796_v44  ;;  %6806 = vmatpush3.bf16.msra.mxu0 %v9142_v10 }
 0x7ef   :  { %6808 = vmatprep.subr.bf16.mxu0 %v9175_v54  ;;  %6858 = vmatprep.subr.bf16.mxu1 %v6815_v33 }
 0x7f0   :  { %v6219_v1 = vpop.f32.mrb[76].mxu0  ;;  %6240 = vmatprep.mubr.msk.f32.mxu0 %vm592_vm3, %v2835_v9  ;;  %6866 = vmatpush3.bf16.msra.mxu1 %v6815_v33 }
 0x7f1   :  { %v7459_v60 = vpop.eup %7458  ;;  %v2838_v59 = vmul.f32 %v7455_v18, %v6219_v1  ;;  %v2806_v16 = vpop.f32.mrb[77].mxu0  ;;  %6241 = vmatmul.mubr.msk.f32.gmra.mrb[58].mxu0 %vm592_vm3, %v2836_v19 }
 0x7f2   :  { %v2837_v28 = vmul.f32 %v7457_v55, %v2806_v16  ;;  %6810 = vmatpush3.bf16.msra.mxu0 %v9175_v54  ;;  %3453 = vadd.xlane.f32.xlu1 %v7459_v60  ;;  %v7461_v3 = vpop.eup %7460 }
 0x7f3   :  { %6812 = vmatprep.subr.bf16.mxu0 %v9183_v0  ;;  %v7463_v10 = vpop.eup %7462 }
 0x7f4   :  { %v6222_v23 = vpop.f32.mrb[78].mxu0  ;;  %6243 = vmatprep.mubr.msk.f32.mxu0 %vm592_vm3, %v2837_v28 }
 0x7f5   :  { %v7465_v62 = vpop.eup %7464  ;;  %v2840_v36 = vmul.f32 %v7461_v3, %v6222_v23  ;;  %v2816_v27 = vpop.f32.mrb[79].mxu0  ;;  %6244 = vmatmul.mubr.msk.f32.gmra.mrb[60].mxu0 %vm592_vm3, %v2838_v59 }
 0x7f6   :  { %v2839_v61 = vmul.f32 %v7463_v10, %v2816_v27  ;;  %6814 = vmatpush3.bf16.msra.mxu0 %v9183_v0  ;;  %3457 = vadd.xlane.f32.xlu1 %v7465_v62 }
 0x7f7   :  { %6816 = vmatprep.subr.bf16.mxu0 %v6815_v33  ;;  %6353 = vmatmul.mubr.f32.vlgmr.msra.gmra.mrb[80].mxu1 %v7465_v62 }
 0x7f8   :  { %v3380_v54 = vpop.xlane.xlu0 %3379  ;;  %6246 = vmatprep.mubr.msk.f32.mxu0 %vm592_vm3, %v2839_v61 }
 0x7f9   :  { %v3399_v58 = vsub.f32 %v9105_v63, %v3380_v54  ;;  %6247 = vmatmul.mubr.msk.f32.gmra.mrb[62].mxu0 %vm592_vm3, %v2840_v36 }
 0x7fa   :  { %6818 = vmatpush3.bf16.msra.mxu0 %v6815_v33  ;;  %6337 = vmatprep.mubr.f32.mxu0 %v9127_v56 }
 0x7fb   :  { %v3427_v49 = vmul.f32 1.442695, %v3399_v58 }
 0x7fc   :  { %v3384_v41 = vpop.xlane.xlu0 %3383 }
 0x7fd   :  { %7466 = vpow2.f32 %v3427_v49  ;;  %v3401_v2 = vsub.f32 %v9114_v47, %v3384_v41  ;;  %6338 = vmatmul.mubr.f32.vlgmr.msra.gmra.mrb[80].mxu0 %v9133_v17 }
 0x7fe   :  { %6340 = vmatprep.mubr.f32.mxu0 %v9136_v50 }
 0x7ff   :  { %v3431_v0 = vmul.f32 1.442695, %v3401_v2 }
 0x800   :  { %v3386_v56 = vpop.xlane.xlu0 %3385 }
 0x801   :  { %7468 = vpow2.f32 %v3431_v0  ;;  %6341 = vmatmul.mubr.f32.gmra.mrb[82].mxu0 %v9144_v37  ;;  %v3402_v50 = vsub.f32 %v9121_v4, %v3386_v56 }
 0x802   :  { %6343 = vmatprep.mubr.f32.mxu0 %v9150_v13 }
 0x804   :  { %v3436_v39 = vpop.xlane.xlu0 %3435 }
 0x805   :  { %6344 = vmatmul.mubr.f32.gmra.mrb[84].mxu0 %v9161_v43  ;;  %v3433_v43 = vmul.f32 1.442695, %v3402_v50 }
 0x806   :  { %6346 = vmatprep.mubr.f32.mxu0 %v9154_v30 }
 0x807   :  { %v7467_v63 = vpop.eup %7466 }
 0x808   :  { %3459 = vadd.xlane.f32.xlu0 %v7467_v63  ;;  %6355 = vmatprep.mubr.f32.mxu1 %v7467_v63  ;;  %v3438_v35 = vpop.xlane.xlu0 %3437 }
 0x809   :  { %6347 = vmatmul.mubr.f32.gmra.mrb[86].mxu0 %v9164_v48 }
 0x80a   :  { %6349 = vmatprep.mubr.f32.mxu0 %v9187_v46  ;;  %v40_v46 = vld [vmem:[#allocation2 + $0x98] sm:$0xff] }
 0x80b   :  { %v7469_v47 = vpop.eup %7468  ;;  %6361 = vmatprep.subr.mxu0 %v40_v46 }
 0x80c   :  { %3463 = vadd.xlane.f32.xlu0 %v7469_v47  ;;  %6362 = vmatpush3.msra.mxu0 %v40_v46  ;;  %v3440_v20 = vpop.xlane.xlu0 %3439 }
 0x80d   :  { %6350 = vmatmul.mubr.f32.gmra.mrb[88].mxu0 %v7459_v60 }
 0x810   :  { %v3442_v4 = vpop.xlane.xlu0 %3441 }
 0x814   :  { %v3444_v32 = vpop.xlane.xlu0 %3443 }
 0x818   :  { %v3448_v45 = vpop.xlane.xlu0 %3447 }
 0x81b   :  { %v3382_v17 = vpop.xlane.xlu1 %3381 }
 0x81c   :  { %v3400_v37 = vsub.f32 %v9158_v22, %v3382_v17 }
 0x81e   :  { %v3429_v13 = vmul.f32 1.442695, %v3400_v37 }
 0x81f   :  { %v3446_v22 = vpop.xlane.xlu1 %3445 }
 0x820   :  { %7470 = vpow2.f32 %v3429_v13 }
 0x821   :  { %7472 = vpow2.f32 %v3433_v43 }
 0x822   :  { %7474 = vrcp.f32 %v3436_v39  ;;  %v10144_v39 = vld [vmem:[#allocation5_spill] sm:$0xff] }
 0x823   :  { %7476 = vrcp.f32 %v3438_v35  ;;  %v3450_v11 = vpop.xlane.xlu1 %3449  ;;  %v3903_v35 = vsub.s32 2, %v10144_v39 }
 0x824   :  { %7478 = vrcp.f32 %v3440_v20  ;;  %v9263_v20 = vld [vmem:[%s9947_s2] sm:$0xff] }
 0x825   :  { %7480 = vrcp.f32 %v3442_v4  ;;  %v9266_v4 = vrot.slane %v9263_v20, %v3903_v35 }
 0x826   :  { %7482 = vrcp.f32 %v3444_v32 }
 0x827   :  { %7484 = vrcp.f32 %v3446_v22 }
 0x828   :  { %7486 = vrcp.f32 %v3448_v45  ;;  %v10145_v45 = vld [vmem:[#allocation7_spill] sm:$0xff] }
 0x829   :  { %7488 = vrcp.f32 %v3450_v11 }
 0x82a   :  { %v7471_v30 = vpop.eup %7470 }
 0x82b   :  { %3461 = vadd.xlane.f32.xlu1 %v7471_v30  ;;  %6356 = vmatmul.mubr.f32.gmra.mrb[82].mxu1 %v7471_v30  ;;  %v7473_v48 = vpop.eup %7472 }
 0x82c   :  { %6358 = vmatprep.mubr.f32.mxu1 %v7469_v47  ;;  %v7475_v31 = vpop.eup %7474 }
 0x82d   :  { %v7477_v21 = vpop.eup %7476 }
 0x82e   :  { %v7479_v6 = vpop.eup %7478 }
 0x82f   :  { %3465 = vadd.xlane.f32.xlu1 %v7473_v48  ;;  %6359 = vmatmul.mubr.f32.gmra.mrb[84].mxu1 %v7473_v48  ;;  %v7481_v24 = vpop.eup %7480 }
 0x830   :  { %v7483_v53 = vpop.eup %7482 }
 0x831   :  { %v7485_v33 = vpop.eup %7484 }
 0x832   :  { %v7487_v18 = vpop.eup %7486 }
 0x833   :  { %v7489_v1 = vpop.eup %7488 }
 0x85c   :  { %v3452_v5 = vpop.xlane.xlu0 %3451 }
 0x85d   :  { %7490 = vrcp.f32 %v3452_v5  ;;  %v10146_v5 = vld [vmem:[#allocation6_spill] sm:$0xff] }
 0x860   :  { %v3456_v15 = vpop.xlane.xlu0 %3455 }
 0x867   :  { %v7491_v28 = vpop.eup %7490 }
 0x87f   :  { %v3454_v26 = vpop.xlane.xlu1 %3453 }
 0x880   :  { %7492 = vrcp.f32 %v3454_v26 }
 0x881   :  { %7494 = vrcp.f32 %v3456_v15 }
 0x883   :  { %v3458_v25 = vpop.xlane.xlu1 %3457 }
 0x884   :  { %7496 = vrcp.f32 %v3458_v25 }
 0x88a   :  { %v7493_v10 = vpop.eup %7492 }
 0x88b   :  { %v7495_v62 = vpop.eup %7494 }
 0x88e   :  { %v7497_v61 = vpop.eup %7496 }
 0x895   :  { %v3460_v58 = vpop.xlane.xlu0 %3459 }
 0x896   :  { %7498 = vrcp.f32 %v3460_v58  ;;  %v10153_v58 = vld [vmem:[#allocation14_spill] sm:$0xff] }
 0x899   :  { %v3464_v41 = vpop.xlane.xlu0 %3463 }
 0x8a0   :  { %v7499_v63 = vpop.eup %7498 }
 0x8b8   :  { %v3462_v49 = vpop.xlane.xlu1 %3461 }
 0x8b9   :  { %7500 = vrcp.f32 %v3462_v49 }
 0x8ba   :  { %7502 = vrcp.f32 %v3464_v41  ;;  %v10154_v41 = vld [vmem:[#allocation15_spill] sm:$0xff] }
 0x8bc   :  { %v3466_v2 = vpop.xlane.xlu1 %3465 }
 0x8bd   :  { %7504 = vrcp.f32 %v3466_v2 }
 0x8c3   :  { %v7501_v56 = vpop.eup %7500 }
 0x8c4   :  { %v7503_v13 = vpop.eup %7502 }
 0x8c7   :  { %v7505_v30 = vpop.eup %7504 }
 0x8ca   :  { %v6354_v52 = vpop.f32.mrb[80].mxu1 }
 0x8cb   :  { %v3647_v38 = vpop.f32.mrb[81].mxu1  ;;  %v3687_v54 = vmul.f32 %v7497_v61, %v6354_v52 }
 0x8cc   :  { %v3686_v27 = vmul.f32 %v7495_v62, %v3647_v38 }
 0x8d0   :  { %v6339_v7 = vpop.f32.mrb[80].mxu0 }
 0x8d1   :  { %v3597_v34 = vpop.f32.mrb[81].mxu0  ;;  %v3677_v12 = vmul.f32 %v7477_v21, %v6339_v7 }
 0x8d2   :  { %v3676_v42 = vmul.f32 %v7475_v31, %v3597_v34 }
 0x8d4   :  { %v6342_v14 = vpop.f32.mrb[82].mxu0  ;;  %6363 = vmatprep.mubr.msk.f32.mxu0 %vm592_vm3, %v3676_v42 }
 0x8d5   :  { %v3607_v29 = vpop.f32.mrb[83].mxu0  ;;  %6364 = vmatmul.mubr.msk.f32.vlgmr.msra.gmra.mrb[48].mxu0 %vm592_vm3, %v3677_v12  ;;  %v3679_v51 = vmul.f32 %v7481_v24, %v6342_v14  ;;  %v10147_v14 = vld [vmem:[#allocation8_spill] sm:$0xff] }
 0x8d6   :  { %v3678_v57 = vmul.f32 %v7479_v6, %v3607_v29  ;;  %v10148_v29 = vld [vmem:[#allocation9_spill] sm:$0xff] }
 0x8d8   :  { %v6345_v8 = vpop.f32.mrb[84].mxu0  ;;  %6366 = vmatprep.mubr.msk.f32.mxu0 %vm592_vm3, %v3678_v57 }
 0x8d9   :  { %v3617_v40 = vpop.f32.mrb[85].mxu0  ;;  %6367 = vmatmul.mubr.msk.f32.gmra.mrb[50].mxu0 %vm592_vm3, %v3679_v51  ;;  %v3681_v44 = vmul.f32 %v7485_v33, %v6345_v8 }
 0x8da   :  { %v3680_v19 = vmul.f32 %v7483_v53, %v3617_v40  ;;  %v10149_v40 = vld [vmem:[#allocation10_spill] sm:$0xff] }
 0x8dc   :  { %v6348_v9 = vpop.f32.mrb[86].mxu0  ;;  %6369 = vmatprep.mubr.msk.f32.mxu0 %vm592_vm3, %v3680_v19  ;;  %v10150_v19 = vld [vmem:[#allocation11_spill] sm:$0xff] }
 0x8dd   :  { %v3627_v55 = vpop.f32.mrb[87].mxu0  ;;  %6370 = vmatmul.mubr.msk.f32.gmra.mrb[52].mxu0 %vm592_vm3, %v3681_v44  ;;  %v3683_v59 = vmul.f32 %v7489_v1, %v6348_v9 }
 0x8de   :  { %v3682_v60 = vmul.f32 %v7487_v18, %v3627_v55 }
 0x8e0   :  { %v6351_v16 = vpop.f32.mrb[88].mxu0  ;;  %6372 = vmatprep.mubr.msk.f32.mxu0 %vm592_vm3, %v3682_v60 }
 0x8e1   :  { %v3637_v3 = vpop.f32.mrb[89].mxu0  ;;  %6373 = vmatmul.mubr.msk.f32.gmra.mrb[54].mxu0 %vm592_vm3, %v3683_v59  ;;  %v3685_v36 = vmul.f32 %v7493_v10, %v6351_v16  ;;  %v10151_v16 = vld [vmem:[#allocation12_spill] sm:$0xff] }
 0x8e2   :  { %v3684_v23 = vmul.f32 %v7491_v28, %v3637_v3  ;;  %v10152_v3 = vld [vmem:[#allocation13_spill] sm:$0xff] }
 0x8e4   :  { %6375 = vmatprep.mubr.msk.f32.mxu0 %vm592_vm3, %v3684_v23 }
 0x8e5   :  { %6376 = vmatmul.mubr.msk.f32.gmra.mrb[56].mxu0 %vm592_vm3, %v3685_v36 }
 0x8e6   :  { %6378 = vmatprep.mubr.msk.f32.mxu0 %vm592_vm3, %v3686_v27 }
 0x8e9   :  { %6379 = vmatmul.mubr.msk.f32.gmra.mrb[58].mxu0 %vm592_vm3, %v3687_v54 }
 0x8fe   :  { %v6357_v0 = vpop.f32.mrb[82].mxu1 }
 0x8ff   :  { %v3657_v47 = vpop.f32.mrb[83].mxu1  ;;  %v3689_v50 = vmul.f32 %v7501_v56, %v6357_v0 }
 0x900   :  { %v3688_v17 = vmul.f32 %v7499_v63, %v3657_v47 }
 0x902   :  { %v6360_v37 = vpop.f32.mrb[84].mxu1  ;;  %6381 = vmatprep.mubr.msk.f32.mxu0 %vm592_vm3, %v3688_v17 }
 0x903   :  { %v3667_v43 = vpop.f32.mrb[85].mxu1  ;;  %6382 = vmatmul.mubr.msk.f32.gmra.mrb[60].mxu0 %vm592_vm3, %v3689_v50  ;;  %v3691_v46 = vmul.f32 %v7505_v30, %v6360_v37  ;;  %v10155_v37 = vld [vmem:[#allocation16_spill] sm:$0xff] }
 0x904   :  { %v3690_v48 = vmul.f32 %v7503_v13, %v3667_v43  ;;  %v10156_v43 = vld [vmem:[#allocation17_spill] sm:$0xff] }
 0x906   :  { %6384 = vmatprep.mubr.msk.f32.mxu0 %vm592_vm3, %v3690_v48 }
 0x907   :  { %6385 = vmatmul.mubr.msk.f32.gmra.mrb[62].mxu0 %vm592_vm3, %v3691_v46  ;;  %vm4403_vm3 = vcmask 523264  }
 0x9a8   :  { %v6365_v32 = vpop.f32.mrb[48].mxu0 }
 0x9a9   :  { %v3906_v22 = vadd.f32 %v6365_v32, %v9266_v4  ;;  %v3806_v52 = vpop.f32.mrb[49].mxu0 }
 0x9aa   :  { %v3905_v38 = vadd.f32 %v9266_v4, %v3806_v52 }
 0x9ab   :  { %v9271_v11 = vadd.f32 %v3906_v22, %v10145_v45 }
 0x9ac   :  { %v9274_v7 = vadd.f32 %v3905_v38, %v10146_v5  ;;  %v6368_v31 = vpop.f32.mrb[50].mxu0  ;;  %v10157_v38 = vld [vmem:[#allocation18_spill] sm:$0xff]  ;;  %v10158_v5 = vld [vmem:[#allocation19_spill] sm:$0xff] }
 0x9ad   :  { %v3908_v34 = vadd.f32 %v6368_v31, %v9266_v4  ;;  %v3816_v21 = vpop.f32.mrb[51].mxu0  ;;  %v3940_v42 = vsel %vm282_vm2, %v9271_v11, 0.0 }
 0x9ae   :  { %v3907_v26 = vadd.f32 %v9266_v4, %v3816_v21  ;;  %3941 = vadd.xlane.f32.xlu1 %v3940_v42  ;;  %v3937_v12 = vsel %vm282_vm2, %v9274_v7, 0.0 }
 0x9af   :  { %v9283_v6 = vadd.f32 %v3908_v34, %v10147_v14  ;;  %3938 = vadd.xlane.f32.xlu0 %v3937_v12 }
 0x9b0   :  { %v9286_v24 = vadd.f32 %v3907_v26, %v10148_v29  ;;  %v6371_v15 = vpop.f32.mrb[52].mxu0  ;;  %v10159_v29 = vld [vmem:[#allocation20_spill] sm:$0xff] }
 0x9b1   :  { %v3910_v57 = vadd.f32 %v6371_v15, %v9266_v4  ;;  %v3826_v51 = vpop.f32.mrb[53].mxu0  ;;  %v3946_v8 = vsel %vm282_vm2, %v9283_v6, 0.0 }
 0x9b2   :  { %v3909_v53 = vadd.f32 %v9266_v4, %v3826_v51  ;;  %3947 = vadd.xlane.f32.xlu1 %v3946_v8  ;;  %v3943_v25 = vsel %vm282_vm2, %v9286_v24, 0.0 }
 0x9b3   :  { %v9295_v33 = vadd.f32 %v3910_v57, %v10149_v40  ;;  %3944 = vadd.xlane.f32.xlu0 %v3943_v25  ;;  %v10160_v57 = vld [vmem:[#allocation21_spill] sm:$0xff] }
 0x9b4   :  { %v9298_v44 = vadd.f32 %v3909_v53, %v10150_v19  ;;  %v6374_v9 = vpop.f32.mrb[54].mxu0 }
 0x9b5   :  { %v3912_v18 = vadd.f32 %v6374_v9, %v9266_v4  ;;  %v3836_v55 = vpop.f32.mrb[55].mxu0  ;;  %v3952_v1 = vsel %vm282_vm2, %v9295_v33, 0.0 }
 0x9b6   :  { %v3911_v60 = vadd.f32 %v9266_v4, %v3836_v55  ;;  %3953 = vadd.xlane.f32.xlu1 %v3952_v1  ;;  %v3949_v59 = vsel %vm282_vm2, %v9298_v44, 0.0 }
 0x9b7   :  { %v9307_v28 = vadd.f32 %v3912_v18, %v10151_v16  ;;  %3950 = vadd.xlane.f32.xlu0 %v3949_v59 }
 0x9b8   :  { %v9310_v10 = vadd.f32 %v3911_v60, %v10152_v3  ;;  %v6377_v23 = vpop.f32.mrb[56].mxu0 }
 0x9b9   :  { %v3914_v62 = vadd.f32 %v6377_v23, %v9266_v4  ;;  %v3846_v36 = vpop.f32.mrb[57].mxu0  ;;  %v3958_v27 = vsel %vm282_vm2, %v9307_v28, 0.0 }
 0x9ba   :  { %v3913_v61 = vadd.f32 %v9266_v4, %v3846_v36  ;;  %3959 = vadd.xlane.f32.xlu1 %v3958_v27  ;;  %v3955_v54 = vsel %vm282_vm2, %v9310_v10, 0.0 }
 0x9bb   :  { %v9319_v49 = vadd.f32 %v3914_v62, %v10153_v58  ;;  %3956 = vadd.xlane.f32.xlu0 %v3955_v54 }
 0x9bc   :  { %v9322_v2 = vadd.f32 %v3913_v61, %v10154_v41  ;;  %v6380_v0 = vpop.f32.mrb[58].mxu0 }
 0x9bd   :  { %v3916_v63 = vadd.f32 %v6380_v0, %v9266_v4  ;;  %v3856_v47 = vpop.f32.mrb[59].mxu0  ;;  %v3964_v56 = vsel %vm282_vm2, %v9319_v49, 0.0 }
 0x9be   :  { %v3915_v17 = vadd.f32 %v9266_v4, %v3856_v47  ;;  %3965 = vadd.xlane.f32.xlu1 %v3964_v56  ;;  %v3961_v50 = vsel %vm282_vm2, %v9322_v2, 0.0 }
 0x9bf   :  { %v9331_v13 = vadd.f32 %v3916_v63, %v10155_v37  ;;  %3962 = vadd.xlane.f32.xlu0 %v3961_v50 }
 0x9c0   :  { %v9334_v30 = vadd.f32 %v3915_v17, %v10156_v43 }
 0x9c1   :  { %v3970_v48 = vsel %vm282_vm2, %v9331_v13, 0.0 }
 0x9c2   :  { %3971 = vadd.xlane.f32.xlu1 %v3970_v48  ;;  %v3967_v46 = vsel %vm282_vm2, %v9334_v30, 0.0 }
 0x9c3   :  { %3968 = vadd.xlane.f32.xlu0 %v3967_v46 }
 0x9d6   :  { %v6383_v35 = vpop.f32.mrb[60].mxu0 }
 0x9d7   :  { %v3918_v32 = vadd.f32 %v6383_v35, %v9266_v4  ;;  %v3866_v22 = vpop.f32.mrb[61].mxu0 }
 0x9d8   :  { %v3917_v52 = vadd.f32 %v9266_v4, %v3866_v22 }
 0x9d9   :  { %v9343_v45 = vadd.f32 %v3918_v32, %v10157_v38 }
 0x9da   :  { %v9346_v31 = vadd.f32 %v3917_v52, %v10158_v5  ;;  %v6386_v34 = vpop.f32.mrb[62].mxu0 }
 0x9db   :  { %v3920_v21 = vadd.f32 %v6386_v34, %v9266_v4  ;;  %v3876_v42 = vpop.f32.mrb[63].mxu0  ;;  %v3976_v26 = vsel %vm282_vm2, %v9343_v45, 0.0 }
 0x9dc   :  { %v3919_v12 = vadd.f32 %v9266_v4, %v3876_v42  ;;  %3977 = vadd.xlane.f32.xlu1 %v3976_v26  ;;  %v3973_v14 = vsel %vm282_vm2, %v9346_v31, 0.0 }
 0x9dd   :  { %v9355_v15 = vadd.f32 %v3920_v21, %v10159_v29  ;;  %3974 = vadd.xlane.f32.xlu0 %v3973_v14 }
 0x9de   :  { %v9358_v51 = vadd.f32 %v3919_v12, %v10160_v57 }
 0x9df   :  { %v3982_v8 = vsel %vm282_vm2, %v9355_v15, 0.0 }
 0x9e0   :  { %3983 = vadd.xlane.f32.xlu1 %v3982_v8  ;;  %v3979_v53 = vsel %vm282_vm2, %v9358_v51, 0.0 }
 0x9e1   :  { %3980 = vadd.xlane.f32.xlu0 %v3979_v53 }
 0xa3b   :  { %v3942_v4 = vpop.xlane.xlu1 %3941 }
 0xa3c   :  { %v3987_v25 = vmul.f32 0.03125, %v3942_v4  ;;  %v3939_v40 = vpop.xlane.xlu0 %3938 }
 0xa3d   :  { %v3986_v19 = vmul.f32 0.03125, %v3939_v40 }
 0xa3e   :  { %v9365_v9 = vsub.f32 %v9271_v11, %v3987_v25 }
 0xa3f   :  { %v9368_v18 = vsub.f32 %v9274_v7, %v3986_v19  ;;  %v3948_v55 = vpop.xlane.xlu1 %3947  ;;  %v42_v19 = vld [vmem:[#allocation2 + $0xc0] sm:$0xff] }
 0xa40   :  { %v3989_v1 = vmul.f32 0.03125, %v3948_v55  ;;  %v3945_v60 = vpop.xlane.xlu0 %3944  ;;  %v4019_v59 = vmul.f32 %v9365_v9, %v9365_v9  ;;  %v43_v55 = vld [vmem:[#allocation2 + $0xc8] sm:$0xff] }
 0xa41   :  { %v3988_v16 = vmul.f32 0.03125, %v3945_v60  ;;  %v4018_v3 = vmul.f32 %v9368_v18, %v9368_v18  ;;  %v45_v60 = vld [vmem:[#allocation2 + $0xd8] sm:$0xff] }
 0xa42   :  { %v9375_v23 = vsub.f32 %v9283_v6, %v3989_v1  ;;  %v4037_v62 = vsel %vm282_vm2, %v4019_v59, 0.0  ;;  %v44_v1 = vld [vmem:[#allocation2 + $0xd0] sm:$0xff] }
 0xa43   :  { %v9379_v11 = vsub.f32 %v9286_v24, %v3988_v16  ;;  %v3954_v7 = vpop.xlane.xlu1 %3953  ;;  %4038 = vadd.xlane.f32.xlu1 %v4037_v62  ;;  %v4034_v36 = vsel %vm282_vm2, %v4018_v3, 0.0  ;;  %v6823_v59 = vpack.c.bf16 %v45_v60, %v44_v1 }
 0xa44   :  { %v3991_v27 = vmul.f32 0.03125, %v3954_v7  ;;  %v3951_v61 = vpop.xlane.xlu0 %3950  ;;  %4035 = vadd.xlane.f32.xlu0 %v4034_v36  ;;  %v4021_v54 = vmul.f32 %v9375_v23, %v9375_v23 }
 0xa45   :  { %v3990_v58 = vmul.f32 0.03125, %v3951_v61  ;;  %v4020_v6 = vmul.f32 %v9379_v11, %v9379_v11 }
 0xa46   :  { %v9387_v41 = vsub.f32 %v9295_v33, %v3991_v27  ;;  %v4043_v24 = vsel %vm282_vm2, %v4021_v54, 0.0 }
 0xa47   :  { %v9391_v0 = vsub.f32 %v9298_v44, %v3990_v58  ;;  %v3960_v63 = vpop.xlane.xlu1 %3959  ;;  %4044 = vadd.xlane.f32.xlu1 %v4043_v24  ;;  %v4040_v47 = vsel %vm282_vm2, %v4020_v6, 0.0 }
 0xa48   :  { %v3993_v56 = vmul.f32 0.03125, %v3960_v63  ;;  %v3957_v17 = vpop.xlane.xlu0 %3956  ;;  %4041 = vadd.xlane.f32.xlu0 %v4040_v47  ;;  %v4023_v50 = vmul.f32 %v9387_v41, %v9387_v41 }
 0xa49   :  { %v3992_v37 = vmul.f32 0.03125, %v3957_v17  ;;  %v4022_v33 = vmul.f32 %v9391_v0, %v9391_v0 }
 0xa4a   :  { %v9399_v43 = vsub.f32 %v9307_v28, %v3993_v56  ;;  %v4049_v44 = vsel %vm282_vm2, %v4023_v50, 0.0 }
 0xa4b   :  { %v9403_v48 = vsub.f32 %v9310_v10, %v3992_v37  ;;  %v3966_v46 = vpop.xlane.xlu1 %3965  ;;  %4050 = vadd.xlane.f32.xlu1 %v4049_v44  ;;  %v4046_v35 = vsel %vm282_vm2, %v4022_v33, 0.0  ;;  %v47_v33 = vld [vmem:[#allocation2 + $0x100] sm:$0xff]  ;;  %v48_v44 = vld [vmem:[#allocation2 + $0x108] sm:$0xff] }
 0xa4c   :  { %v3995_v32 = vmul.f32 0.03125, %v3966_v46  ;;  %v3963_v22 = vpop.xlane.xlu0 %3962  ;;  %4047 = vadd.xlane.f32.xlu0 %v4046_v35  ;;  %v4025_v52 = vmul.f32 %v9399_v43, %v9399_v43 }
 0xa4d   :  { %v3994_v38 = vmul.f32 0.03125, %v3963_v22  ;;  %v4024_v28 = vmul.f32 %v9403_v48, %v9403_v48 }
 0xa4e   :  { %v9411_v5 = vsub.f32 %v9319_v49, %v3995_v32  ;;  %v4055_v10 = vsel %vm282_vm2, %v4025_v52, 0.0 }
 0xa4f   :  { %v9415_v34 = vsub.f32 %v9322_v2, %v3994_v38  ;;  %v3972_v21 = vpop.xlane.xlu1 %3971  ;;  %4056 = vadd.xlane.f32.xlu1 %v4055_v10  ;;  %v4052_v42 = vsel %vm282_vm2, %v4024_v28, 0.0 }
 0xa50   :  { %v3997_v26 = vmul.f32 0.03125, %v3972_v21  ;;  %v3969_v12 = vpop.xlane.xlu0 %3968  ;;  %4053 = vadd.xlane.f32.xlu0 %v4052_v42  ;;  %v4027_v14 = vmul.f32 %v9411_v5, %v9411_v5 }
 0xa51   :  { %v3996_v29 = vmul.f32 0.03125, %v3969_v12  ;;  %v4026_v49 = vmul.f32 %v9415_v34, %v9415_v34 }
 0xa52   :  { %v9423_v57 = vsub.f32 %v9331_v13, %v3997_v26  ;;  %v4061_v2 = vsel %vm282_vm2, %v4027_v14, 0.0 }
 0xa53   :  { %v9427_v8 = vsub.f32 %v9334_v30, %v3996_v29  ;;  %4062 = vadd.xlane.f32.xlu1 %v4061_v2  ;;  %v4058_v53 = vsel %vm282_vm2, %v4026_v49, 0.0  ;;  %v6819_v30 = vpack.c.bf16 %v43_v55, %v42_v19  ;;  %v4148_v2 = vsub.s32 3, %v10144_v39 }
 0xa54   :  { %4059 = vadd.xlane.f32.xlu0 %v4058_v53  ;;  %v4029_v4 = vmul.f32 %v9423_v57, %v9423_v57 }
 0xa55   :  { %v4028_v25 = vmul.f32 %v9427_v8, %v9427_v8  ;;  %6820 = vmatprep.subr.bf16.mxu1 %v6819_v30 }
 0xa56   :  { %v4067_v40 = vsel %vm282_vm2, %v4029_v4, 0.0  ;;  %6822 = vmatpush3.bf16.msra.mxu1 %v6819_v30  ;;  %v9466_v30 = vrot.slane %v9263_v20, %v4148_v2 }
 0xa57   :  { %4068 = vadd.xlane.f32.xlu1 %v4067_v40  ;;  %v4064_v13 = vsel %vm282_vm2, %v4028_v25, 0.0  ;;  %6824 = vmatprep.subr.bf16.mxu1 %v6823_v59 }
 0xa58   :  { %4065 = vadd.xlane.f32.xlu0 %v4064_v13  ;;  %v4168_v13 = vsub.s32 4, %v10144_v39 }
 0xa5a   :  { %6826 = vmatpush3.bf16.msra.mxu1 %v6823_v59 }
 0xa69   :  { %v3978_v16 = vpop.xlane.xlu1 %3977 }
 0xa6a   :  { %v3999_v3 = vmul.f32 0.03125, %v3978_v16  ;;  %v3975_v62 = vpop.xlane.xlu0 %3974 }
 0xa6b   :  { %v3998_v7 = vmul.f32 0.03125, %v3975_v62 }
 0xa6c   :  { %v9437_v36 = vsub.f32 %v9343_v45, %v3999_v3 }
 0xa6d   :  { %v9440_v27 = vsub.f32 %v9346_v31, %v3998_v7  ;;  %v3984_v61 = vpop.xlane.xlu1 %3983 }
 0xa6e   :  { %v4001_v54 = vmul.f32 0.03125, %v3984_v61  ;;  %v3981_v58 = vpop.xlane.xlu0 %3980  ;;  %v4031_v6 = vmul.f32 %v9437_v36, %v9437_v36  ;;  %v9470_v61 = vrot.slane %v9263_v20, %v4168_v13 }
 0xa6f   :  { %v4000_v24 = vmul.f32 0.03125, %v3981_v58  ;;  %v4030_v63 = vmul.f32 %v9440_v27, %v9440_v27 }
 0xa70   :  { %v9447_v47 = vsub.f32 %v9355_v15, %v4001_v54  ;;  %v4073_v56 = vsel %vm282_vm2, %v4031_v6, 0.0 }
 0xa71   :  { %v9451_v45 = vsub.f32 %v9358_v51, %v4000_v24  ;;  %4074 = vadd.xlane.f32.xlu1 %v4073_v56  ;;  %v4070_v31 = vsel %vm282_vm2, %v4030_v63, 0.0  ;;  %v9460_v51 = vpack.c.bf16 %v48_v44, %v47_v33  ;;  %v49_v24 = vld [vmem:[#allocation2 + $0x110] sm:$0xff]  ;;  %v50_v63 = vld [vmem:[#allocation2 + $0x118] sm:$0xff] }
 0xa72   :  { %4071 = vadd.xlane.f32.xlu0 %v4070_v31  ;;  %v4033_v17 = vmul.f32 %v9447_v47, %v9447_v47 }
 0xa73   :  { %v4032_v50 = vmul.f32 %v9451_v45, %v9451_v45  ;;  %6828 = vmatprep.subr.bf16.mxu1 %v9460_v51 }
 0xa74   :  { %v4079_v37 = vsel %vm282_vm2, %v4033_v17, 0.0 }
 0xa75   :  { %4080 = vadd.xlane.f32.xlu1 %v4079_v37  ;;  %v4076_v15 = vsel %vm282_vm2, %v4032_v50, 0.0 }
 0xa76   :  { %4077 = vadd.xlane.f32.xlu0 %v4076_v15 }
 0xad0   :  { %v4039_v46 = vpop.xlane.xlu1 %4038 }
 0xad1   :  { %v4083_v35 = vmul.f32 0.03125, %v4039_v46  ;;  %v4036_v32 = vpop.xlane.xlu0 %4035  ;;  %v6831_v46 = vpack.c.bf16 %v50_v63, %v49_v24 }
 0xad2   :  { %v4082_v22 = vmul.f32 0.03125, %v4036_v32 }
 0xad3   :  { %v4099_v52 = vadd.f32 1e-05, %v4083_v35 }
 0xad4   :  { %v4098_v38 = vadd.f32 1e-05, %v4082_v22  ;;  %v4045_v28 = vpop.xlane.xlu1 %4044 }
 0xad5   :  { %7506 = vrsqrt.f32 %v4099_v52  ;;  %v4085_v10 = vmul.f32 0.03125, %v4045_v28  ;;  %v4042_v21 = vpop.xlane.xlu0 %4041 }
 0xad6   :  { %7508 = vrsqrt.f32 %v4098_v38  ;;  %v4084_v42 = vmul.f32 0.03125, %v4042_v21 }
 0xad7   :  { %v4101_v26 = vadd.f32 1e-05, %v4085_v10 }
 0xad8   :  { %v4100_v12 = vadd.f32 1e-05, %v4084_v42  ;;  %v4051_v14 = vpop.xlane.xlu1 %4050  ;;  %v51_v42 = vld [vmem:[#allocation2 + $0x120] sm:$0xff] }
 0xad9   :  { %7510 = vrsqrt.f32 %v4101_v26  ;;  %v4087_v29 = vmul.f32 0.03125, %v4051_v14  ;;  %v4048_v49 = vpop.xlane.xlu0 %4047  ;;  %v52_v26 = vld [vmem:[#allocation2 + $0x128] sm:$0xff] }
 0xada   :  { %7512 = vrsqrt.f32 %v4100_v12  ;;  %v4086_v53 = vmul.f32 0.03125, %v4048_v49 }
 0xadb   :  { %v4103_v4 = vadd.f32 1e-05, %v4087_v29 }
 0xadc   :  { %v4102_v25 = vadd.f32 1e-05, %v4086_v53  ;;  %v4057_v40 = vpop.xlane.xlu1 %4056 }
 0xadd   :  { %7514 = vrsqrt.f32 %v4103_v4  ;;  %v4089_v19 = vmul.f32 0.03125, %v4057_v40  ;;  %v4054_v55 = vpop.xlane.xlu0 %4053  ;;  %v6835_v4 = vpack.c.bf16 %v52_v26, %v51_v42 }
 0xade   :  { %7516 = vrsqrt.f32 %v4102_v25  ;;  %v4088_v1 = vmul.f32 0.03125, %v4054_v55 }
 0xadf   :  { %v7507_v60 = vpop.eup %7506  ;;  %v4105_v59 = vadd.f32 1e-05, %v4089_v19 }
 0xae0   :  { %v7509_v16 = vpop.eup %7508  ;;  %v4131_v3 = vmul.f32 %v7507_v60, %v9365_v9  ;;  %v4104_v62 = vadd.f32 1e-05, %v4088_v1  ;;  %v4063_v7 = vpop.xlane.xlu1 %4062 }
 0xae1   :  { %7518 = vrsqrt.f32 %v4105_v59  ;;  %v4091_v54 = vmul.f32 0.03125, %v4063_v7  ;;  %v4060_v58 = vpop.xlane.xlu0 %4059  ;;  %v4130_v6 = vmul.f32 %v7509_v16, %v9368_v18 }
 0xae2   :  { %v4151_v56 = vmul.f32 %v9466_v30, %v4131_v3  ;;  %7520 = vrsqrt.f32 %v4104_v62  ;;  %v4090_v31 = vmul.f32 0.03125, %v4060_v58 }
 0xae3   :  { %v7511_v17 = vpop.eup %7510  ;;  %v4107_v50 = vadd.f32 1e-05, %v4091_v54  ;;  %v4150_v9 = vmul.f32 %v9466_v30, %v4130_v6 }
 0xae4   :  { %v7513_v37 = vpop.eup %7512  ;;  %v4106_v15 = vadd.f32 1e-05, %v4090_v31  ;;  %v4069_v33 = vpop.xlane.xlu1 %4068  ;;  %v4133_v44 = vmul.f32 %v7511_v17, %v9375_v23  ;;  %v9481_v52 = vadd.f32 %v9470_v61, %v4151_v56 }
 0xae5   :  { %7522 = vrsqrt.f32 %v4107_v50  ;;  %v4093_v35 = vmul.f32 0.03125, %v4069_v33  ;;  %v4066_v32 = vpop.xlane.xlu0 %4065  ;;  %v9477_v18 = vadd.f32 %v9470_v61, %v4150_v9  ;;  %v4132_v22 = vmul.f32 %v7513_v37, %v9379_v11 }
 0xae6   :  { %7524 = vrsqrt.f32 %v4106_v15  ;;  %v4092_v38 = vmul.f32 0.03125, %v4066_v32  ;;  %v4153_v28 = vmul.f32 %v9466_v30, %v4133_v44 }
 0xae7   :  { %v7515_v10 = vpop.eup %7514  ;;  %v4109_v21 = vadd.f32 1e-05, %v4093_v35  ;;  %6395 = vmatprep.mubr.msk.f32.mxu1 %vm282_vm2, %v9477_v18  ;;  %v4152_v23 = vmul.f32 %v9466_v30, %v4132_v22 }
 0xae8   :  { %v7517_v12 = vpop.eup %7516  ;;  %v4108_v14 = vadd.f32 1e-05, %v4092_v38  ;;  %6396 = vmatmul.mubr.msk.f32.vlgmr.msra.gmra.mrb[86].mxu1 %vm282_vm2, %v9481_v52  ;;  %v4135_v11 = vmul.f32 %v7515_v10, %v9387_v41  ;;  %v9496_v2 = vadd.f32 %v9470_v61, %v4153_v28 }
 0xae9   :  { %7526 = vrsqrt.f32 %v4109_v21  ;;  %v9491_v29 = vadd.f32 %v9470_v61, %v4152_v23  ;;  %v4134_v49 = vmul.f32 %v7517_v12, %v9391_v0  ;;  %6830 = vmatpush3.bf16.msra.mxu1 %v9460_v51 }
 0xaea   :  { %7528 = vrsqrt.f32 %v4108_v14  ;;  %v4155_v53 = vmul.f32 %v9466_v30, %v4135_v11  ;;  %6832 = vmatprep.subr.bf16.mxu1 %v6831_v46 }
 0xaeb   :  { %v7519_v25 = vpop.eup %7518  ;;  %6398 = vmatprep.mubr.msk.f32.mxu1 %vm282_vm2, %v9491_v29  ;;  %v4154_v41 = vmul.f32 %v9466_v30, %v4134_v49 }
 0xaec   :  { %v7521_v40 = vpop.eup %7520  ;;  %6399 = vmatmul.mubr.msk.f32.gmra.mrb[88].mxu1 %vm282_vm2, %v9496_v2  ;;  %v4137_v0 = vmul.f32 %v7519_v25, %v9399_v43  ;;  %v9510_v19 = vadd.f32 %v9470_v61, %v4155_v53  ;;  %v54_v25 = vld [vmem:[#allocation2 + $0x138] sm:$0xff] }
 0xaed   :  { %v9506_v51 = vadd.f32 %v9470_v61, %v4154_v41  ;;  %v4136_v13 = vmul.f32 %v7521_v40, %v9403_v48  ;;  %6834 = vmatpush3.bf16.msra.mxu1 %v6831_v46 }
 0xaee   :  { %v4157_v55 = vmul.f32 %v9466_v30, %v4137_v0  ;;  %6836 = vmatprep.subr.bf16.mxu1 %v6835_v4 }
 0xaef   :  { %v7523_v1 = vpop.eup %7522  ;;  %6401 = vmatprep.mubr.msk.f32.mxu1 %vm282_vm2, %v9506_v51  ;;  %v4156_v60 = vmul.f32 %v9466_v30, %v4136_v13 }
 0xaf0   :  { %v7525_v59 = vpop.eup %7524  ;;  %6402 = vmatmul.mubr.msk.f32.gmra.mrb[90].mxu1 %vm282_vm2, %v9510_v19  ;;  %v4139_v43 = vmul.f32 %v7523_v1, %v9411_v5  ;;  %v9524_v3 = vadd.f32 %v9470_v61, %v4157_v55 }
 0xaf1   :  { %v9520_v48 = vadd.f32 %v9470_v61, %v4156_v60  ;;  %v4138_v16 = vmul.f32 %v7525_v59, %v9415_v34  ;;  %6838 = vmatpush3.bf16.msra.mxu1 %v6835_v4 }
 0xaf2   :  { %v4159_v62 = vmul.f32 %v9466_v30, %v4139_v43 }
 0xaf3   :  { %v7527_v7 = vpop.eup %7526  ;;  %6404 = vmatprep.mubr.msk.f32.mxu1 %vm282_vm2, %v9520_v48  ;;  %v4158_v54 = vmul.f32 %v9466_v30, %v4138_v16 }
 0xaf4   :  { %v7529_v58 = vpop.eup %7528  ;;  %6405 = vmatmul.mubr.msk.f32.gmra.mrb[92].mxu1 %vm282_vm2, %v9524_v3  ;;  %v4141_v5 = vmul.f32 %v7527_v7, %v9423_v57  ;;  %v9538_v24 = vadd.f32 %v9470_v61, %v4159_v62 }
 0xaf5   :  { %v9534_v34 = vadd.f32 %v9470_v61, %v4158_v54  ;;  %v4140_v6 = vmul.f32 %v7529_v58, %v9427_v8 }
 0xaf6   :  { %v4161_v63 = vmul.f32 %v9466_v30, %v4141_v5 }
 0xaf7   :  { %6407 = vmatprep.mubr.msk.f32.mxu1 %vm282_vm2, %v9534_v34  ;;  %v4160_v56 = vmul.f32 %v9466_v30, %v4140_v6 }
 0xaf8   :  { %6408 = vmatmul.mubr.msk.f32.gmra.mrb[94].mxu1 %vm282_vm2, %v9538_v24  ;;  %v9550_v31 = vadd.f32 %v9470_v61, %v4161_v63 }
 0xaf9   :  { %v9547_v57 = vadd.f32 %v9470_v61, %v4160_v56 }
 0xafb   :  { %6410 = vmatprep.mubr.msk.f32.mxu1 %vm282_vm2, %v9547_v57 }
 0xafc   :  { %6411 = vmatmul.mubr.msk.f32.gmra.mrb[96].mxu1 %vm282_vm2, %v9550_v31 }
 0xafe   :  { %v4075_v8 = vpop.xlane.xlu1 %4074 }
 0xaff   :  { %v4095_v17 = vmul.f32 0.03125, %v4075_v8  ;;  %v4072_v50 = vpop.xlane.xlu0 %4071 }
 0xb00   :  { %v4094_v9 = vmul.f32 0.03125, %v4072_v50 }
 0xb01   :  { %v4111_v37 = vadd.f32 1e-05, %v4095_v17 }
 0xb02   :  { %v4110_v15 = vadd.f32 1e-05, %v4094_v9  ;;  %v4081_v33 = vpop.xlane.xlu1 %4080 }
 0xb03   :  { %7530 = vrsqrt.f32 %v4111_v37  ;;  %v4097_v44 = vmul.f32 0.03125, %v4081_v33  ;;  %v4078_v46 = vpop.xlane.xlu0 %4077 }
 0xb04   :  { %7532 = vrsqrt.f32 %v4110_v15  ;;  %v4096_v35 = vmul.f32 0.03125, %v4078_v46 }
 0xb05   :  { %v4113_v32 = vadd.f32 1e-05, %v4097_v44 }
 0xb06   :  { %v4112_v22 = vadd.f32 1e-05, %v4096_v35 }
 0xb07   :  { %7534 = vrsqrt.f32 %v4113_v32 }
 0xb08   :  { %7536 = vrsqrt.f32 %v4112_v22 }
 0xb0d   :  { %v7531_v38 = vpop.eup %7530 }
 0xb0e   :  { %v7533_v28 = vpop.eup %7532  ;;  %v4143_v10 = vmul.f32 %v7531_v38, %v9437_v36 }
 0xb0f   :  { %v4142_v21 = vmul.f32 %v7533_v28, %v9440_v27 }
 0xb10   :  { %v4163_v23 = vmul.f32 %v9466_v30, %v4143_v10 }
 0xb11   :  { %v7535_v42 = vpop.eup %7534  ;;  %v4162_v26 = vmul.f32 %v9466_v30, %v4142_v21 }
 0xb12   :  { %v7537_v12 = vpop.eup %7536  ;;  %v4145_v14 = vmul.f32 %v7535_v42, %v9447_v47  ;;  %v9566_v53 = vadd.f32 %v9470_v61, %v4163_v23 }
 0xb13   :  { %v9562_v11 = vadd.f32 %v9470_v61, %v4162_v26  ;;  %v4144_v49 = vmul.f32 %v7537_v12, %v9451_v45  ;;  %v53_v45 = vld [vmem:[#allocation2 + $0x130] sm:$0xff] }
 0xb14   :  { %v4165_v36 = vmul.f32 %v9466_v30, %v4145_v14  ;;  %v6839_v41 = vpack.c.bf16 %v54_v25, %v53_v45 }
 0xb15   :  { %6413 = vmatprep.mubr.msk.f32.mxu1 %vm282_vm2, %v9562_v11  ;;  %v4164_v27 = vmul.f32 %v9466_v30, %v4144_v49  ;;  %v4188_v30 = vsub.s32 5, %v10144_v39 }
 0xb16   :  { %6414 = vmatmul.mubr.msk.f32.gmra.mrb[98].mxu1 %vm282_vm2, %v9566_v53  ;;  %v9578_v4 = vadd.f32 %v9470_v61, %v4165_v36  ;;  %6840 = vmatprep.subr.bf16.mxu1 %v6839_v41 }
 0xb17   :  { %v9575_v47 = vadd.f32 %v9470_v61, %v4164_v27  ;;  %6842 = vmatpush3.bf16.msra.mxu1 %v6839_v41  ;;  %v4189_v40 = vrot.slane %v9263_v20, %v4188_v30 }
 0xb19   :  { %6416 = vmatprep.mubr.msk.f32.mxu1 %vm282_vm2, %v9575_v47 }
 0xb1a   :  { %6417 = vmatmul.mubr.msk.f32.gmra.mrb[100].mxu1 %vm282_vm2, %v9578_v4 }
 0xbbb   :  { %v6397_v0 = vpop.f32.mrb[86].mxu1 }
 0xbbc   :  { %v4310_v13 = vadd.f32 %v6397_v0, %v4189_v40  ;;  %v4304_v55 = vpop.f32.mrb[87].mxu1 }
 0xbbd   :  { %v4305_v61 = vadd.f32 %v4304_v55, %v4189_v40 }
 0xbbe   :  { %v4384_v59 = vmax.f32 %v4310_v13, 0.0 }
 0xbbf   :  { %v4383_v1 = vmax.f32 %v4305_v61, 0.0  ;;  %v6400_v60 = vpop.f32.mrb[88].mxu1  ;;  %v4401_v61 = vsub.s32 6, %v10144_v39 }
 0xbc0   :  { %v4320_v43 = vadd.f32 %v6400_v60, %v4189_v40  ;;  %v4314_v16 = vpop.f32.mrb[89].mxu1 }
 0xbc1   :  { %v4315_v62 = vadd.f32 %v4314_v16, %v4189_v40  ;;  %6435 = vmatprep.mubr.msk.f32.mxu1 %vm4403_vm3, %v4383_v1  ;;  %v9604_v1 = vrot.slane %v9263_v20, %v4401_v61 }
 0xbc2   :  { %6436 = vmatmul.mubr.msk.f32.vlgmr.msra.gmra.mrb[102].mxu1 %vm4403_vm3, %v4384_v59  ;;  %v4386_v58 = vmax.f32 %v4320_v43, 0.0 }
 0xbc3   :  { %v4385_v7 = vmax.f32 %v4315_v62, 0.0  ;;  %v6403_v54 = vpop.f32.mrb[90].mxu1 }
 0xbc4   :  { %v4330_v5 = vadd.f32 %v6403_v54, %v4189_v40  ;;  %v4324_v6 = vpop.f32.mrb[91].mxu1 }
 0xbc5   :  { %v4325_v63 = vadd.f32 %v4324_v6, %v4189_v40  ;;  %6438 = vmatprep.mubr.msk.f32.mxu1 %vm4403_vm3, %v4385_v7 }
 0xbc6   :  { %6439 = vmatmul.mubr.msk.f32.gmra.mrb[104].mxu1 %vm4403_vm3, %v4386_v58  ;;  %v4388_v17 = vmax.f32 %v4330_v5, 0.0 }
 0xbc7   :  { %v4387_v56 = vmax.f32 %v4325_v63, 0.0  ;;  %v6406_v8 = vpop.f32.mrb[92].mxu1 }
 0xbc8   :  { %v4340_v50 = vadd.f32 %v6406_v8, %v4189_v40  ;;  %v4334_v9 = vpop.f32.mrb[93].mxu1 }
 0xbc9   :  { %v4335_v37 = vadd.f32 %v4334_v9, %v4189_v40  ;;  %6441 = vmatprep.mubr.msk.f32.mxu1 %vm4403_vm3, %v4387_v56 }
 0xbca   :  { %6442 = vmatmul.mubr.msk.f32.gmra.mrb[106].mxu1 %vm4403_vm3, %v4388_v17  ;;  %v4390_v44 = vmax.f32 %v4340_v50, 0.0 }
 0xbcb   :  { %v4389_v15 = vmax.f32 %v4335_v37, 0.0  ;;  %v6409_v33 = vpop.f32.mrb[94].mxu1 }
 0xbcc   :  { %v4350_v46 = vadd.f32 %v6409_v33, %v4189_v40  ;;  %v4344_v35 = vpop.f32.mrb[95].mxu1 }
 0xbcd   :  { %v4345_v32 = vadd.f32 %v4344_v35, %v4189_v40  ;;  %6444 = vmatprep.mubr.msk.f32.mxu1 %vm4403_vm3, %v4389_v15 }
 0xbce   :  { %6445 = vmatmul.mubr.msk.f32.gmra.mrb[108].mxu1 %vm4403_vm3, %v4390_v44  ;;  %v4392_v28 = vmax.f32 %v4350_v46, 0.0 }
 0xbcf   :  { %v4391_v22 = vmax.f32 %v4345_v32, 0.0  ;;  %v6412_v38 = vpop.f32.mrb[96].mxu1 }
 0xbd0   :  { %v4360_v10 = vadd.f32 %v6412_v38, %v4189_v40  ;;  %v4354_v21 = vpop.f32.mrb[97].mxu1 }
 0xbd1   :  { %v4355_v23 = vadd.f32 %v4354_v21, %v4189_v40  ;;  %6447 = vmatprep.mubr.msk.f32.mxu1 %vm4403_vm3, %v4391_v22 }
 0xbd2   :  { %6448 = vmatmul.mubr.msk.f32.gmra.mrb[110].mxu1 %vm4403_vm3, %v4392_v28  ;;  %v4394_v26 = vmax.f32 %v4360_v10, 0.0 }
 0xbd3   :  { %v4393_v42 = vmax.f32 %v4355_v23, 0.0 }
 0xbd5   :  { %6450 = vmatprep.mubr.msk.f32.mxu1 %vm4403_vm3, %v4393_v42 }
 0xbd6   :  { %6451 = vmatmul.mubr.msk.f32.gmra.mrb[112].mxu1 %vm4403_vm3, %v4394_v26 }
 0xbe9   :  { %v6415_v12 = vpop.f32.mrb[98].mxu1 }
 0xbea   :  { %v4370_v14 = vadd.f32 %v6415_v12, %v4189_v40  ;;  %v4364_v49 = vpop.f32.mrb[99].mxu1 }
 0xbeb   :  { %v4365_v36 = vadd.f32 %v4364_v49, %v4189_v40 }
 0xbec   :  { %v4396_v25 = vmax.f32 %v4370_v14, 0.0 }
 0xbed   :  { %v4395_v27 = vmax.f32 %v4365_v36, 0.0  ;;  %v6418_v45 = vpop.f32.mrb[100].mxu1 }
 0xbee   :  { %v4380_v41 = vadd.f32 %v6418_v45, %v4189_v40  ;;  %v4374_v30 = vpop.f32.mrb[101].mxu1 }
 0xbef   :  { %v4375_v0 = vadd.f32 %v4374_v30, %v4189_v40  ;;  %6453 = vmatprep.mubr.msk.f32.mxu1 %vm4403_vm3, %v4395_v27 }
 0xbf0   :  { %6454 = vmatmul.mubr.msk.f32.gmra.mrb[114].mxu1 %vm4403_vm3, %v4396_v25  ;;  %v4398_v55 = vmax.f32 %v4380_v41, 0.0 }
 0xbf1   :  { %v4397_v13 = vmax.f32 %v4375_v0, 0.0 }
 0xbf3   :  { %6456 = vmatprep.mubr.msk.f32.mxu1 %vm4403_vm3, %v4397_v13 }
 0xbf4   :  { %6457 = vmatmul.mubr.msk.f32.gmra.mrb[116].mxu1 %vm4403_vm3, %v4398_v55 }
 0xc95   :  { %v6437_v60 = vpop.f32.mrb[102].mxu1 }
 0xc96   :  { %v4524_v59 = vadd.f32 %v6437_v60, %v9604_v1  ;;  %v4518_v43 = vpop.f32.mrb[103].mxu1 }
 0xc97   :  { %v4519_v40 = vadd.f32 %v4518_v43, %v9604_v1 }
 0xc98   :  { %v9609_v16 = vadd.f32 %v4524_v59, %v9481_v52 }
 0xc99   :  { %v9612_v62 = vadd.f32 %v4519_v40, %v9477_v18  ;;  %v6440_v7 = vpop.f32.mrb[104].mxu1 }
 0xc9a   :  { %v4534_v54 = vadd.f32 %v6440_v7, %v9604_v1  ;;  %v4528_v58 = vpop.f32.mrb[105].mxu1  ;;  %v4616_v20 = vsel %vm282_vm2, %v9609_v16, 0.0 }
 0xc9b   :  { %v4529_v5 = vadd.f32 %v4528_v58, %v9604_v1  ;;  %4617 = vadd.xlane.f32.xlu1 %v4616_v20  ;;  %v4613_v6 = vsel %vm282_vm2, %v9612_v62, 0.0 }
 0xc9c   :  { %v9621_v63 = vadd.f32 %v4534_v54, %v9496_v2  ;;  %4614 = vadd.xlane.f32.xlu0 %v4613_v6 }
 0xc9d   :  { %v9624_v18 = vadd.f32 %v4529_v5, %v9491_v29  ;;  %v6443_v52 = vpop.f32.mrb[106].mxu1 }
 0xc9e   :  { %v4544_v56 = vadd.f32 %v6443_v52, %v9604_v1  ;;  %v4538_v8 = vpop.f32.mrb[107].mxu1  ;;  %v4622_v17 = vsel %vm282_vm2, %v9621_v63, 0.0 }
 0xc9f   :  { %v4539_v50 = vadd.f32 %v4538_v8, %v9604_v1  ;;  %4623 = vadd.xlane.f32.xlu1 %v4622_v17  ;;  %v4619_v9 = vsel %vm282_vm2, %v9624_v18, 0.0 }
 0xca0   :  { %v9633_v2 = vadd.f32 %v4544_v56, %v9510_v19  ;;  %4620 = vadd.xlane.f32.xlu0 %v4619_v9 }
 0xca1   :  { %v9636_v29 = vadd.f32 %v4539_v50, %v9506_v51  ;;  %v6446_v37 = vpop.f32.mrb[108].mxu1 }
 0xca2   :  { %v4554_v15 = vadd.f32 %v6446_v37, %v9604_v1  ;;  %v4548_v33 = vpop.f32.mrb[109].mxu1  ;;  %v4628_v44 = vsel %vm282_vm2, %v9633_v2, 0.0 }
 0xca3   :  { %v4549_v46 = vadd.f32 %v4548_v33, %v9604_v1  ;;  %4629 = vadd.xlane.f32.xlu1 %v4628_v44  ;;  %v4625_v35 = vsel %vm282_vm2, %v9636_v29, 0.0 }
 0xca4   :  { %v9645_v19 = vadd.f32 %v4554_v15, %v9524_v3  ;;  %4626 = vadd.xlane.f32.xlu0 %v4625_v35 }
 0xca5   :  { %v9648_v51 = vadd.f32 %v4549_v46, %v9520_v48  ;;  %v6449_v32 = vpop.f32.mrb[110].mxu1 }
 0xca6   :  { %v4564_v22 = vadd.f32 %v6449_v32, %v9604_v1  ;;  %v4558_v38 = vpop.f32.mrb[111].mxu1  ;;  %v4634_v28 = vsel %vm282_vm2, %v9645_v19, 0.0 }
 0xca7   :  { %v4559_v10 = vadd.f32 %v4558_v38, %v9604_v1  ;;  %4635 = vadd.xlane.f32.xlu1 %v4634_v28  ;;  %v4631_v21 = vsel %vm282_vm2, %v9648_v51, 0.0 }
 0xca8   :  { %v9657_v3 = vadd.f32 %v4564_v22, %v9538_v24  ;;  %4632 = vadd.xlane.f32.xlu0 %v4631_v21 }
 0xca9   :  { %v9660_v48 = vadd.f32 %v4559_v10, %v9534_v34  ;;  %v6452_v23 = vpop.f32.mrb[112].mxu1 }
 0xcaa   :  { %v4574_v42 = vadd.f32 %v6452_v23, %v9604_v1  ;;  %v4568_v26 = vpop.f32.mrb[113].mxu1  ;;  %v4640_v12 = vsel %vm282_vm2, %v9657_v3, 0.0 }
 0xcab   :  { %v4569_v14 = vadd.f32 %v4568_v26, %v9604_v1  ;;  %4641 = vadd.xlane.f32.xlu1 %v4640_v12  ;;  %v4637_v49 = vsel %vm282_vm2, %v9660_v48, 0.0 }
 0xcac   :  { %v9669_v24 = vadd.f32 %v4574_v42, %v9550_v31  ;;  %4638 = vadd.xlane.f32.xlu0 %v4637_v49 }
 0xcad   :  { %v9672_v34 = vadd.f32 %v4569_v14, %v9547_v57 }
 0xcae   :  { %v4646_v36 = vsel %vm282_vm2, %v9669_v24, 0.0 }
 0xcaf   :  { %4647 = vadd.xlane.f32.xlu1 %v4646_v36  ;;  %v4643_v27 = vsel %vm282_vm2, %v9672_v34, 0.0 }
 0xcb0   :  { %4644 = vadd.xlane.f32.xlu0 %v4643_v27 }
 0xcc3   :  { %v6455_v45 = vpop.f32.mrb[114].mxu1 }
 0xcc4   :  { %v4584_v25 = vadd.f32 %v6455_v45, %v9604_v1  ;;  %v4578_v41 = vpop.f32.mrb[115].mxu1 }
 0xcc5   :  { %v4579_v30 = vadd.f32 %v4578_v41, %v9604_v1 }
 0xcc6   :  { %v9681_v31 = vadd.f32 %v4584_v25, %v9566_v53 }
 0xcc7   :  { %v9684_v57 = vadd.f32 %v4579_v30, %v9562_v11  ;;  %v6458_v0 = vpop.f32.mrb[116].mxu1 }
 0xcc8   :  { %v4594_v13 = vadd.f32 %v6458_v0, %v9604_v1  ;;  %v4588_v55 = vpop.f32.mrb[117].mxu1  ;;  %v4652_v61 = vsel %vm282_vm2, %v9681_v31, 0.0 }
 0xcc9   :  { %v4589_v60 = vadd.f32 %v4588_v55, %v9604_v1  ;;  %4653 = vadd.xlane.f32.xlu1 %v4652_v61  ;;  %v4649_v59 = vsel %vm282_vm2, %v9684_v57, 0.0 }
 0xcca   :  { %v9693_v43 = vadd.f32 %v4594_v13, %v9578_v4  ;;  %4650 = vadd.xlane.f32.xlu0 %v4649_v59 }
 0xccb   :  { %v9696_v11 = vadd.f32 %v4589_v60, %v9575_v47 }
 0xccc   :  { %v4658_v53 = vsel %vm282_vm2, %v9693_v43, 0.0 }
 0xccd   :  { %4659 = vadd.xlane.f32.xlu1 %v4658_v53  ;;  %v4655_v40 = vsel %vm282_vm2, %v9696_v11, 0.0 }
 0xcce   :  { %4656 = vadd.xlane.f32.xlu0 %v4655_v40 }
 0xd28   :  { %v4618_v1 = vpop.xlane.xlu1 %4617 }
 0xd29   :  { %v4662_v7 = vmul.f32 0.03125, %v4618_v1  ;;  %v4615_v54 = vpop.xlane.xlu0 %4614 }
 0xd2a   :  { %v4661_v58 = vmul.f32 0.03125, %v4615_v54  ;;  %v56_v54 = vld [vmem:[#allocation2 + $0x140] sm:$0xff] }
 0xd2b   :  { %v9703_v20 = vsub.f32 %v9609_v16, %v4662_v7 }
 0xd2c   :  { %v9706_v4 = vsub.f32 %v9612_v62, %v4661_v58  ;;  %v4624_v47 = vpop.xlane.xlu1 %4623  ;;  %v57_v58 = vld [vmem:[#allocation2 + $0x148] sm:$0xff] }
 0xd2d   :  { %v4664_v5 = vmul.f32 0.03125, %v4624_v47  ;;  %v4621_v6 = vpop.xlane.xlu0 %4620  ;;  %v4694_v52 = vmul.f32 %v9703_v20, %v9703_v20  ;;  %v58_v47 = vld [vmem:[#allocation2 + $0x150] sm:$0xff] }
 0xd2e   :  { %v4663_v56 = vmul.f32 0.03125, %v4621_v6  ;;  %v4693_v8 = vmul.f32 %v9706_v4, %v9706_v4 }
 0xd2f   :  { %v9713_v17 = vsub.f32 %v9621_v63, %v4664_v5  ;;  %v4712_v50 = vsel %vm282_vm2, %v4694_v52, 0.0  ;;  %v59_v5 = vld [vmem:[#allocation2 + $0x158] sm:$0xff] }
 0xd30   :  { %v9717_v16 = vsub.f32 %v9624_v18, %v4663_v56  ;;  %v4630_v62 = vpop.xlane.xlu1 %4629  ;;  %4713 = vadd.xlane.f32.xlu1 %v4712_v50  ;;  %v4709_v9 = vsel %vm282_vm2, %v4693_v8, 0.0  ;;  %v6847_v6 = vpack.c.bf16 %v59_v5, %v58_v47 }
 0xd31   :  { %v4666_v37 = vmul.f32 0.03125, %v4630_v62  ;;  %v4627_v15 = vpop.xlane.xlu0 %4626  ;;  %4710 = vadd.xlane.f32.xlu0 %v4709_v9  ;;  %v4696_v33 = vmul.f32 %v9713_v17, %v9713_v17 }
 0xd32   :  { %v4665_v44 = vmul.f32 0.03125, %v4627_v15  ;;  %v4695_v63 = vmul.f32 %v9717_v16, %v9717_v16 }
 0xd33   :  { %v9725_v46 = vsub.f32 %v9633_v2, %v4666_v37  ;;  %v4718_v18 = vsel %vm282_vm2, %v4696_v33, 0.0 }
 0xd34   :  { %v9729_v35 = vsub.f32 %v9636_v29, %v4665_v44  ;;  %v4636_v32 = vpop.xlane.xlu1 %4635  ;;  %4719 = vadd.xlane.f32.xlu1 %v4718_v18  ;;  %v4715_v22 = vsel %vm282_vm2, %v4695_v63, 0.0 }
 0xd35   :  { %v4668_v38 = vmul.f32 0.03125, %v4636_v32  ;;  %v4633_v28 = vpop.xlane.xlu0 %4632  ;;  %4716 = vadd.xlane.f32.xlu0 %v4715_v22  ;;  %v4698_v10 = vmul.f32 %v9725_v46, %v9725_v46 }
 0xd36   :  { %v4667_v21 = vmul.f32 0.03125, %v4633_v28  ;;  %v4697_v2 = vmul.f32 %v9729_v35, %v9729_v35 }
 0xd37   :  { %v9737_v23 = vsub.f32 %v9645_v19, %v4668_v38  ;;  %v4724_v29 = vsel %vm282_vm2, %v4698_v10, 0.0 }
 0xd38   :  { %v9741_v42 = vsub.f32 %v9648_v51, %v4667_v21  ;;  %v4642_v26 = vpop.xlane.xlu1 %4641  ;;  %4725 = vadd.xlane.f32.xlu1 %v4724_v29  ;;  %v4721_v12 = vsel %vm282_vm2, %v4697_v2, 0.0 }
 0xd39   :  { %v4670_v14 = vmul.f32 0.03125, %v4642_v26  ;;  %v4639_v49 = vpop.xlane.xlu0 %4638  ;;  %4722 = vadd.xlane.f32.xlu0 %v4721_v12  ;;  %v4700_v36 = vmul.f32 %v9737_v23, %v9737_v23 }
 0xd3a   :  { %v4669_v27 = vmul.f32 0.03125, %v4639_v49  ;;  %v4699_v19 = vmul.f32 %v9741_v42, %v9741_v42 }
 0xd3b   :  { %v9749_v45 = vsub.f32 %v9657_v3, %v4670_v14  ;;  %v4730_v51 = vsel %vm282_vm2, %v4700_v36, 0.0 }
 0xd3c   :  { %v9753_v25 = vsub.f32 %v9660_v48, %v4669_v27  ;;  %v4648_v41 = vpop.xlane.xlu1 %4647  ;;  %4731 = vadd.xlane.f32.xlu1 %v4730_v51  ;;  %v4727_v30 = vsel %vm282_vm2, %v4699_v19, 0.0 }
 0xd3d   :  { %v4672_v0 = vmul.f32 0.03125, %v4648_v41  ;;  %v4645_v13 = vpop.xlane.xlu0 %4644  ;;  %4728 = vadd.xlane.f32.xlu0 %v4727_v30  ;;  %v4702_v55 = vmul.f32 %v9749_v45, %v9749_v45 }
 0xd3e   :  { %v4671_v61 = vmul.f32 0.03125, %v4645_v13  ;;  %v4701_v3 = vmul.f32 %v9753_v25, %v9753_v25  ;;  %v4823_v13 = vsub.s32 7, %v10144_v39 }
 0xd3f   :  { %v9761_v60 = vsub.f32 %v9669_v24, %v4672_v0  ;;  %v4736_v48 = vsel %vm282_vm2, %v4702_v55, 0.0 }
 0xd40   :  { %v9765_v59 = vsub.f32 %v9672_v34, %v4671_v61  ;;  %4737 = vadd.xlane.f32.xlu1 %v4736_v48  ;;  %v4733_v53 = vsel %vm282_vm2, %v4701_v3, 0.0  ;;  %v6843_v34 = vpack.c.bf16 %v57_v58, %v56_v54 }
 0xd41   :  { %4734 = vadd.xlane.f32.xlu0 %v4733_v53  ;;  %v4704_v40 = vmul.f32 %v9761_v60, %v9761_v60 }
 0xd42   :  { %v4703_v1 = vmul.f32 %v9765_v59, %v9765_v59  ;;  %6844 = vmatprep.subr.bf16.mxu0 %v6843_v34 }
 0xd43   :  { %v4742_v7 = vsel %vm282_vm2, %v4704_v40, 0.0  ;;  %6846 = vmatpush3.bf16.msra.mxu0 %v6843_v34 }
 0xd44   :  { %4743 = vadd.xlane.f32.xlu1 %v4742_v7  ;;  %v4739_v24 = vsel %vm282_vm2, %v4703_v1, 0.0  ;;  %6848 = vmatprep.subr.bf16.mxu0 %v6847_v6  ;;  %v9802_v1 = vld [vmem:[%s9947_s2 + $0x8] sm:$0x3]  ;;  %v7571_v7 = vld [vmem:[%s9947_s2] sm:$0xff] }
 0xd45   :  { %4740 = vadd.xlane.f32.xlu0 %v4739_v24  ;;  %v9807_v24 = vrot.slane %v7571_v7, %v4823_v13 }
 0xd47   :  { %6850 = vmatpush3.bf16.msra.mxu0 %v6847_v6 }
 0xd56   :  { %v4654_v52 = vpop.xlane.xlu1 %4653 }
 0xd57   :  { %v4674_v56 = vmul.f32 0.03125, %v4654_v52  ;;  %v4651_v8 = vpop.xlane.xlu0 %4650 }
 0xd58   :  { %v4673_v50 = vmul.f32 0.03125, %v4651_v8 }
 0xd59   :  { %v9775_v62 = vsub.f32 %v9681_v31, %v4674_v56  ;;  %v10161_v56 = vsub.s32 0, %v10144_v39 }
 0xd5a   :  { %v9778_v9 = vsub.f32 %v9684_v57, %v4673_v50  ;;  %v4660_v37 = vpop.xlane.xlu1 %4659 }
 0xd5b   :  { %v4676_v15 = vmul.f32 0.03125, %v4660_v37  ;;  %v4657_v33 = vpop.xlane.xlu0 %4656  ;;  %v4706_v44 = vmul.f32 %v9775_v62, %v9775_v62  ;;  %v9813_v8 = vrot.slane %v9802_v1, %v10161_v56 }
 0xd5c   :  { %v4675_v63 = vmul.f32 0.03125, %v4657_v33  ;;  %v4705_v18 = vmul.f32 %v9778_v9, %v9778_v9 }
 0xd5d   :  { %v9785_v32 = vsub.f32 %v9693_v43, %v4676_v15  ;;  %v4748_v22 = vsel %vm282_vm2, %v4706_v44, 0.0 }
 0xd5e   :  { %v9789_v31 = vsub.f32 %v9696_v11, %v4675_v63  ;;  %4749 = vadd.xlane.f32.xlu1 %v4748_v22  ;;  %v4745_v57 = vsel %vm282_vm2, %v4705_v18, 0.0 }
 0xd5f   :  { %4746 = vadd.xlane.f32.xlu0 %v4745_v57  ;;  %v4708_v38 = vmul.f32 %v9785_v32, %v9785_v32 }
 0xd60   :  { %v4707_v28 = vmul.f32 %v9789_v31, %v9789_v31 }
 0xd61   :  { %v4754_v10 = vsel %vm282_vm2, %v4708_v38, 0.0 }
 0xd62   :  { %4755 = vadd.xlane.f32.xlu1 %v4754_v10  ;;  %v4751_v43 = vsel %vm282_vm2, %v4707_v28, 0.0 }
 0xd63   :  { %4752 = vadd.xlane.f32.xlu0 %v4751_v43 }
 0xdbd   :  { %v4714_v21 = vpop.xlane.xlu1 %4713 }
 0xdbe   :  { %v4758_v2 = vmul.f32 0.03125, %v4714_v21  ;;  %v4711_v11 = vpop.xlane.xlu0 %4710 }
 0xdbf   :  { %v4757_v29 = vmul.f32 0.03125, %v4711_v11 }
 0xdc0   :  { %v4774_v26 = vadd.f32 1e-05, %v4758_v2 }
 0xdc1   :  { %v4773_v12 = vadd.f32 1e-05, %v4757_v29  ;;  %v4720_v14 = vpop.xlane.xlu1 %4719 }
 0xdc2   :  { %7538 = vrsqrt.f32 %v4774_v26  ;;  %v4760_v49 = vmul.f32 0.03125, %v4720_v14  ;;  %v4717_v36 = vpop.xlane.xlu0 %4716 }
 0xdc3   :  { %7540 = vrsqrt.f32 %v4773_v12  ;;  %v4759_v27 = vmul.f32 0.03125, %v4717_v36 }
 0xdc4   :  { %v4776_v19 = vadd.f32 1e-05, %v4760_v49 }
 0xdc5   :  { %v4775_v51 = vadd.f32 1e-05, %v4759_v27  ;;  %v4726_v41 = vpop.xlane.xlu1 %4725 }
 0xdc6   :  { %7542 = vrsqrt.f32 %v4776_v19  ;;  %v4762_v30 = vmul.f32 0.03125, %v4726_v41  ;;  %v4723_v0 = vpop.xlane.xlu0 %4722 }
 0xdc7   :  { %7544 = vrsqrt.f32 %v4775_v51  ;;  %v4761_v55 = vmul.f32 0.03125, %v4723_v0 }
 0xdc8   :  { %v4778_v61 = vadd.f32 1e-05, %v4762_v30 }
 0xdc9   :  { %v4777_v3 = vadd.f32 1e-05, %v4761_v55  ;;  %v4732_v48 = vpop.xlane.xlu1 %4731 }
 0xdca   :  { %7546 = vrsqrt.f32 %v4778_v61  ;;  %v4764_v53 = vmul.f32 0.03125, %v4732_v48  ;;  %v4729_v40 = vpop.xlane.xlu0 %4728 }
 0xdcb   :  { %7548 = vrsqrt.f32 %v4777_v3  ;;  %v4763_v54 = vmul.f32 0.03125, %v4729_v40 }
 0xdcc   :  { %v7539_v58 = vpop.eup %7538  ;;  %v4780_v34 = vadd.f32 1e-05, %v4764_v53 }
 0xdcd   :  { %v7541_v47 = vpop.eup %7540  ;;  %v4806_v5 = vmul.f32 %v7539_v58, %v9703_v20  ;;  %v4779_v6 = vadd.f32 1e-05, %v4763_v54  ;;  %v4738_v52 = vpop.xlane.xlu1 %4737 }
 0xdce   :  { %7550 = vrsqrt.f32 %v4780_v34  ;;  %v4766_v50 = vmul.f32 0.03125, %v4738_v52  ;;  %v4735_v37 = vpop.xlane.xlu0 %4734  ;;  %v4805_v15 = vmul.f32 %v7541_v47, %v9706_v4 }
 0xdcf   :  { %v4826_v33 = vmul.f32 %v9807_v24, %v4806_v5  ;;  %7552 = vrsqrt.f32 %v4779_v6  ;;  %v4765_v44 = vmul.f32 0.03125, %v4735_v37 }
 0xdd0   :  { %v7543_v63 = vpop.eup %7542  ;;  %v4782_v18 = vadd.f32 1e-05, %v4766_v50  ;;  %v4825_v20 = vmul.f32 %v9807_v24, %v4805_v15 }
 0xdd1   :  { %v7545_v22 = vpop.eup %7544  ;;  %v4781_v57 = vadd.f32 1e-05, %v4765_v44  ;;  %v4744_v38 = vpop.xlane.xlu1 %4743  ;;  %v4808_v28 = vmul.f32 %v7543_v63, %v9713_v17  ;;  %v4846_v2 = vadd.f32 %v9813_v8, %v4826_v33 }
 0xdd2   :  { %7554 = vrsqrt.f32 %v4782_v18  ;;  %v4768_v10 = vmul.f32 0.03125, %v4744_v38  ;;  %v4741_v43 = vpop.xlane.xlu0 %4740  ;;  %v4845_v21 = vadd.f32 %v9813_v8, %v4825_v20  ;;  %v4807_v4 = vmul.f32 %v7545_v22, %v9717_v16 }
 0xdd3   :  { %7556 = vrsqrt.f32 %v4781_v57  ;;  %v4767_v11 = vmul.f32 0.03125, %v4741_v43  ;;  %v4828_v29 = vmul.f32 %v9807_v24, %v4808_v28 }
 0xdd4   :  { %v7547_v26 = vpop.eup %7546  ;;  %v4784_v12 = vadd.f32 1e-05, %v4768_v10  ;;  %6467 = vmatprep.mubr.msk.f32.mxu0 %vm282_vm2, %v4845_v21  ;;  %v4827_v14 = vmul.f32 %v9807_v24, %v4807_v4 }
 0xdd5   :  { %v7549_v17 = vpop.eup %7548  ;;  %v4783_v49 = vadd.f32 1e-05, %v4767_v11  ;;  %6468 = vmatmul.mubr.msk.f32.vlgmr.msra.gmra.mrb[90].mxu0 %vm282_vm2, %v4846_v2  ;;  %v4810_v36 = vmul.f32 %v7547_v26, %v9725_v46  ;;  %v4848_v19 = vadd.f32 %v9813_v8, %v4828_v29 }
 0xdd6   :  { %7558 = vrsqrt.f32 %v4784_v12  ;;  %v4847_v16 = vadd.f32 %v9813_v8, %v4827_v14  ;;  %v4809_v27 = vmul.f32 %v7549_v17, %v9729_v35 }
 0xdd7   :  { %7560 = vrsqrt.f32 %v4783_v49  ;;  %v4830_v51 = vmul.f32 %v9807_v24, %v4810_v36 }
 0xdd8   :  { %v7551_v41 = vpop.eup %7550  ;;  %6470 = vmatprep.mubr.msk.f32.mxu0 %vm282_vm2, %v4847_v16  ;;  %v4829_v30 = vmul.f32 %v9807_v24, %v4809_v27 }
 0xdd9   :  { %v7553_v0 = vpop.eup %7552  ;;  %6471 = vmatmul.mubr.msk.f32.gmra.mrb[92].mxu0 %vm282_vm2, %v4848_v19  ;;  %v4812_v46 = vmul.f32 %v7551_v41, %v9737_v23  ;;  %v4850_v35 = vadd.f32 %v9813_v8, %v4830_v51 }
 0xdda   :  { %v4849_v13 = vadd.f32 %v9813_v8, %v4829_v30  ;;  %v4811_v55 = vmul.f32 %v7553_v0, %v9741_v42 }
 0xddb   :  { %v4832_v61 = vmul.f32 %v9807_v24, %v4812_v46 }
 0xddc   :  { %v7555_v3 = vpop.eup %7554  ;;  %6473 = vmatprep.mubr.msk.f32.mxu0 %vm282_vm2, %v4849_v13  ;;  %v4831_v48 = vmul.f32 %v9807_v24, %v4811_v55 }
 0xddd   :  { %v7557_v53 = vpop.eup %7556  ;;  %6474 = vmatmul.mubr.msk.f32.gmra.mrb[94].mxu0 %vm282_vm2, %v4850_v35  ;;  %v4814_v40 = vmul.f32 %v7555_v3, %v9749_v45  ;;  %v4852_v42 = vadd.f32 %v9813_v8, %v4832_v61 }
 0xdde   :  { %v4851_v23 = vadd.f32 %v9813_v8, %v4831_v48  ;;  %v4813_v7 = vmul.f32 %v7557_v53, %v9753_v25 }
 0xddf   :  { %v4834_v54 = vmul.f32 %v9807_v24, %v4814_v40 }
 0xde0   :  { %v7559_v58 = vpop.eup %7558  ;;  %6476 = vmatprep.mubr.msk.f32.mxu0 %vm282_vm2, %v4851_v23  ;;  %v4833_v34 = vmul.f32 %v9807_v24, %v4813_v7 }
 0xde1   :  { %v7561_v47 = vpop.eup %7560  ;;  %6477 = vmatmul.mubr.msk.f32.gmra.mrb[96].mxu0 %vm282_vm2, %v4852_v42  ;;  %v4816_v5 = vmul.f32 %v7559_v58, %v9761_v60  ;;  %v4854_v25 = vadd.f32 %v9813_v8, %v4834_v54 }
 0xde2   :  { %v4853_v45 = vadd.f32 %v9813_v8, %v4833_v34  ;;  %v4815_v6 = vmul.f32 %v7561_v47, %v9765_v59 }
 0xde3   :  { %v4836_v52 = vmul.f32 %v9807_v24, %v4816_v5 }
 0xde4   :  { %6479 = vmatprep.mubr.msk.f32.mxu0 %vm282_vm2, %v4853_v45  ;;  %v4835_v56 = vmul.f32 %v9807_v24, %v4815_v6 }
 0xde5   :  { %6480 = vmatmul.mubr.msk.f32.gmra.mrb[98].mxu0 %vm282_vm2, %v4854_v25  ;;  %v4856_v37 = vadd.f32 %v9813_v8, %v4836_v52 }
 0xde6   :  { %v4855_v50 = vadd.f32 %v9813_v8, %v4835_v56 }
 0xde8   :  { %6482 = vmatprep.mubr.msk.f32.mxu0 %vm282_vm2, %v4855_v50 }
 0xde9   :  { %6483 = vmatmul.mubr.msk.f32.gmra.mrb[100].mxu0 %vm282_vm2, %v4856_v37 }
 0xdeb   :  { %v4750_v60 = vpop.xlane.xlu1 %4749 }
 0xdec   :  { %v4770_v59 = vmul.f32 0.03125, %v4750_v60  ;;  %v4747_v15 = vpop.xlane.xlu0 %4746 }
 0xded   :  { %v4769_v33 = vmul.f32 0.03125, %v4747_v15 }
 0xdee   :  { %v4786_v44 = vadd.f32 1e-05, %v4770_v59 }
 0xdef   :  { %v4785_v63 = vadd.f32 1e-05, %v4769_v33  ;;  %v4756_v18 = vpop.xlane.xlu1 %4755 }
 0xdf0   :  { %7562 = vrsqrt.f32 %v4786_v44  ;;  %v4772_v20 = vmul.f32 0.03125, %v4756_v18  ;;  %v4753_v22 = vpop.xlane.xlu0 %4752 }
 0xdf1   :  { %7564 = vrsqrt.f32 %v4785_v63  ;;  %v4771_v57 = vmul.f32 0.03125, %v4753_v22 }
 0xdf2   :  { %v4788_v38 = vadd.f32 1e-05, %v4772_v20 }
 0xdf3   :  { %v4787_v28 = vadd.f32 1e-05, %v4771_v57 }
 0xdf4   :  { %7566 = vrsqrt.f32 %v4788_v38 }
 0xdf5   :  { %7568 = vrsqrt.f32 %v4787_v28 }
 0xdfa   :  { %v7563_v10 = vpop.eup %7562 }
 0xdfb   :  { %v7565_v43 = vpop.eup %7564  ;;  %v4818_v21 = vmul.f32 %v7563_v10, %v9775_v62 }
 0xdfc   :  { %v4817_v4 = vmul.f32 %v7565_v43, %v9778_v9 }
 0xdfd   :  { %v4838_v2 = vmul.f32 %v9807_v24, %v4818_v21 }
 0xdfe   :  { %v7567_v11 = vpop.eup %7566  ;;  %v4837_v29 = vmul.f32 %v9807_v24, %v4817_v4 }
 0xdff   :  { %v7569_v26 = vpop.eup %7568  ;;  %v4820_v12 = vmul.f32 %v7567_v11, %v9785_v32  ;;  %v4858_v49 = vadd.f32 %v9813_v8, %v4838_v2  ;;  %v10162_v32 = vsub.s32 1, %v10144_v39 }
 0xe00   :  { %v4857_v14 = vadd.f32 %v9813_v8, %v4837_v29  ;;  %v4819_v17 = vmul.f32 %v7569_v26, %v9789_v31 }
 0xe01   :  { %v4840_v36 = vmul.f32 %v9807_v24, %v4820_v12  ;;  %v4864_v31 = vrot.slane %v9802_v1, %v10162_v32 }
 0xe02   :  { %6485 = vmatprep.mubr.msk.f32.mxu0 %vm282_vm2, %v4857_v14  ;;  %v4839_v62 = vmul.f32 %v9807_v24, %v4819_v17 }
 0xe03   :  { %6486 = vmatmul.mubr.msk.f32.gmra.mrb[102].mxu0 %vm282_vm2, %v4858_v49  ;;  %v4860_v16 = vadd.f32 %v9813_v8, %v4840_v36 }
 0xe04   :  { %v4859_v9 = vadd.f32 %v9813_v8, %v4839_v62 }
 0xe06   :  { %6488 = vmatprep.mubr.msk.f32.mxu0 %vm282_vm2, %v4859_v9 }
 0xe07   :  { %6489 = vmatmul.mubr.msk.f32.gmra.mrb[104].mxu0 %vm282_vm2, %v4860_v16 }
 0xea8   :  { %v6469_v27 = vpop.f32.mrb[90].mxu0 }
 0xea9   :  { %v4985_v19 = vadd.f32 %v6469_v27, %v4864_v31  ;;  %v4979_v51 = vpop.f32.mrb[91].mxu0 }
 0xeaa   :  { %v4980_v41 = vadd.f32 %v4979_v51, %v4864_v31 }
 0xeab   :  { %5059 = vst.msk [vmem:[%s9948_s3 + $0x8] sm:$0xff] %vm80_vm1, %v4985_v19 }
 0xeac   :  { %5058 = vst.msk [vmem:[%s9948_s3] sm:$0xff] %vm80_vm1, %v4980_v41  ;;  %v6472_v24 = vpop.f32.mrb[92].mxu0 }
 0xead   :  { %v4995_v8 = vadd.f32 %v6472_v24, %v4864_v31  ;;  %v4989_v30 = vpop.f32.mrb[93].mxu0 }
 0xeae   :  { %v4990_v39 = vadd.f32 %v4989_v30, %v4864_v31 }
 0xeaf   :  { %5061 = vst.msk [vmem:[%s9948_s3 + $0x18] sm:$0xff] %vm80_vm1, %v4995_v8 }
 0xeb0   :  { %5060 = vst.msk [vmem:[%s9948_s3 + $0x10] sm:$0xff] %vm80_vm1, %v4990_v39  ;;  %v6475_v1 = vpop.f32.mrb[94].mxu0 }
 0xeb1   :  { %v5005_v0 = vadd.f32 %v6475_v1, %v4864_v31  ;;  %v4999_v46 = vpop.f32.mrb[95].mxu0 }
 0xeb2   :  { %v5000_v13 = vadd.f32 %v4999_v46, %v4864_v31 }
 0xeb3   :  { %5063 = vst.msk [vmem:[%s9948_s3 + $0x28] sm:$0xff] %vm80_vm1, %v5005_v0 }
 0xeb4   :  { %5062 = vst.msk [vmem:[%s9948_s3 + $0x20] sm:$0xff] %vm80_vm1, %v5000_v13  ;;  %v6478_v55 = vpop.f32.mrb[96].mxu0 }
 0xeb5   :  { %v5015_v35 = vadd.f32 %v6478_v55, %v4864_v31  ;;  %v5009_v61 = vpop.f32.mrb[97].mxu0 }
 0xeb6   :  { %v5010_v3 = vadd.f32 %v5009_v61, %v4864_v31 }
 0xeb7   :  { %5065 = vst.msk [vmem:[%s9948_s3 + $0x38] sm:$0xff] %vm80_vm1, %v5015_v35 }
 0xeb8   :  { %5064 = vst.msk [vmem:[%s9948_s3 + $0x30] sm:$0xff] %vm80_vm1, %v5010_v3  ;;  %v6481_v48 = vpop.f32.mrb[98].mxu0 }
 0xeb9   :  { %v5025_v53 = vadd.f32 %v6481_v48, %v4864_v31  ;;  %v5019_v40 = vpop.f32.mrb[99].mxu0 }
 0xeba   :  { %v5020_v23 = vadd.f32 %v5019_v40, %v4864_v31 }
 0xebb   :  { %5067 = vst.msk [vmem:[%s9948_s3 + $0x48] sm:$0xff] %vm80_vm1, %v5025_v53 }
 0xebc   :  { %5066 = vst.msk [vmem:[%s9948_s3 + $0x40] sm:$0xff] %vm80_vm1, %v5020_v23  ;;  %v6484_v7 = vpop.f32.mrb[100].mxu0 }
 0xebd   :  { %v5035_v42 = vadd.f32 %v6484_v7, %v4864_v31  ;;  %v5029_v54 = vpop.f32.mrb[101].mxu0 }
 0xebe   :  { %v5030_v58 = vadd.f32 %v5029_v54, %v4864_v31 }
 0xebf   :  { %5069 = vst.msk [vmem:[%s9948_s3 + $0x58] sm:$0xff] %vm80_vm1, %v5035_v42 }
 0xec0   :  { %5068 = vst.msk [vmem:[%s9948_s3 + $0x50] sm:$0xff] %vm80_vm1, %v5030_v58 }
 0xed6   :  { %v6487_v34 = vpop.f32.mrb[102].mxu0 }
 0xed7   :  { %v5045_v47 = vadd.f32 %v6487_v34, %v4864_v31  ;;  %v5039_v5 = vpop.f32.mrb[103].mxu0 }
 0xed8   :  { %v5040_v45 = vadd.f32 %v5039_v5, %v4864_v31 }
 0xed9   :  { %5071 = vst.msk [vmem:[%s9948_s3 + $0x68] sm:$0xff] %vm80_vm1, %v5045_v47 }
 0xeda   :  { %5070 = vst.msk [vmem:[%s9948_s3 + $0x60] sm:$0xff] %vm80_vm1, %v5040_v45  ;;  %v6490_v6 = vpop.f32.mrb[104].mxu0 }
 0xedb   :  { %v5055_v25 = vadd.f32 %v6490_v6, %v4864_v31  ;;  %v5049_v52 = vpop.f32.mrb[105].mxu0 }
 0xedc   :  { %v5050_v56 = vadd.f32 %v5049_v52, %v4864_v31 }
 0xedd   :  { %5073 = vst.msk [vmem:[%s9948_s3 + $0x78] sm:$0xff] %vm80_vm1, %v5055_v25 }
 0xede   :  { %5072 = vst.msk [vmem:[%s9948_s3 + $0x70] sm:$0xff] %vm80_vm1, %v5050_v56 }
 0xedf   :  { %5078 = vsyncpa [#allocation3], 1 }

</bundles_post_ra>
